<compile_context>
chip_gen: v5e
topology: v5e:2x2
jax: 0.10.0
libtpu: 0.0.40
codegen_flags: <defaults>
</compile_context>

<pallas_src>
import functools
import math

import jax
import jax.numpy as jnp
from jax.experimental import pallas as pl
from jax.experimental.pallas import tpu as pltpu


# ----------------------------------------------------------------------------
# Fused conv stack: all three (conv3x3 + folded BN + ReLU + 2x2 max-pool) blocks
# in a single pallas_call, one batch element per grid step.
# ----------------------------------------------------------------------------
def _conv_stack_kernel(xp_ref, w1_ref, t1_ref,
                       w2_ref, t2_ref,
                       w3_ref, t3_ref,
                       o_ref, a1_ref, a2_ref, *, H, W):
    # xp_ref : (1, H+2, W+2, 1)   zero-padded input (one batch element)
    # wN_ref : (9, Cin, Cout)     3x3 taps flattened row-major (dy*3 + dx),
    #                             BN scale already folded into the weights
    # tN_ref : (1, Cout)          folded BN shift (conv bias included)
    # o_ref  : (1, H//8, W//8, 128)
    # a1_ref : VMEM (H//2+2, W//2+2, 32)  zero-padded block-1 output (stays in VMEM)
    # a2_ref : VMEM (H//4+2, W//4+2, 64)  zero-padded block-2 output (stays in VMEM)

    def conv_bn_relu(read_patch, Hc, Wc, Cin, Cout, w_ref, t_ref):
        # 9 shifted-patch matmuls with M = Hc*Wc (full MXU height) instead of M = Wc.
        acc = jnp.zeros((Hc * Wc, Cout), jnp.float32)
        for dy in range(3):
            for dx in range(3):
                patch = read_patch(dy, dx).reshape(Hc * Wc, Cin)
                wk = w_ref[dy * 3 + dx]                         # (Cin, Cout), loaded once
                if Cin == 1:
                    acc = acc + patch * wk                      # K=1 -> VPU outer product
                else:
                    acc = acc + jnp.dot(patch, wk,
                                        preferred_element_type=jnp.float32)
        return jnp.maximum(acc + t_ref[...], 0.0)               # (Hc*Wc, Cout)

    def max_pool_2x2(y, Hc, Wc, C):
        # y: (Hc*Wc, C), rows in (h, w) row-major order -> (Hc//2, Wc//2, C).
        y = y.reshape(Hc // 2, 2, Wc, C)
        y = jnp.max(y, axis=1)                  # reduce adjacent row pairs
        y = y.reshape(Hc // 2, Wc // 2, 2, C)
        return jnp.max(y, axis=2)               # reduce adjacent column pairs

    # -------- block 1: (H, W, 1) -> (H/2, W/2, 32) --------
    y1 = conv_bn_relu(lambda dy, dx: xp_ref[0, dy:dy + H, dx:dx + W, :],
                      H, W, 1, 32, w1_ref, t1_ref)
    p1 = max_pool_2x2(y1, H, W, 32)
    a1_ref[...] = jnp.zeros_like(a1_ref)
    a1_ref[1:H // 2 + 1, 1:W // 2 + 1, :] = p1

    # -------- block 2: (H/2, W/2, 32) -> (H/4, W/4, 64) --------
    H2, W2 = H // 2, W // 2
    y2 = conv_bn_relu(lambda dy, dx: a1_ref[dy:dy + H2, dx:dx + W2, :],
                      H2, W2, 32, 64, w2_ref, t2_ref)
    p2 = max_pool_2x2(y2, H2, W2, 64)
    a2_ref[...] = jnp.zeros_like(a2_ref)
    a2_ref[1:H2 // 2 + 1, 1:W2 // 2 + 1, :] = p2

    # -------- block 3: (H/4, W/4, 64) -> (H/8, W/8, 128) --------
    H3, W3 = H2 // 2, W2 // 2
    y3 = conv_bn_relu(lambda dy, dx: a2_ref[dy:dy + H3, dx:dx + W3, :],
                      H3, W3, 64, 128, w3_ref, t3_ref)
    o_ref[0] = max_pool_2x2(y3, H3, W3, 128)


def conv_stack(x_nhwc, blocks):
    B, H, W, Cin = x_nhwc.shape
    assert Cin == 1 and H % 8 == 0 and W % 8 == 0, "need 1 input channel, H/W divisible by 8"
    xp = jnp.pad(x_nhwc, ((0, 0), (1, 1), (1, 1), (0, 0)))   # tiny; inner pads done in VMEM
    Ho, Wo = H // 8, W // 8

    args = [xp]
    in_specs = [pl.BlockSpec((1, H + 2, W + 2, 1), lambda b: (b, 0, 0, 0))]
    for blk in blocks:
        cin, cout = blk["w"].shape[2], blk["w"].shape[3]
        args += [blk["w_fold"],                    # (9, cin, cout), BN scale pre-folded
                 blk["shift"].reshape(1, cout)]
        in_specs += [pl.BlockSpec((9, cin, cout), lambda b: (0, 0, 0)),
                     pl.BlockSpec((1, cout), lambda b: (0, 0))]

    kern = functools.partial(_conv_stack_kernel, H=H, W=W)
    return pl.pallas_call(
        kern,
        out_shape=jax.ShapeDtypeStruct((B, Ho, Wo, 128), jnp.float32),
        grid=(B,),
        in_specs=in_specs,
        out_specs=pl.BlockSpec((1, Ho, Wo, 128), lambda b: (b, 0, 0, 0)),
        scratch_shapes=[pltpu.VMEM((H // 2 + 2, W // 2 + 2, 32), jnp.float32),
                        pltpu.VMEM((H // 4 + 2, W // 4 + 2, 64), jnp.float32)],
        compiler_params=pltpu.CompilerParams(
            dimension_semantics=("parallel",)),   # batch is independent -> both v7x TCs
    )(*args)


# ----------------------------------------------------------------------------
# 3-layer GRU (batch_first) + final Linear, one kernel invocation.
# The last hidden state of the top layer == gru_out[:, -1, :].
# ----------------------------------------------------------------------------
def _gru_fc_kernel(x_ref, wih0_ref, wihr_ref, whh_ref, bi_ref, bh_ref,
                   wfc_ref, bfc_ref, o_ref, *, num_layers, hidden):
    # x_ref   : (B, T, 128) f32 layer-0 input (no zero padding)
    # wih0_ref: (128, 3H) bf16        wihr_ref: (L-1, H, 3H) bf16
    # whh_ref : (L, H, 3H) bf16
    # bi_ref  : (L, 1, 3H) f32        bh_ref  : (L, 1, 3H) f32
    # wfc_ref : (H, 128) bf16 (zero-padded classes)   bfc_ref : (1, 128) f32
    B, T, _ = x_ref.shape
    bf16 = lambda v: v.astype(jnp.bfloat16)

    # Time-major stack (T*B, feat): rows [t*B:(t+1)*B] hold timestep t.
    inp = jnp.concatenate([x_ref[:, t, :] for t in range(T)], axis=0)

    h = jnp.zeros((B, hidden), jnp.float32)
    for layer in range(num_layers):
        wih = wih0_ref[...] if layer == 0 else wihr_ref[layer - 1]
        whh = whh_ref[layer]
        bi = bi_ref[layer]
        bh = bh_ref[layer]
        # Input projection for ALL timesteps hoisted out of the recurrence (M = T*B).
        gi_all = jnp.dot(bf16(inp), wih, preferred_element_type=jnp.float32) + bi
        h = jnp.zeros((B, hidden), jnp.float32)
        outs = []
        for t in range(T):
            gi = gi_all[t * B:(t + 1) * B, :]
            gh = jnp.dot(bf16(h), whh, preferred_element_type=jnp.float32) + bh
            r = jax.nn.sigmoid(gi[:, 0:hidden] + gh[:, 0:hidden])
            z = jax.nn.sigmoid(gi[:, hidden:2 * hidden] + gh[:, hidden:2 * hidden])
            n = jnp.tanh(gi[:, 2 * hidden:3 * hidden]
                         + r * gh[:, 2 * hidden:3 * hidden])
            h = (1.0 - z) * n + z * h
            outs.append(h)
        if layer + 1 < num_layers:
            inp = jnp.concatenate(outs, axis=0)          # (T*B, hidden), time-major

    # Dropout(0.5) is identity in eval mode; h == gru_out[:, -1, :].
    logits = jnp.dot(bf16(h), wfc_ref[...],
                     preferred_element_type=jnp.float32) + bfc_ref[...]
    o_ref[...] = logits                                   # full-lane (128) store


def gru_fc(seq, p):
    B = seq.shape[0]
    n_pad = p["fc_wT_pad"].shape[1]
    kern = functools.partial(_gru_fc_kernel,
                             num_layers=p["num_layers"], hidden=p["hidden"])
    return pl.pallas_call(
        kern,
        out_shape=jax.ShapeDtypeStruct((B, n_pad), jnp.float32),
    )(seq, p["wih0T"], p["wihrT"], p["whhT"], p["bi_k"], p["bh_k"],
      p["fc_wT_pad"], p["fc_b_pad"])


# ----------------------------------------------------------------------------
# Parameter init (deterministic, PyTorch-like shapes) and full forward pass
# ----------------------------------------------------------------------------
def init_params(key, n_classes, hidden=256, num_layers=3):
    kit = iter(jax.random.split(key, 64))

    def u(shape, bound):
        return jax.random.uniform(next(kit), shape, jnp.float32, -bound, bound)

    conv_blocks = []
    for cin, cout in [(1, 32), (32, 64), (64, 128)]:
        bound = 1.0 / math.sqrt(cin * 9)
        w = u((3, 3, cin, cout), bound)
        b = u((cout,), bound)
        gamma = 1.0 + 0.1 * jax.random.normal(next(kit), (cout,), jnp.float32)
        beta = 0.1 * jax.random.normal(next(kit), (cout,), jnp.float32)
        mean = 0.1 * jax.random.normal(next(kit), (cout,), jnp.float32)
        var = 1.0 + 0.5 * jax.random.uniform(next(kit), (cout,), jnp.float32)
        scale = gamma / jnp.sqrt(var + 1e-5)
        shift = beta + (b - mean) * scale
        # BN scale folded into the conv weights (per output channel), taps flattened.
        w_fold = (w * scale).reshape(9, cin, cout)
        conv_blocks.append(dict(w=w, b=b, gamma=gamma, beta=beta, mean=mean,
                                var=var, scale=scale, shift=shift, w_fold=w_fold))

    gru = []
    bound = 1.0 / math.sqrt(hidden)
    for layer in range(num_layers):
        in_dim = 128 if layer == 0 else hidden
        gru.append(dict(wih=u((3 * hidden, in_dim), bound),
                        whh=u((3 * hidden, hidden), bound),
                        bih=u((3 * hidden,), bound),
                        bhh=u((3 * hidden,), bound)))

    fc_w = u((n_classes, hidden), bound)
    fc_b = u((n_classes,), bound)

    # Kernel-layout GRU params: transposed; MXU operands stored as bf16,
    # biases and all element-wise gate math stay f32.
    wih0T = gru[0]["wih"].T.astype(jnp.bfloat16)                          # (128, 3H)
    wihrT = jnp.stack([g["wih"].T for g in gru[1:]]).astype(jnp.bfloat16)  # (L-1, H, 3H)
    whhT = jnp.stack([g["whh"].T for g in gru]).astype(jnp.bfloat16)       # (L, H, 3H)
    bi_k = jnp.stack([g["bih"].reshape(1, -1) for g in gru])               # (L, 1, 3H)
    bh_k = jnp.stack([g["bhh"].reshape(1, -1) for g in gru])

    # Lane-dense FC: pad output classes to a multiple of 128 lanes (zeros), slice later.
    n_pad = max(128, ((n_classes + 127) // 128) * 128)
    fc_wT_pad = jnp.zeros((hidden, n_pad), jnp.float32)
    fc_wT_pad = fc_wT_pad.at[:, :n_classes].set(fc_w.T).astype(jnp.bfloat16)
    fc_b_pad = jnp.zeros((1, n_pad), jnp.float32).at[:, :n_classes].set(fc_b)

    return dict(conv_blocks=conv_blocks, gru=gru, fc_w=fc_w, fc_b=fc_b,
                wih0T=wih0T, wihrT=wihrT, whhT=whhT, bi_k=bi_k, bh_k=bh_k,
                fc_wT_pad=fc_wT_pad, fc_b_pad=fc_b_pad,
                hidden=hidden, num_layers=num_layers)


def my_model_forward(x, p, n_classes):
    # x: NCHW (B, 1, H, W) or (B, H, W)
    if x.ndim == 3:
        x = x[:, None, :, :]
    x = jnp.transpose(x, (0, 2, 3, 1)).astype(jnp.float32)        # NCHW -> NHWC
    feat = conv_stack(x, p["conv_blocks"])                        # (B, H/8, W/8, 128)
    B, H3, W3, C3 = feat.shape
    assert C3 == 128, "GRU input size is fixed to 128 by the module"
    # Replicate PyTorch's x.reshape(B, -1, C) on the NCHW tensor exactly.
    seq = jnp.transpose(feat, (0, 3, 1, 2)).reshape(B, -1, C3)    # (B, T, 128)
    return gru_fc(seq, p)[:, :n_classes]


# ----------------------------------------------------------------------------
# Pure-JAX f32 reference for validation
# ----------------------------------------------------------------------------
def reference_forward(x_nchw, p):
    hidden = p["hidden"]
    x = jnp.transpose(x_nchw, (0, 2, 3, 1)).astype(jnp.float32)
    for blk in p["conv_blocks"]:
        y = jax.lax.conv_general_dilated(
            x, blk["w"], window_strides=(1, 1), padding=((1, 1), (1, 1)),
            dimension_numbers=("NHWC", "HWIO", "NHWC"))
        y = y + blk["b"]
        y = (y - blk["mean"]) / jnp.sqrt(blk["var"] + 1e-5) * blk["gamma"] + blk["beta"]
        y = jnp.maximum(y, 0.0)
        x = jax.lax.reduce_window(y, -jnp.inf, jax.lax.max,
                                  (1, 2, 2, 1), (1, 2, 2, 1), "VALID")
    B = x.shape[0]
    x_nchw2 = jnp.transpose(x, (0, 3, 1, 2))
    seq = x_nchw2.reshape(B, -1, x_nchw2.shape[1])
    T = seq.shape[1]
    inp = seq
    for lp in p["gru"]:
        h = jnp.zeros((B, hidden), jnp.float32)
        outs = []
        for t in range(T):
            x_t = inp[:, t, :]
            gi = x_t @ lp["wih"].T + lp["bih"]
            gh = h @ lp["whh"].T + lp["bhh"]
            r = jax.nn.sigmoid(gi[:, :hidden] + gh[:, :hidden])
            z = jax.nn.sigmoid(gi[:, hidden:2 * hidden] + gh[:, hidden:2 * hidden])
            n = jnp.tanh(gi[:, 2 * hidden:] + r * gh[:, 2 * hidden:])
            h = (1.0 - z) * n + z * h
            outs.append(h)
        inp = jnp.stack(outs, axis=1)
    last = inp[:, -1, :]
    return last @ p["fc_w"].T + p["fc_b"]


if __name__ == "__main__":
    key = jax.random.PRNGKey(0)
    pkey, xkey = jax.random.split(key)
    n_classes = 10
    params = init_params(pkey, n_classes)

    x = jax.random.normal(xkey, (2, 1, 16, 16), jnp.float32)   # (B, C=1, H, W)

    out = my_model_forward(x, params, n_classes)
    out = jax.block_until_ready(out)
    assert out.shape == (2, n_classes)

    ref = reference_forward(x, params)
    max_diff = float(jnp.max(jnp.abs(out - ref)))
    # Tolerance accounts for bf16 MXU operands in the GRU/FC path (reference is f32).
    if not jnp.allclose(out, ref, rtol=3e-2, atol=3e-2):
        raise AssertionError(f"kernel/reference mismatch, max abs diff = {max_diff}")

    print("KERNEL_OK")
</pallas_src>

<mosaic_0001>
module attributes {stable_mosaic.version = 11 : i64} {
  func.func @_conv_stack_kernel(%arg0: i32, %arg1: memref<1x18x18x1xf32, #tpu.memory_space<vmem>>, %arg2: memref<9x1x32xf32, #tpu.memory_space<vmem>>, %arg3: memref<1x32xf32, #tpu.memory_space<vmem>>, %arg4: memref<9x32x64xf32, #tpu.memory_space<vmem>>, %arg5: memref<1x64xf32, #tpu.memory_space<vmem>>, %arg6: memref<9x64x128xf32, #tpu.memory_space<vmem>>, %arg7: memref<1x128xf32, #tpu.memory_space<vmem>>, %arg8: memref<1x2x2x128xf32, #tpu.memory_space<vmem>>, %arg9: memref<10x10x32xf32, #tpu.memory_space<vmem>>, %arg10: memref<6x6x64xf32, #tpu.memory_space<vmem>>) attributes {dimension_semantics = [#tpu.dimension_semantics<parallel>], iteration_bounds = array<i64: 2>, scalar_prefetch = 0 : i64, scratch_operands = 2 : i64, tpu.core_type = #tpu.core_type<tc>, window_params = [{transform_indices = @transform_0, window_bounds = array<i64: 1, 18, 18, 1>}, {pipeline_mode = #tpu.pipeline_mode<synchronous>, transform_indices = @transform_1, window_bounds = array<i64: 9, 1, 32>}, {pipeline_mode = #tpu.pipeline_mode<synchronous>, transform_indices = @transform_2, window_bounds = array<i64: 1, 32>}, {pipeline_mode = #tpu.pipeline_mode<synchronous>, transform_indices = @transform_3, window_bounds = array<i64: 9, 32, 64>}, {pipeline_mode = #tpu.pipeline_mode<synchronous>, transform_indices = @transform_4, window_bounds = array<i64: 1, 64>}, {pipeline_mode = #tpu.pipeline_mode<synchronous>, transform_indices = @transform_5, window_bounds = array<i64: 9, 64, 128>}, {pipeline_mode = #tpu.pipeline_mode<synchronous>, transform_indices = @transform_6, window_bounds = array<i64: 1, 128>}, {transform_indices = @transform_7, window_bounds = array<i64: 1, 2, 2, 128>}]} {
    %cst = arith.constant 0.000000e+00 : f32
    %0 = vector.broadcast %cst : f32 to vector<256x32xf32>
    %c0 = arith.constant 0 : index
    %c0_0 = arith.constant 0 : index
    %c0_1 = arith.constant 0 : index
    %c0_2 = arith.constant 0 : index
    %1 = vector.load %arg1[%c0, %c0_0, %c0_1, %c0_2] : memref<1x18x18x1xf32, #tpu.memory_space<vmem>>, vector<1x16x16x1xf32>
    %2 = vector.shape_cast %1 : vector<1x16x16x1xf32> to vector<16x16x1xf32>
    %3 = vector.shape_cast %2 : vector<16x16x1xf32> to vector<256x1xf32>
    %c0_3 = arith.constant 0 : index
    %c0_4 = arith.constant 0 : index
    %c0_5 = arith.constant 0 : index
    %4 = vector.load %arg2[%c0_3, %c0_4, %c0_5] : memref<9x1x32xf32, #tpu.memory_space<vmem>>, vector<1x1x32xf32>
    %5 = vector.shape_cast %4 : vector<1x1x32xf32> to vector<1x32xf32>
    %6 = vector.broadcast %3 : vector<256x1xf32> to vector<256x32xf32>
    %7 = vector.broadcast %5 : vector<1x32xf32> to vector<256x32xf32>
    %8 = arith.mulf %6, %7 : vector<256x32xf32>
    %9 = arith.addf %0, %8 : vector<256x32xf32>
    %c0_6 = arith.constant 0 : index
    %c0_7 = arith.constant 0 : index
    %c1 = arith.constant 1 : index
    %c0_8 = arith.constant 0 : index
    %10 = vector.load %arg1[%c0_6, %c0_7, %c1, %c0_8] : memref<1x18x18x1xf32, #tpu.memory_space<vmem>>, vector<1x16x16x1xf32>
    %11 = vector.shape_cast %10 : vector<1x16x16x1xf32> to vector<16x16x1xf32>
    %12 = vector.shape_cast %11 : vector<16x16x1xf32> to vector<256x1xf32>
    %c1_9 = arith.constant 1 : index
    %c0_10 = arith.constant 0 : index
    %c0_11 = arith.constant 0 : index
    %13 = vector.load %arg2[%c1_9, %c0_10, %c0_11] : memref<9x1x32xf32, #tpu.memory_space<vmem>>, vector<1x1x32xf32>
    %14 = vector.shape_cast %13 : vector<1x1x32xf32> to vector<1x32xf32>
    %15 = vector.broadcast %12 : vector<256x1xf32> to vector<256x32xf32>
    %16 = vector.broadcast %14 : vector<1x32xf32> to vector<256x32xf32>
    %17 = arith.mulf %15, %16 : vector<256x32xf32>
    %18 = arith.addf %9, %17 : vector<256x32xf32>
    %c0_12 = arith.constant 0 : index
    %c0_13 = arith.constant 0 : index
    %c2 = arith.constant 2 : index
    %c0_14 = arith.constant 0 : index
    %19 = vector.load %arg1[%c0_12, %c0_13, %c2, %c0_14] : memref<1x18x18x1xf32, #tpu.memory_space<vmem>>, vector<1x16x16x1xf32>
    %20 = vector.shape_cast %19 : vector<1x16x16x1xf32> to vector<16x16x1xf32>
    %21 = vector.shape_cast %20 : vector<16x16x1xf32> to vector<256x1xf32>
    %c2_15 = arith.constant 2 : index
    %c0_16 = arith.constant 0 : index
    %c0_17 = arith.constant 0 : index
    %22 = vector.load %arg2[%c2_15, %c0_16, %c0_17] : memref<9x1x32xf32, #tpu.memory_space<vmem>>, vector<1x1x32xf32>
    %23 = vector.shape_cast %22 : vector<1x1x32xf32> to vector<1x32xf32>
    %24 = vector.broadcast %21 : vector<256x1xf32> to vector<256x32xf32>
    %25 = vector.broadcast %23 : vector<1x32xf32> to vector<256x32xf32>
    %26 = arith.mulf %24, %25 : vector<256x32xf32>
    %27 = arith.addf %18, %26 : vector<256x32xf32>
    %c0_18 = arith.constant 0 : index
    %c1_19 = arith.constant 1 : index
    %c0_20 = arith.constant 0 : index
    %c0_21 = arith.constant 0 : index
    %28 = vector.load %arg1[%c0_18, %c1_19, %c0_20, %c0_21] : memref<1x18x18x1xf32, #tpu.memory_space<vmem>>, vector<1x16x16x1xf32>
    %29 = vector.shape_cast %28 : vector<1x16x16x1xf32> to vector<16x16x1xf32>
    %30 = vector.shape_cast %29 : vector<16x16x1xf32> to vector<256x1xf32>
    %c3 = arith.constant 3 : index
    %c0_22 = arith.constant 0 : index
    %c0_23 = arith.constant 0 : index
    %31 = vector.load %arg2[%c3, %c0_22, %c0_23] : memref<9x1x32xf32, #tpu.memory_space<vmem>>, vector<1x1x32xf32>
    %32 = vector.shape_cast %31 : vector<1x1x32xf32> to vector<1x32xf32>
    %33 = vector.broadcast %30 : vector<256x1xf32> to vector<256x32xf32>
    %34 = vector.broadcast %32 : vector<1x32xf32> to vector<256x32xf32>
    %35 = arith.mulf %33, %34 : vector<256x32xf32>
    %36 = arith.addf %27, %35 : vector<256x32xf32>
    %c0_24 = arith.constant 0 : index
    %c1_25 = arith.constant 1 : index
    %c1_26 = arith.constant 1 : index
    %c0_27 = arith.constant 0 : index
    %37 = vector.load %arg1[%c0_24, %c1_25, %c1_26, %c0_27] : memref<1x18x18x1xf32, #tpu.memory_space<vmem>>, vector<1x16x16x1xf32>
    %38 = vector.shape_cast %37 : vector<1x16x16x1xf32> to vector<16x16x1xf32>
    %39 = vector.shape_cast %38 : vector<16x16x1xf32> to vector<256x1xf32>
    %c4 = arith.constant 4 : index
    %c0_28 = arith.constant 0 : index
    %c0_29 = arith.constant 0 : index
    %40 = vector.load %arg2[%c4, %c0_28, %c0_29] : memref<9x1x32xf32, #tpu.memory_space<vmem>>, vector<1x1x32xf32>
    %41 = vector.shape_cast %40 : vector<1x1x32xf32> to vector<1x32xf32>
    %42 = vector.broadcast %39 : vector<256x1xf32> to vector<256x32xf32>
    %43 = vector.broadcast %41 : vector<1x32xf32> to vector<256x32xf32>
    %44 = arith.mulf %42, %43 : vector<256x32xf32>
    %45 = arith.addf %36, %44 : vector<256x32xf32>
    %c0_30 = arith.constant 0 : index
    %c1_31 = arith.constant 1 : index
    %c2_32 = arith.constant 2 : index
    %c0_33 = arith.constant 0 : index
    %46 = vector.load %arg1[%c0_30, %c1_31, %c2_32, %c0_33] : memref<1x18x18x1xf32, #tpu.memory_space<vmem>>, vector<1x16x16x1xf32>
    %47 = vector.shape_cast %46 : vector<1x16x16x1xf32> to vector<16x16x1xf32>
    %48 = vector.shape_cast %47 : vector<16x16x1xf32> to vector<256x1xf32>
    %c5 = arith.constant 5 : index
    %c0_34 = arith.constant 0 : index
    %c0_35 = arith.constant 0 : index
    %49 = vector.load %arg2[%c5, %c0_34, %c0_35] : memref<9x1x32xf32, #tpu.memory_space<vmem>>, vector<1x1x32xf32>
    %50 = vector.shape_cast %49 : vector<1x1x32xf32> to vector<1x32xf32>
    %51 = vector.broadcast %48 : vector<256x1xf32> to vector<256x32xf32>
    %52 = vector.broadcast %50 : vector<1x32xf32> to vector<256x32xf32>
    %53 = arith.mulf %51, %52 : vector<256x32xf32>
    %54 = arith.addf %45, %53 : vector<256x32xf32>
    %c0_36 = arith.constant 0 : index
    %c2_37 = arith.constant 2 : index
    %c0_38 = arith.constant 0 : index
    %c0_39 = arith.constant 0 : index
    %55 = vector.load %arg1[%c0_36, %c2_37, %c0_38, %c0_39] : memref<1x18x18x1xf32, #tpu.memory_space<vmem>>, vector<1x16x16x1xf32>
    %56 = vector.shape_cast %55 : vector<1x16x16x1xf32> to vector<16x16x1xf32>
    %57 = vector.shape_cast %56 : vector<16x16x1xf32> to vector<256x1xf32>
    %c6 = arith.constant 6 : index
    %c0_40 = arith.constant 0 : index
    %c0_41 = arith.constant 0 : index
    %58 = vector.load %arg2[%c6, %c0_40, %c0_41] : memref<9x1x32xf32, #tpu.memory_space<vmem>>, vector<1x1x32xf32>
    %59 = vector.shape_cast %58 : vector<1x1x32xf32> to vector<1x32xf32>
    %60 = vector.broadcast %57 : vector<256x1xf32> to vector<256x32xf32>
    %61 = vector.broadcast %59 : vector<1x32xf32> to vector<256x32xf32>
    %62 = arith.mulf %60, %61 : vector<256x32xf32>
    %63 = arith.addf %54, %62 : vector<256x32xf32>
    %c0_42 = arith.constant 0 : index
    %c2_43 = arith.constant 2 : index
    %c1_44 = arith.constant 1 : index
    %c0_45 = arith.constant 0 : index
    %64 = vector.load %arg1[%c0_42, %c2_43, %c1_44, %c0_45] : memref<1x18x18x1xf32, #tpu.memory_space<vmem>>, vector<1x16x16x1xf32>
    %65 = vector.shape_cast %64 : vector<1x16x16x1xf32> to vector<16x16x1xf32>
    %66 = vector.shape_cast %65 : vector<16x16x1xf32> to vector<256x1xf32>
    %c7 = arith.constant 7 : index
    %c0_46 = arith.constant 0 : index
    %c0_47 = arith.constant 0 : index
    %67 = vector.load %arg2[%c7, %c0_46, %c0_47] : memref<9x1x32xf32, #tpu.memory_space<vmem>>, vector<1x1x32xf32>
    %68 = vector.shape_cast %67 : vector<1x1x32xf32> to vector<1x32xf32>
    %69 = vector.broadcast %66 : vector<256x1xf32> to vector<256x32xf32>
    %70 = vector.broadcast %68 : vector<1x32xf32> to vector<256x32xf32>
    %71 = arith.mulf %69, %70 : vector<256x32xf32>
    %72 = arith.addf %63, %71 : vector<256x32xf32>
    %c0_48 = arith.constant 0 : index
    %c2_49 = arith.constant 2 : index
    %c2_50 = arith.constant 2 : index
    %c0_51 = arith.constant 0 : index
    %73 = vector.load %arg1[%c0_48, %c2_49, %c2_50, %c0_51] : memref<1x18x18x1xf32, #tpu.memory_space<vmem>>, vector<1x16x16x1xf32>
    %74 = vector.shape_cast %73 : vector<1x16x16x1xf32> to vector<16x16x1xf32>
    %75 = vector.shape_cast %74 : vector<16x16x1xf32> to vector<256x1xf32>
    %c8 = arith.constant 8 : index
    %c0_52 = arith.constant 0 : index
    %c0_53 = arith.constant 0 : index
    %76 = vector.load %arg2[%c8, %c0_52, %c0_53] : memref<9x1x32xf32, #tpu.memory_space<vmem>>, vector<1x1x32xf32>
    %77 = vector.shape_cast %76 : vector<1x1x32xf32> to vector<1x32xf32>
    %78 = vector.broadcast %75 : vector<256x1xf32> to vector<256x32xf32>
    %79 = vector.broadcast %77 : vector<1x32xf32> to vector<256x32xf32>
    %80 = arith.mulf %78, %79 : vector<256x32xf32>
    %81 = arith.addf %72, %80 : vector<256x32xf32>
    %c0_54 = arith.constant 0 : index
    %c0_55 = arith.constant 0 : index
    %82 = vector.load %arg3[%c0_54, %c0_55] : memref<1x32xf32, #tpu.memory_space<vmem>>, vector<1x32xf32>
    %83 = vector.broadcast %82 : vector<1x32xf32> to vector<256x32xf32>
    %84 = arith.addf %81, %83 : vector<256x32xf32>
    %cst_56 = arith.constant 0.000000e+00 : f32
    %85 = vector.broadcast %cst_56 : f32 to vector<256x32xf32>
    %86 = arith.maximumf %84, %85 : vector<256x32xf32>
    %87 = vector.shape_cast %86 : vector<256x32xf32> to vector<8x2x16x32xf32>
    %cst_57 = arith.constant dense<0xFF800000> : vector<8x16x32xf32>
    %88 = vector.multi_reduction <maximumf>, %87, %cst_57 [1] : vector<8x2x16x32xf32> to vector<8x16x32xf32>
    %89 = vector.shape_cast %88 : vector<8x16x32xf32> to vector<8x8x2x32xf32>
    %cst_58 = arith.constant dense<0xFF800000> : vector<8x8x32xf32>
    %90 = vector.multi_reduction <maximumf>, %89, %cst_58 [2] : vector<8x8x2x32xf32> to vector<8x8x32xf32>
    %cst_59 = arith.constant 0.000000e+00 : f32
    %91 = vector.broadcast %cst_59 : f32 to vector<10x10x32xf32>
    %c0_60 = arith.constant 0 : index
    %c0_61 = arith.constant 0 : index
    %c0_62 = arith.constant 0 : index
    %92 = vector.load %arg9[%c0_60, %c0_61, %c0_62] : memref<10x10x32xf32, #tpu.memory_space<vmem>>, vector<10x10x32xf32>
    tpu.vector_store %arg9[%c0_60, %c0_61, %c0_62], %91 {strides = array<i32>} : memref<10x10x32xf32, #tpu.memory_space<vmem>>, vector<10x10x32xf32>,
    %c1_63 = arith.constant 1 : index
    %c1_64 = arith.constant 1 : index
    %c0_65 = arith.constant 0 : index
    %93 = vector.load %arg9[%c1_63, %c1_64, %c0_65] : memref<10x10x32xf32, #tpu.memory_space<vmem>>, vector<8x8x32xf32>
    tpu.vector_store %arg9[%c1_63, %c1_64, %c0_65], %90 {strides = array<i32>} : memref<10x10x32xf32, #tpu.memory_space<vmem>>, vector<8x8x32xf32>,
    %cst_66 = arith.constant 0.000000e+00 : f32
    %94 = vector.broadcast %cst_66 : f32 to vector<64x64xf32>
    %c0_67 = arith.constant 0 : index
    %c0_68 = arith.constant 0 : index
    %c0_69 = arith.constant 0 : index
    %95 = vector.load %arg9[%c0_67, %c0_68, %c0_69] : memref<10x10x32xf32, #tpu.memory_space<vmem>>, vector<8x8x32xf32>
    %96 = vector.shape_cast %95 : vector<8x8x32xf32> to vector<64x32xf32>
    %c0_70 = arith.constant 0 : index
    %c0_71 = arith.constant 0 : index
    %c0_72 = arith.constant 0 : index
    %97 = vector.load %arg4[%c0_70, %c0_71, %c0_72] : memref<9x32x64xf32, #tpu.memory_space<vmem>>, vector<1x32x64xf32>
    %98 = vector.shape_cast %97 : vector<1x32x64xf32> to vector<32x64xf32>
    %cst_73 = arith.constant dense<0.000000e+00> : vector<64x64xf32>
    %99 = tpu.matmul %96, %98, %cst_73 {dimension_numbers = #tpu.dot_dimension_numbers<[1], [0], [0], [1], [0, 0, 1, 1], [], []>} : vector<64x32xf32>, vector<32x64xf32>, vector<64x64xf32> -> vector<64x64xf32>
    %100 = arith.addf %94, %99 : vector<64x64xf32>
    %c0_74 = arith.constant 0 : index
    %c1_75 = arith.constant 1 : index
    %c0_76 = arith.constant 0 : index
    %101 = vector.load %arg9[%c0_74, %c1_75, %c0_76] : memref<10x10x32xf32, #tpu.memory_space<vmem>>, vector<8x8x32xf32>
    %102 = vector.shape_cast %101 : vector<8x8x32xf32> to vector<64x32xf32>
    %c1_77 = arith.constant 1 : index
    %c0_78 = arith.constant 0 : index
    %c0_79 = arith.constant 0 : index
    %103 = vector.load %arg4[%c1_77, %c0_78, %c0_79] : memref<9x32x64xf32, #tpu.memory_space<vmem>>, vector<1x32x64xf32>
    %104 = vector.shape_cast %103 : vector<1x32x64xf32> to vector<32x64xf32>
    %cst_80 = arith.constant dense<0.000000e+00> : vector<64x64xf32>
    %105 = tpu.matmul %102, %104, %cst_80 {dimension_numbers = #tpu.dot_dimension_numbers<[1], [0], [0], [1], [0, 0, 1, 1], [], []>} : vector<64x32xf32>, vector<32x64xf32>, vector<64x64xf32> -> vector<64x64xf32>
    %106 = arith.addf %100, %105 : vector<64x64xf32>
    %c0_81 = arith.constant 0 : index
    %c2_82 = arith.constant 2 : index
    %c0_83 = arith.constant 0 : index
    %107 = vector.load %arg9[%c0_81, %c2_82, %c0_83] : memref<10x10x32xf32, #tpu.memory_space<vmem>>, vector<8x8x32xf32>
    %108 = vector.shape_cast %107 : vector<8x8x32xf32> to vector<64x32xf32>
    %c2_84 = arith.constant 2 : index
    %c0_85 = arith.constant 0 : index
    %c0_86 = arith.constant 0 : index
    %109 = vector.load %arg4[%c2_84, %c0_85, %c0_86] : memref<9x32x64xf32, #tpu.memory_space<vmem>>, vector<1x32x64xf32>
    %110 = vector.shape_cast %109 : vector<1x32x64xf32> to vector<32x64xf32>
    %cst_87 = arith.constant dense<0.000000e+00> : vector<64x64xf32>
    %111 = tpu.matmul %108, %110, %cst_87 {dimension_numbers = #tpu.dot_dimension_numbers<[1], [0], [0], [1], [0, 0, 1, 1], [], []>} : vector<64x32xf32>, vector<32x64xf32>, vector<64x64xf32> -> vector<64x64xf32>
    %112 = arith.addf %106, %111 : vector<64x64xf32>
    %c1_88 = arith.constant 1 : index
    %c0_89 = arith.constant 0 : index
    %c0_90 = arith.constant 0 : index
    %113 = vector.load %arg9[%c1_88, %c0_89, %c0_90] : memref<10x10x32xf32, #tpu.memory_space<vmem>>, vector<8x8x32xf32>
    %114 = vector.shape_cast %113 : vector<8x8x32xf32> to vector<64x32xf32>
    %c3_91 = arith.constant 3 : index
    %c0_92 = arith.constant 0 : index
    %c0_93 = arith.constant 0 : index
    %115 = vector.load %arg4[%c3_91, %c0_92, %c0_93] : memref<9x32x64xf32, #tpu.memory_space<vmem>>, vector<1x32x64xf32>
    %116 = vector.shape_cast %115 : vector<1x32x64xf32> to vector<32x64xf32>
    %cst_94 = arith.constant dense<0.000000e+00> : vector<64x64xf32>
    %117 = tpu.matmul %114, %116, %cst_94 {dimension_numbers = #tpu.dot_dimension_numbers<[1], [0], [0], [1], [0, 0, 1, 1], [], []>} : vector<64x32xf32>, vector<32x64xf32>, vector<64x64xf32> -> vector<64x64xf32>
    %118 = arith.addf %112, %117 : vector<64x64xf32>
    %c1_95 = arith.constant 1 : index
    %c1_96 = arith.constant 1 : index
    %c0_97 = arith.constant 0 : index
    %119 = vector.load %arg9[%c1_95, %c1_96, %c0_97] : memref<10x10x32xf32, #tpu.memory_space<vmem>>, vector<8x8x32xf32>
    %120 = vector.shape_cast %119 : vector<8x8x32xf32> to vector<64x32xf32>
    %c4_98 = arith.constant 4 : index
    %c0_99 = arith.constant 0 : index
    %c0_100 = arith.constant 0 : index
    %121 = vector.load %arg4[%c4_98, %c0_99, %c0_100] : memref<9x32x64xf32, #tpu.memory_space<vmem>>, vector<1x32x64xf32>
    %122 = vector.shape_cast %121 : vector<1x32x64xf32> to vector<32x64xf32>
    %cst_101 = arith.constant dense<0.000000e+00> : vector<64x64xf32>
    %123 = tpu.matmul %120, %122, %cst_101 {dimension_numbers = #tpu.dot_dimension_numbers<[1], [0], [0], [1], [0, 0, 1, 1], [], []>} : vector<64x32xf32>, vector<32x64xf32>, vector<64x64xf32> -> vector<64x64xf32>
    %124 = arith.addf %118, %123 : vector<64x64xf32>
    %c1_102 = arith.constant 1 : index
    %c2_103 = arith.constant 2 : index
    %c0_104 = arith.constant 0 : index
    %125 = vector.load %arg9[%c1_102, %c2_103, %c0_104] : memref<10x10x32xf32, #tpu.memory_space<vmem>>, vector<8x8x32xf32>
    %126 = vector.shape_cast %125 : vector<8x8x32xf32> to vector<64x32xf32>
    %c5_105 = arith.constant 5 : index
    %c0_106 = arith.constant 0 : index
    %c0_107 = arith.constant 0 : index
    %127 = vector.load %arg4[%c5_105, %c0_106, %c0_107] : memref<9x32x64xf32, #tpu.memory_space<vmem>>, vector<1x32x64xf32>
    %128 = vector.shape_cast %127 : vector<1x32x64xf32> to vector<32x64xf32>
    %cst_108 = arith.constant dense<0.000000e+00> : vector<64x64xf32>
    %129 = tpu.matmul %126, %128, %cst_108 {dimension_numbers = #tpu.dot_dimension_numbers<[1], [0], [0], [1], [0, 0, 1, 1], [], []>} : vector<64x32xf32>, vector<32x64xf32>, vector<64x64xf32> -> vector<64x64xf32>
    %130 = arith.addf %124, %129 : vector<64x64xf32>
    %c2_109 = arith.constant 2 : index
    %c0_110 = arith.constant 0 : index
    %c0_111 = arith.constant 0 : index
    %131 = vector.load %arg9[%c2_109, %c0_110, %c0_111] : memref<10x10x32xf32, #tpu.memory_space<vmem>>, vector<8x8x32xf32>
    %132 = vector.shape_cast %131 : vector<8x8x32xf32> to vector<64x32xf32>
    %c6_112 = arith.constant 6 : index
    %c0_113 = arith.constant 0 : index
    %c0_114 = arith.constant 0 : index
    %133 = vector.load %arg4[%c6_112, %c0_113, %c0_114] : memref<9x32x64xf32, #tpu.memory_space<vmem>>, vector<1x32x64xf32>
    %134 = vector.shape_cast %133 : vector<1x32x64xf32> to vector<32x64xf32>
    %cst_115 = arith.constant dense<0.000000e+00> : vector<64x64xf32>
    %135 = tpu.matmul %132, %134, %cst_115 {dimension_numbers = #tpu.dot_dimension_numbers<[1], [0], [0], [1], [0, 0, 1, 1], [], []>} : vector<64x32xf32>, vector<32x64xf32>, vector<64x64xf32> -> vector<64x64xf32>
    %136 = arith.addf %130, %135 : vector<64x64xf32>
    %c2_116 = arith.constant 2 : index
    %c1_117 = arith.constant 1 : index
    %c0_118 = arith.constant 0 : index
    %137 = vector.load %arg9[%c2_116, %c1_117, %c0_118] : memref<10x10x32xf32, #tpu.memory_space<vmem>>, vector<8x8x32xf32>
    %138 = vector.shape_cast %137 : vector<8x8x32xf32> to vector<64x32xf32>
    %c7_119 = arith.constant 7 : index
    %c0_120 = arith.constant 0 : index
    %c0_121 = arith.constant 0 : index
    %139 = vector.load %arg4[%c7_119, %c0_120, %c0_121] : memref<9x32x64xf32, #tpu.memory_space<vmem>>, vector<1x32x64xf32>
    %140 = vector.shape_cast %139 : vector<1x32x64xf32> to vector<32x64xf32>
    %cst_122 = arith.constant dense<0.000000e+00> : vector<64x64xf32>
    %141 = tpu.matmul %138, %140, %cst_122 {dimension_numbers = #tpu.dot_dimension_numbers<[1], [0], [0], [1], [0, 0, 1, 1], [], []>} : vector<64x32xf32>, vector<32x64xf32>, vector<64x64xf32> -> vector<64x64xf32>
    %142 = arith.addf %136, %141 : vector<64x64xf32>
    %c2_123 = arith.constant 2 : index
    %c2_124 = arith.constant 2 : index
    %c0_125 = arith.constant 0 : index
    %143 = vector.load %arg9[%c2_123, %c2_124, %c0_125] : memref<10x10x32xf32, #tpu.memory_space<vmem>>, vector<8x8x32xf32>
    %144 = vector.shape_cast %143 : vector<8x8x32xf32> to vector<64x32xf32>
    %c8_126 = arith.constant 8 : index
    %c0_127 = arith.constant 0 : index
    %c0_128 = arith.constant 0 : index
    %145 = vector.load %arg4[%c8_126, %c0_127, %c0_128] : memref<9x32x64xf32, #tpu.memory_space<vmem>>, vector<1x32x64xf32>
    %146 = vector.shape_cast %145 : vector<1x32x64xf32> to vector<32x64xf32>
    %cst_129 = arith.constant dense<0.000000e+00> : vector<64x64xf32>
    %147 = tpu.matmul %144, %146, %cst_129 {dimension_numbers = #tpu.dot_dimension_numbers<[1], [0], [0], [1], [0, 0, 1, 1], [], []>} : vector<64x32xf32>, vector<32x64xf32>, vector<64x64xf32> -> vector<64x64xf32>
    %148 = arith.addf %142, %147 : vector<64x64xf32>
    %c0_130 = arith.constant 0 : index
    %c0_131 = arith.constant 0 : index
    %149 = vector.load %arg5[%c0_130, %c0_131] : memref<1x64xf32, #tpu.memory_space<vmem>>, vector<1x64xf32>
    %150 = vector.broadcast %149 : vector<1x64xf32> to vector<64x64xf32>
    %151 = arith.addf %148, %150 : vector<64x64xf32>
    %cst_132 = arith.constant 0.000000e+00 : f32
    %152 = vector.broadcast %cst_132 : f32 to vector<64x64xf32>
    %153 = arith.maximumf %151, %152 : vector<64x64xf32>
    %154 = vector.shape_cast %153 : vector<64x64xf32> to vector<4x2x8x64xf32>
    %cst_133 = arith.constant dense<0xFF800000> : vector<4x8x64xf32>
    %155 = vector.multi_reduction <maximumf>, %154, %cst_133 [1] : vector<4x2x8x64xf32> to vector<4x8x64xf32>
    %156 = vector.shape_cast %155 : vector<4x8x64xf32> to vector<4x4x2x64xf32>
    %cst_134 = arith.constant dense<0xFF800000> : vector<4x4x64xf32>
    %157 = vector.multi_reduction <maximumf>, %156, %cst_134 [2] : vector<4x4x2x64xf32> to vector<4x4x64xf32>
    %cst_135 = arith.constant 0.000000e+00 : f32
    %158 = vector.broadcast %cst_135 : f32 to vector<6x6x64xf32>
    %c0_136 = arith.constant 0 : index
    %c0_137 = arith.constant 0 : index
    %c0_138 = arith.constant 0 : index
    %159 = vector.load %arg10[%c0_136, %c0_137, %c0_138] : memref<6x6x64xf32, #tpu.memory_space<vmem>>, vector<6x6x64xf32>
    tpu.vector_store %arg10[%c0_136, %c0_137, %c0_138], %158 {strides = array<i32>} : memref<6x6x64xf32, #tpu.memory_space<vmem>>, vector<6x6x64xf32>,
    %c1_139 = arith.constant 1 : index
    %c1_140 = arith.constant 1 : index
    %c0_141 = arith.constant 0 : index
    %160 = vector.load %arg10[%c1_139, %c1_140, %c0_141] : memref<6x6x64xf32, #tpu.memory_space<vmem>>, vector<4x4x64xf32>
    tpu.vector_store %arg10[%c1_139, %c1_140, %c0_141], %157 {strides = array<i32>} : memref<6x6x64xf32, #tpu.memory_space<vmem>>, vector<4x4x64xf32>,
    %cst_142 = arith.constant 0.000000e+00 : f32
    %161 = vector.broadcast %cst_142 : f32 to vector<16x128xf32>
    %c0_143 = arith.constant 0 : index
    %c0_144 = arith.constant 0 : index
    %c0_145 = arith.constant 0 : index
    %162 = vector.load %arg10[%c0_143, %c0_144, %c0_145] : memref<6x6x64xf32, #tpu.memory_space<vmem>>, vector<4x4x64xf32>
    %163 = vector.shape_cast %162 : vector<4x4x64xf32> to vector<16x64xf32>
    %c0_146 = arith.constant 0 : index
    %c0_147 = arith.constant 0 : index
    %c0_148 = arith.constant 0 : index
    %164 = vector.load %arg6[%c0_146, %c0_147, %c0_148] : memref<9x64x128xf32, #tpu.memory_space<vmem>>, vector<1x64x128xf32>
    %165 = vector.shape_cast %164 : vector<1x64x128xf32> to vector<64x128xf32>
    %cst_149 = arith.constant dense<0.000000e+00> : vector<16x128xf32>
    %166 = tpu.matmul %163, %165, %cst_149 {dimension_numbers = #tpu.dot_dimension_numbers<[1], [0], [0], [1], [0, 0, 1, 1], [], []>} : vector<16x64xf32>, vector<64x128xf32>, vector<16x128xf32> -> vector<16x128xf32>
    %167 = arith.addf %161, %166 : vector<16x128xf32>
    %c0_150 = arith.constant 0 : index
    %c1_151 = arith.constant 1 : index
    %c0_152 = arith.constant 0 : index
    %168 = vector.load %arg10[%c0_150, %c1_151, %c0_152] : memref<6x6x64xf32, #tpu.memory_space<vmem>>, vector<4x4x64xf32>
    %169 = vector.shape_cast %168 : vector<4x4x64xf32> to vector<16x64xf32>
    %c1_153 = arith.constant 1 : index
    %c0_154 = arith.constant 0 : index
    %c0_155 = arith.constant 0 : index
    %170 = vector.load %arg6[%c1_153, %c0_154, %c0_155] : memref<9x64x128xf32, #tpu.memory_space<vmem>>, vector<1x64x128xf32>
    %171 = vector.shape_cast %170 : vector<1x64x128xf32> to vector<64x128xf32>
    %cst_156 = arith.constant dense<0.000000e+00> : vector<16x128xf32>
    %172 = tpu.matmul %169, %171, %cst_156 {dimension_numbers = #tpu.dot_dimension_numbers<[1], [0], [0], [1], [0, 0, 1, 1], [], []>} : vector<16x64xf32>, vector<64x128xf32>, vector<16x128xf32> -> vector<16x128xf32>
    %173 = arith.addf %167, %172 : vector<16x128xf32>
    %c0_157 = arith.constant 0 : index
    %c2_158 = arith.constant 2 : index
    %c0_159 = arith.constant 0 : index
    %174 = vector.load %arg10[%c0_157, %c2_158, %c0_159] : memref<6x6x64xf32, #tpu.memory_space<vmem>>, vector<4x4x64xf32>
    %175 = vector.shape_cast %174 : vector<4x4x64xf32> to vector<16x64xf32>
    %c2_160 = arith.constant 2 : index
    %c0_161 = arith.constant 0 : index
    %c0_162 = arith.constant 0 : index
    %176 = vector.load %arg6[%c2_160, %c0_161, %c0_162] : memref<9x64x128xf32, #tpu.memory_space<vmem>>, vector<1x64x128xf32>
    %177 = vector.shape_cast %176 : vector<1x64x128xf32> to vector<64x128xf32>
    %cst_163 = arith.constant dense<0.000000e+00> : vector<16x128xf32>
    %178 = tpu.matmul %175, %177, %cst_163 {dimension_numbers = #tpu.dot_dimension_numbers<[1], [0], [0], [1], [0, 0, 1, 1], [], []>} : vector<16x64xf32>, vector<64x128xf32>, vector<16x128xf32> -> vector<16x128xf32>
    %179 = arith.addf %173, %178 : vector<16x128xf32>
    %c1_164 = arith.constant 1 : index
    %c0_165 = arith.constant 0 : index
    %c0_166 = arith.constant 0 : index
    %180 = vector.load %arg10[%c1_164, %c0_165, %c0_166] : memref<6x6x64xf32, #tpu.memory_space<vmem>>, vector<4x4x64xf32>
    %181 = vector.shape_cast %180 : vector<4x4x64xf32> to vector<16x64xf32>
    %c3_167 = arith.constant 3 : index
    %c0_168 = arith.constant 0 : index
    %c0_169 = arith.constant 0 : index
    %182 = vector.load %arg6[%c3_167, %c0_168, %c0_169] : memref<9x64x128xf32, #tpu.memory_space<vmem>>, vector<1x64x128xf32>
    %183 = vector.shape_cast %182 : vector<1x64x128xf32> to vector<64x128xf32>
    %cst_170 = arith.constant dense<0.000000e+00> : vector<16x128xf32>
    %184 = tpu.matmul %181, %183, %cst_170 {dimension_numbers = #tpu.dot_dimension_numbers<[1], [0], [0], [1], [0, 0, 1, 1], [], []>} : vector<16x64xf32>, vector<64x128xf32>, vector<16x128xf32> -> vector<16x128xf32>
    %185 = arith.addf %179, %184 : vector<16x128xf32>
    %c1_171 = arith.constant 1 : index
    %c1_172 = arith.constant 1 : index
    %c0_173 = arith.constant 0 : index
    %186 = vector.load %arg10[%c1_171, %c1_172, %c0_173] : memref<6x6x64xf32, #tpu.memory_space<vmem>>, vector<4x4x64xf32>
    %187 = vector.shape_cast %186 : vector<4x4x64xf32> to vector<16x64xf32>
    %c4_174 = arith.constant 4 : index
    %c0_175 = arith.constant 0 : index
    %c0_176 = arith.constant 0 : index
    %188 = vector.load %arg6[%c4_174, %c0_175, %c0_176] : memref<9x64x128xf32, #tpu.memory_space<vmem>>, vector<1x64x128xf32>
    %189 = vector.shape_cast %188 : vector<1x64x128xf32> to vector<64x128xf32>
    %cst_177 = arith.constant dense<0.000000e+00> : vector<16x128xf32>
    %190 = tpu.matmul %187, %189, %cst_177 {dimension_numbers = #tpu.dot_dimension_numbers<[1], [0], [0], [1], [0, 0, 1, 1], [], []>} : vector<16x64xf32>, vector<64x128xf32>, vector<16x128xf32> -> vector<16x128xf32>
    %191 = arith.addf %185, %190 : vector<16x128xf32>
    %c1_178 = arith.constant 1 : index
    %c2_179 = arith.constant 2 : index
    %c0_180 = arith.constant 0 : index
    %192 = vector.load %arg10[%c1_178, %c2_179, %c0_180] : memref<6x6x64xf32, #tpu.memory_space<vmem>>, vector<4x4x64xf32>
    %193 = vector.shape_cast %192 : vector<4x4x64xf32> to vector<16x64xf32>
    %c5_181 = arith.constant 5 : index
    %c0_182 = arith.constant 0 : index
    %c0_183 = arith.constant 0 : index
    %194 = vector.load %arg6[%c5_181, %c0_182, %c0_183] : memref<9x64x128xf32, #tpu.memory_space<vmem>>, vector<1x64x128xf32>
    %195 = vector.shape_cast %194 : vector<1x64x128xf32> to vector<64x128xf32>
    %cst_184 = arith.constant dense<0.000000e+00> : vector<16x128xf32>
    %196 = tpu.matmul %193, %195, %cst_184 {dimension_numbers = #tpu.dot_dimension_numbers<[1], [0], [0], [1], [0, 0, 1, 1], [], []>} : vector<16x64xf32>, vector<64x128xf32>, vector<16x128xf32> -> vector<16x128xf32>
    %197 = arith.addf %191, %196 : vector<16x128xf32>
    %c2_185 = arith.constant 2 : index
    %c0_186 = arith.constant 0 : index
    %c0_187 = arith.constant 0 : index
    %198 = vector.load %arg10[%c2_185, %c0_186, %c0_187] : memref<6x6x64xf32, #tpu.memory_space<vmem>>, vector<4x4x64xf32>
    %199 = vector.shape_cast %198 : vector<4x4x64xf32> to vector<16x64xf32>
    %c6_188 = arith.constant 6 : index
    %c0_189 = arith.constant 0 : index
    %c0_190 = arith.constant 0 : index
    %200 = vector.load %arg6[%c6_188, %c0_189, %c0_190] : memref<9x64x128xf32, #tpu.memory_space<vmem>>, vector<1x64x128xf32>
    %201 = vector.shape_cast %200 : vector<1x64x128xf32> to vector<64x128xf32>
    %cst_191 = arith.constant dense<0.000000e+00> : vector<16x128xf32>
    %202 = tpu.matmul %199, %201, %cst_191 {dimension_numbers = #tpu.dot_dimension_numbers<[1], [0], [0], [1], [0, 0, 1, 1], [], []>} : vector<16x64xf32>, vector<64x128xf32>, vector<16x128xf32> -> vector<16x128xf32>
    %203 = arith.addf %197, %202 : vector<16x128xf32>
    %c2_192 = arith.constant 2 : index
    %c1_193 = arith.constant 1 : index
    %c0_194 = arith.constant 0 : index
    %204 = vector.load %arg10[%c2_192, %c1_193, %c0_194] : memref<6x6x64xf32, #tpu.memory_space<vmem>>, vector<4x4x64xf32>
    %205 = vector.shape_cast %204 : vector<4x4x64xf32> to vector<16x64xf32>
    %c7_195 = arith.constant 7 : index
    %c0_196 = arith.constant 0 : index
    %c0_197 = arith.constant 0 : index
    %206 = vector.load %arg6[%c7_195, %c0_196, %c0_197] : memref<9x64x128xf32, #tpu.memory_space<vmem>>, vector<1x64x128xf32>
    %207 = vector.shape_cast %206 : vector<1x64x128xf32> to vector<64x128xf32>
    %cst_198 = arith.constant dense<0.000000e+00> : vector<16x128xf32>
    %208 = tpu.matmul %205, %207, %cst_198 {dimension_numbers = #tpu.dot_dimension_numbers<[1], [0], [0], [1], [0, 0, 1, 1], [], []>} : vector<16x64xf32>, vector<64x128xf32>, vector<16x128xf32> -> vector<16x128xf32>
    %209 = arith.addf %203, %208 : vector<16x128xf32>
    %c2_199 = arith.constant 2 : index
    %c2_200 = arith.constant 2 : index
    %c0_201 = arith.constant 0 : index
    %210 = vector.load %arg10[%c2_199, %c2_200, %c0_201] : memref<6x6x64xf32, #tpu.memory_space<vmem>>, vector<4x4x64xf32>
    %211 = vector.shape_cast %210 : vector<4x4x64xf32> to vector<16x64xf32>
    %c8_202 = arith.constant 8 : index
    %c0_203 = arith.constant 0 : index
    %c0_204 = arith.constant 0 : index
    %212 = vector.load %arg6[%c8_202, %c0_203, %c0_204] : memref<9x64x128xf32, #tpu.memory_space<vmem>>, vector<1x64x128xf32>
    %213 = vector.shape_cast %212 : vector<1x64x128xf32> to vector<64x128xf32>
    %cst_205 = arith.constant dense<0.000000e+00> : vector<16x128xf32>
    %214 = tpu.matmul %211, %213, %cst_205 {dimension_numbers = #tpu.dot_dimension_numbers<[1], [0], [0], [1], [0, 0, 1, 1], [], []>} : vector<16x64xf32>, vector<64x128xf32>, vector<16x128xf32> -> vector<16x128xf32>
    %215 = arith.addf %209, %214 : vector<16x128xf32>
    %c0_206 = arith.constant 0 : index
    %c0_207 = arith.constant 0 : index
    %216 = vector.load %arg7[%c0_206, %c0_207] : memref<1x128xf32, #tpu.memory_space<vmem>>, vector<1x128xf32>
    %217 = vector.broadcast %216 : vector<1x128xf32> to vector<16x128xf32>
    %218 = arith.addf %215, %217 : vector<16x128xf32>
    %cst_208 = arith.constant 0.000000e+00 : f32
    %219 = vector.broadcast %cst_208 : f32 to vector<16x128xf32>
    %220 = arith.maximumf %218, %219 : vector<16x128xf32>
    %221 = vector.shape_cast %220 : vector<16x128xf32> to vector<2x2x4x128xf32>
    %cst_209 = arith.constant dense<0xFF800000> : vector<2x4x128xf32>
    %222 = vector.multi_reduction <maximumf>, %221, %cst_209 [1] : vector<2x2x4x128xf32> to vector<2x4x128xf32>
    %223 = vector.shape_cast %222 : vector<2x4x128xf32> to vector<2x2x2x128xf32>
    %cst_210 = arith.constant dense<0xFF800000> : vector<2x2x128xf32>
    %224 = vector.multi_reduction <maximumf>, %223, %cst_210 [2] : vector<2x2x2x128xf32> to vector<2x2x128xf32>
    %c0_211 = arith.constant 0 : index
    %c0_212 = arith.constant 0 : index
    %c0_213 = arith.constant 0 : index
    %c0_214 = arith.constant 0 : index
    %225 = vector.load %arg8[%c0_211, %c0_212, %c0_213, %c0_214] : memref<1x2x2x128xf32, #tpu.memory_space<vmem>>, vector<1x2x2x128xf32>
    %226 = vector.shape_cast %225 : vector<1x2x2x128xf32> to vector<2x2x128xf32>
    %227 = vector.shape_cast %224 : vector<2x2x128xf32> to vector<1x2x2x128xf32>
    tpu.vector_store %arg8[%c0_211, %c0_212, %c0_213, %c0_214], %227 {strides = array<i32>} : memref<1x2x2x128xf32, #tpu.memory_space<vmem>>, vector<1x2x2x128xf32>,
    return
  }
  func.func @transform_0(%arg0: i32) -> (i32, i32, i32, i32) {
    %c0_i32 = arith.constant 0 : i32
    %c0_i32_0 = arith.constant 0 : i32
    %c0_i32_1 = arith.constant 0 : i32
    %c0_i32_2 = arith.constant 0 : i32
    return %arg0, %c0_i32, %c0_i32_0, %c0_i32_1 : i32, i32, i32, i32
  }
  func.func @transform_1(%arg0: i32) -> (i32, i32, i32) {
    %c0_i32 = arith.constant 0 : i32
    %c0_i32_0 = arith.constant 0 : i32
    %c0_i32_1 = arith.constant 0 : i32
    %c0_i32_2 = arith.constant 0 : i32
    return %c0_i32, %c0_i32_0, %c0_i32_1 : i32, i32, i32
  }
  func.func @transform_2(%arg0: i32) -> (i32, i32) {
    %c0_i32 = arith.constant 0 : i32
    %c0_i32_0 = arith.constant 0 : i32
    %c0_i32_1 = arith.constant 0 : i32
    return %c0_i32, %c0_i32_0 : i32, i32
  }
  func.func @transform_3(%arg0: i32) -> (i32, i32, i32) {
    %c0_i32 = arith.constant 0 : i32
    %c0_i32_0 = arith.constant 0 : i32
    %c0_i32_1 = arith.constant 0 : i32
    %c0_i32_2 = arith.constant 0 : i32
    return %c0_i32, %c0_i32_0, %c0_i32_1 : i32, i32, i32
  }
  func.func @transform_4(%arg0: i32) -> (i32, i32) {
    %c0_i32 = arith.constant 0 : i32
    %c0_i32_0 = arith.constant 0 : i32
    %c0_i32_1 = arith.constant 0 : i32
    return %c0_i32, %c0_i32_0 : i32, i32
  }
  func.func @transform_5(%arg0: i32) -> (i32, i32, i32) {
    %c0_i32 = arith.constant 0 : i32
    %c0_i32_0 = arith.constant 0 : i32
    %c0_i32_1 = arith.constant 0 : i32
    %c0_i32_2 = arith.constant 0 : i32
    return %c0_i32, %c0_i32_0, %c0_i32_1 : i32, i32, i32
  }
  func.func @transform_6(%arg0: i32) -> (i32, i32) {
    %c0_i32 = arith.constant 0 : i32
    %c0_i32_0 = arith.constant 0 : i32
    %c0_i32_1 = arith.constant 0 : i32
    return %c0_i32, %c0_i32_0 : i32, i32
  }
  func.func @transform_7(%arg0: i32) -> (i32, i32, i32, i32) {
    %c0_i32 = arith.constant 0 : i32
    %c0_i32_0 = arith.constant 0 : i32
    %c0_i32_1 = arith.constant 0 : i32
    %c0_i32_2 = arith.constant 0 : i32
    return %arg0, %c0_i32, %c0_i32_0, %c0_i32_1 : i32, i32, i32, i32
  }
}

</mosaic_0001>

<bundles_post_ra>
// kernel: tpu_custom_call.1
= control target key start
LH: loop header
LB: loop body
LE: loop exit
PB: predicated region body
PF: predicated region fallthrough
CT: control target
= control target key end

     0   :  { %12 = vsyncpa [#allocation5], 0  ;;  %s8421_s0 = inlined_call_operand.vmem [shape: f32[2,18,18,1], index: 0, kind: input, shape index: {}]   ;;  %s8422_s1 = inlined_call_operand.vmem [shape: f32[9,1,32], index: 1, kind: input, shape index: {}]   ;;  %s8423_s2 = inlined_call_operand.vmem [shape: f32[1,32], index: 2, kind: input, shape index: {}]   ;;  %s8424_s3 = inlined_call_operand.vmem [shape: f32[9,32,64], index: 3, kind: input, shape index: {}]   ;;  %s8425_s4 = inlined_call_operand.vmem [shape: f32[1,64], index: 4, kind: input, shape index: {}]   ;;  %s8426_s5 = inlined_call_operand.vmem [shape: f32[9,64,128], index: 5, kind: input, shape index: {}]   ;;  %s8427_s6 = inlined_call_operand.vmem [shape: f32[1,128], index: 6, kind: input, shape index: {}]   ;;  %s8428_s7 = inlined_call_operand.hbm [shape: f32[2,2,2,128], index: 7, kind: output, shape index: {}]  }
   0x1   :  { %14 = vsyncpa [#allocation5 + $0x1], 0  ;;  %s5680_s24 = smov 0   ;;  %s5682_s25 = smov 0  }
   0x2   :  { %s5684_s26 = smov 0   ;;  %s5686_s27 = smov 0  }
   0x3 LB: > { %s5701_s28 = sadd.s32 4294967295, %s5634_s27   ;;  %s5090_s29 = sadd.s32 4294967294, %s5634_s27   ;;  %s5634_s27 = sphi %s5686_s27, %s8789_s27   ;;  %s5630_s26 = sphi %s5684_s26, %s8788_s26   ;;  %s5626_s25 = sphi %s5682_s25, %s8787_s25   ;;  %s5622_s24 = sphi %s5680_s24, %s8786_s24  }
   0x4   : > { %s5705_s30 = sadd.s32 1, %s5634_s27   ;;  %s179_s8 = sadd.s32 1, %s5630_s26 }
   0x5   : > { %s176_s9 = ssub.s32 %s5634_s27, %s5705_s30  ;;  %p189_p0 = scmp.ne.s32.totalorder %s5630_s26, %s5626_s25 }
   0x6   : > { %p177_p1 = scmp.eq.s32.totalorder %s176_s9, 0  ;;  %p190_p2 = scmp.eq.s32.totalorder %s5701_s28, 1 }
   0x7   : > { %p195_p3 = scmp.ne.s32.totalorder %s5626_s25, %s5622_s24  ;;  %p196_p4 = scmp.eq.s32.totalorder %s5090_s29, 1 }
   0x8   : > { %s5716_s10 = scalar_select %p177_p1, %s5630_s26, %s179_s8  }
   0x9   : > { %p5718_p5 = por %p190_p2, %p189_p0  ;;  %p5722_p6 = por %p196_p4, %p195_p3 }
   0xa   : > { %p5093_p7 = scmp.ge.s32.totalorder %s5634_s27, 1  ;;  %p240_p8 = scmp.lt.s32.totalorder %s5634_s27, 3 }
   0xc   : > { %p241_p9 = pnand %p5093_p7, %p240_p8 }
   0xe   : > { %244 = sbr.rel (%p241_p9) target bundleno = 1420 (0x58c), region = 48 }
  0x13   : > { %p272_p10 = scmp.lt.s32.totalorder %s5701_s28, 1  ;;  %v5636_v0 = vmov 0   ;;  %vm2695_vm0 = vcmask 261120   ;;  %vm2856_vm1 = vcmask 254976   ;;  %vm3389_vm2 = vcmask 1041409   ;;  %s269_s18 = sand.u32 1, %s5626_s25  }
  0x14   : > { %5538 = vset.pattern.permute.xlu2 %v5636_v0  ;;  %5537 = vset.pattern.permute.xlu1 %v5636_v0  ;;  %vm3391_vm3 = vcmask 1042434   ;;  %vm3393_vm4 = vcmask 1043459   ;;  %vm3395_vm5 = vcmask 1044484   ;;  %vm3397_vm6 = vcmask 1045509   ;;  %s5094_s19 = sshll.u32 %s269_s18, 2  ;;  %s5487_s21 = sshll.u32 %s5701_s28, 2 }
  0x15   : > { %5536 = vset.pattern.permute.xlu0 %v5636_v0  ;;  %s273_s13 = scalar_select %p272_p10, %s5701_s28, 1  ;;  %vm3399_vm7 = vcmask 1046534   ;;  %vm3401_vm8 = vcmask 1047559   ;;  %vm4401_vm9 = vcmask 521216   ;;  %vm4247_vm10 = vcmask 523264  }
  0x16   : > { %vm4288_vm11 = vcmask 517120   ;;  %vm4441_vm12 = vcmask 519168   ;;  %vm4951_vm13 = vcmask 1043456   ;;  %vm4962_vm14 = vcmask 1041408   ;;  %s271_s20 = scalar_lea.vmem [#allocation4], %s5094_s19  ;;  %s5024_s29 = scalar_lea.hbm %s8428_s7, %s5487_s21 }
  0x17   : > { %s5492_s14 = smul.u32 432, %s273_s13  ;;  %vm4964_vm15 = vcmask 1043458   ;;  %s5025_s8 = sshll.u32 %s271_s20, 4  ;;  %s5026_s8 = int_to_ptr.vmem [resolvable:$true] %s5025_s8 }
  0x18   : > { %s5027_s9 = sshll.u32 %s5024_s29, 4  ;;  %s5013_s28 = scalar_lea.sflag [#allocation5], %s269_s18  ;;  %s5028_s9 = int_to_ptr.hbm [resolvable:$true] %s5027_s9 }
  0x19   : > { %s5733_s17 = scalar_lea.vmem %s8421_s0, %s5492_s14  ;;  %s5586_s13 = sshra.s32 %s5028_s9, 4  ;;  %s5587_s13 = int_to_ptr.hbm [resolvable:$true] %s5586_s13 }
  0x1a   : > { %v5736_v1 = vld [vmem:[%s5733_s17 + $0x30] sm:$0xff]  ;;  %v5739_v2 = vld [vmem:[%s5733_s17 + $0x18] sm:$0xff]  ;;  %v277_v3 = vld [vmem:[%s5733_s17] sm:$0xff]  ;;  %s5592_s16 = scalar_lea.hbm %s8428_s7, 8  ;;  %p5593_p0 = scmp.lt.s32.totalorder %s5587_s13, %s8428_s7 }
  0x1b   : > { %332 = vperm.xlu2 %5538, %v5736_v1   ;;  %322 = vperm.xlu1 %5537, %v5739_v2   ;;  %v5745_v4 = vld [vmem:[%s5733_s17 + $0x38] sm:$0xff]  ;;  %v5748_v5 = vld [vmem:[%s5733_s17 + $0x20] sm:$0xff]  ;;  %v278_v6 = vld [vmem:[%s5733_s17 + $0x8] sm:$0xff] }
  0x1c   : > { %312 = vperm.xlu0 %5536, %v277_v3   ;;  %v5754_v7 = vld [vmem:[%s5733_s17 + $0x60] sm:$0xff]  ;;  %v5757_v8 = vld [vmem:[%s5733_s17 + $0x50] sm:$0xff]  ;;  %v5760_v9 = vld [vmem:[%s5733_s17 + $0x48] sm:$0xff] }
  0x1d   : > { %v5766_v10 = vld [vmem:[%s5733_s17 + $0x80] sm:$0xff]  ;;  %v5769_v11 = vld [vmem:[%s5733_s17 + $0x78] sm:$0xff]  ;;  %v5772_v12 = vld [vmem:[%s5733_s17 + $0x68] sm:$0xff] }
  0x1e   : > { %v5778_v13 = vld [vmem:[%s5733_s17 + $0xa8] sm:$0xff]  ;;  %v5781_v14 = vld [vmem:[%s5733_s17 + $0x98] sm:$0xff]  ;;  %v5784_v15 = vld [vmem:[%s5733_s17 + $0x90] sm:$0xff] }
  0x1f   : > { %v5790_v16 = vld [vmem:[%s5733_s17 + $0xc8] sm:$0xff]  ;;  %v5793_v17 = vld [vmem:[%s5733_s17 + $0xc0] sm:$0xff]  ;;  %v5796_v18 = vld [vmem:[%s5733_s17 + $0xb0] sm:$0xff] }
  0x20   : > { %v5802_v19 = vld [vmem:[%s5733_s17 + $0xf0] sm:$0xff]  ;;  %v5805_v20 = vld [vmem:[%s5733_s17 + $0xe0] sm:$0xff]  ;;  %v5808_v21 = vld [vmem:[%s5733_s17 + $0xd8] sm:$0xff] }
  0x21   : > { %v5814_v22 = vld [vmem:[%s5733_s17 + $0x110] sm:$0xff]  ;;  %v5817_v23 = vld [vmem:[%s5733_s17 + $0x108] sm:$0xff]  ;;  %v5820_v24 = vld [vmem:[%s5733_s17 + $0xf8] sm:$0xff] }
  0x22   : > { %v5826_v25 = vld [vmem:[%s5733_s17 + $0x138] sm:$0xff]  ;;  %v5829_v26 = vld [vmem:[%s5733_s17 + $0x128] sm:$0xff]  ;;  %v5832_v27 = vld [vmem:[%s5733_s17 + $0x120] sm:$0xff] }
  0x23   : > { %337 = vperm.xlu2 %5538, %v5745_v4   ;;  %327 = vperm.xlu1 %5537, %v5748_v5   ;;  %v5838_v28 = vld [vmem:[%s5733_s17 + $0x158] sm:$0xff]  ;;  %v5841_v29 = vld [vmem:[%s5733_s17 + $0x150] sm:$0xff]  ;;  %v5844_v30 = vld [vmem:[%s5733_s17 + $0x140] sm:$0xff] }
  0x24   : > { %317 = vperm.xlu0 %5536, %v278_v6   ;;  %v537_v31 = vld [vmem:[%s5733_s17 + $0x1] sm:$0xff]  ;;  %v5851_v32 = vld [vmem:[%s5733_s17 + $0x170] sm:$0xff]  ;;  %v5862_v35 = vld [vmem:[%s5733_s17 + $0x19] sm:$0xff] }
  0x25   : > { %v5854_v33 = vld [vmem:[%s5733_s17 + $0x168] sm:$0xff]  ;;  %v5873_v39 = vld [vmem:[%s5733_s17 + $0x39] sm:$0xff]  ;;  %v5876_v40 = vld [vmem:[%s5733_s17 + $0x31] sm:$0xff] }
  0x26   : > { %v5859_v34 = vld [vmem:[%s5733_s17 + $0x21] sm:$0xff]  ;;  %v538_v36 = vld [vmem:[%s5733_s17 + $0x9] sm:$0xff]  ;;  %v5890_v44 = vld [vmem:[%s5733_s17 + $0x51] sm:$0xff] }
  0x27   : > { %v5870_v38 = vld [vmem:[%s5733_s17 + $0x49] sm:$0xff]  ;;  %v5887_v43 = vld [vmem:[%s5733_s17 + $0x61] sm:$0xff]  ;;  %v5898_v46 = vld [vmem:[%s5733_s17 + $0x91] sm:$0xff] }
  0x28   : > { %v5884_v42 = vld [vmem:[%s5733_s17 + $0x69] sm:$0xff]  ;;  %v5901_v47 = vld [vmem:[%s5733_s17 + $0x81] sm:$0xff]  ;;  %v5904_v48 = vld [vmem:[%s5733_s17 + $0x79] sm:$0xff] }
  0x29   : > { %v5916_v52 = vld [vmem:[%s5733_s17 + $0xb1] sm:$0xff]  ;;  %v5919_v53 = vld [vmem:[%s5733_s17 + $0xa9] sm:$0xff]  ;;  %v5922_v54 = vld [vmem:[%s5733_s17 + $0x99] sm:$0xff] }
  0x2a   : > { %v5934_v58 = vld [vmem:[%s5733_s17 + $0xd9] sm:$0xff]  ;;  %v5937_v59 = vld [vmem:[%s5733_s17 + $0xc9] sm:$0xff]  ;;  %v5940_v60 = vld [vmem:[%s5733_s17 + $0xc1] sm:$0xff] }
  0x2b   : > { %352 = vperm.xlu2 %5538, %v5754_v7   ;;  %347 = vperm.xlu1 %5537, %v5757_v8   ;;  %v5952_v0 = vld [vmem:[%s5733_s17 + $0xf9] sm:$0xff]  ;;  %v5955_v3 = vld [vmem:[%s5733_s17 + $0xf1] sm:$0xff]  ;;  %v5958_v6 = vld [vmem:[%s5733_s17 + $0xe1] sm:$0xff] }
  0x2c   : > { %342 = vperm.xlu0 %5536, %v5760_v9  }
  0x33   : > { %367 = vperm.xlu2 %5538, %v5766_v10   ;;  %362 = vperm.xlu1 %5537, %v5769_v11  }
  0x34   : > { %357 = vperm.xlu0 %5536, %v5772_v12  }
  0x3b   : > { %382 = vperm.xlu2 %5538, %v5778_v13   ;;  %377 = vperm.xlu1 %5537, %v5781_v14  }
  0x3c   : > { %372 = vperm.xlu0 %5536, %v5784_v15  }
  0x43   : > { %397 = vperm.xlu2 %5538, %v5790_v16   ;;  %392 = vperm.xlu1 %5537, %v5793_v17  }
  0x44   : > { %387 = vperm.xlu0 %5536, %v5796_v18  }
  0x4b   : > { %412 = vperm.xlu2 %5538, %v5802_v19   ;;  %407 = vperm.xlu1 %5537, %v5805_v20  }
  0x4c   : > { %402 = vperm.xlu0 %5536, %v5808_v21  }
  0x53   : > { %427 = vperm.xlu2 %5538, %v5814_v22   ;;  %422 = vperm.xlu1 %5537, %v5817_v23  }
  0x54   : > { %417 = vperm.xlu0 %5536, %v5820_v24  }
  0x5b   : > { %442 = vperm.xlu2 %5538, %v5826_v25   ;;  %437 = vperm.xlu1 %5537, %v5829_v26  }
  0x5c   : > { %432 = vperm.xlu0 %5536, %v5832_v27  }
  0x63   : > { %457 = vperm.xlu2 %5538, %v5838_v28   ;;  %452 = vperm.xlu1 %5537, %v5841_v29  }
  0x64   : > { %447 = vperm.xlu0 %5536, %v5844_v30  }
  0x6b   : > { %573 = vperm.xlu2 %5538, %v537_v31   ;;  %467 = vperm.xlu1 %5537, %v5851_v32  }
  0x6c   : > { %462 = vperm.xlu0 %5536, %v5854_v33  }
  0x73   : > { %588 = vperm.xlu2 %5538, %v5859_v34   ;;  %583 = vperm.xlu1 %5537, %v5862_v35  }
  0x74   : > { %578 = vperm.xlu0 %5536, %v538_v36  }
  0x75   : > { %v5867_v37 = vpop.permute.xlu2 %332 }
  0x76   : > { %8462 = vst [vmem:[#allocation7_spill] sm:$0xff] %v5867_v37  ;;  %v6006_v37 = vld [vmem:[%s5733_s17 + $0x169] sm:$0xff] }
  0x77   : > { %8487 = vst [vmem:[#allocation32_spill] sm:$0xff] %v6006_v37 }
  0x7b   : > { %603 = vperm.xlu2 %5538, %v5870_v38   ;;  %598 = vperm.xlu1 %5537, %v5873_v39  }
  0x7c   : > { %593 = vperm.xlu0 %5536, %v5876_v40  }
  0x7d   : > { %v5881_v41 = vpop.permute.xlu2 %337 }
  0x7e   : > { %8463 = vst [vmem:[#allocation8_spill] sm:$0xff] %v5881_v41 }
  0x83   : > { %618 = vperm.xlu2 %5538, %v5884_v42   ;;  %613 = vperm.xlu1 %5537, %v5887_v43  }
  0x84   : > { %608 = vperm.xlu0 %5536, %v5890_v44  }
  0x85   : > { %v5895_v45 = vpop.permute.xlu2 %352 }
  0x86   : > { %8464 = vst [vmem:[#allocation9_spill] sm:$0xff] %v5895_v45  ;;  %v5994_v45 = vld [vmem:[%s5733_s17 + $0x129] sm:$0xff] }
  0x87   : > { %8483 = vst [vmem:[#allocation28_spill] sm:$0xff] %v5994_v45 }
  0x8b   : > { %633 = vperm.xlu2 %5538, %v5898_v46   ;;  %628 = vperm.xlu1 %5537, %v5901_v47  }
  0x8c   : > { %623 = vperm.xlu0 %5536, %v5904_v48  }
  0x8d   : > { %v5909_v49 = vpop.permute.xlu2 %367  ;;  %v5911_v50 = vpop.permute.xlu1 %322 }
  0x8e   : > { %8465 = vst [vmem:[#allocation10_spill] sm:$0xff] %v5909_v49  ;;  %v5913_v51 = vpop.permute.xlu0 %312  ;;  %v5991_v49 = vld [vmem:[%s5733_s17 + $0x139] sm:$0xff] }
  0x8f   : > { %8466 = vst [vmem:[#allocation11_spill] sm:$0xff] %v5911_v50  ;;  %v5988_v50 = vld [vmem:[%s5733_s17 + $0x141] sm:$0xff] }
  0x90   : > { %8467 = vst [vmem:[#allocation12_spill] sm:$0xff] %v5913_v51 }
  0x91   : > { %8481 = vst [vmem:[#allocation26_spill] sm:$0xff] %v5988_v50 }
  0x92   : > { %8482 = vst [vmem:[#allocation27_spill] sm:$0xff] %v5991_v49 }
  0x93   : > { %648 = vperm.xlu2 %5538, %v5916_v52   ;;  %643 = vperm.xlu1 %5537, %v5919_v53  }
  0x94   : > { %638 = vperm.xlu0 %5536, %v5922_v54  }
  0x95   : > { %v5927_v55 = vpop.permute.xlu2 %382  ;;  %v5929_v56 = vpop.permute.xlu1 %327 }
  0x96   : > { %8468 = vst [vmem:[#allocation13_spill] sm:$0xff] %v5927_v55  ;;  %v5931_v57 = vpop.permute.xlu0 %317 }
  0x97   : > { %8469 = vst [vmem:[#allocation14_spill] sm:$0xff] %v5929_v56  ;;  %v5976_v56 = vld [vmem:[%s5733_s17 + $0x109] sm:$0xff] }
  0x98   : > { %8470 = vst [vmem:[#allocation15_spill] sm:$0xff] %v5931_v57  ;;  %v5973_v57 = vld [vmem:[%s5733_s17 + $0x111] sm:$0xff] }
  0x9b   : > { %663 = vperm.xlu2 %5538, %v5934_v58   ;;  %658 = vperm.xlu1 %5537, %v5937_v59  }
  0x9c   : > { %653 = vperm.xlu0 %5536, %v5940_v60  }
  0x9d   : > { %v5945_v61 = vpop.permute.xlu2 %397  ;;  %v5947_v62 = vpop.permute.xlu1 %347 }
  0x9e   : > { %8471 = vst [vmem:[#allocation16_spill] sm:$0xff] %v5945_v61  ;;  %v5949_v63 = vpop.permute.xlu0 %342  ;;  %v6012_v61 = vld [vmem:[%s5733_s17 + $0x151] sm:$0xff] }
  0x9f   : > { %8472 = vst [vmem:[#allocation17_spill] sm:$0xff] %v5947_v62  ;;  %v5970_v62 = vld [vmem:[%s5733_s17 + $0x121] sm:$0xff] }
  0xa0   : > { %8473 = vst [vmem:[#allocation18_spill] sm:$0xff] %v5949_v63 }
  0xa1   : > { %8477 = vst [vmem:[#allocation22_spill] sm:$0xff] %v5970_v62 }
  0xa2   : > { %8489 = vst [vmem:[#allocation34_spill] sm:$0xff] %v6012_v61 }
  0xa3   : > { %678 = vperm.xlu2 %5538, %v5952_v0   ;;  %673 = vperm.xlu1 %5537, %v5955_v3  }
  0xa4   : > { %668 = vperm.xlu0 %5536, %v5958_v6  }
  0xa5   : > { %v5963_v31 = vpop.permute.xlu2 %412  ;;  %v5965_v36 = vpop.permute.xlu1 %362 }
  0xa6   : > { %8474 = vst [vmem:[#allocation19_spill] sm:$0xff] %v5963_v31  ;;  %v5967_v63 = vpop.permute.xlu0 %357  ;;  %v6009_v31 = vld [vmem:[%s5733_s17 + $0x159] sm:$0xff] }
  0xa7   : > { %8475 = vst [vmem:[#allocation20_spill] sm:$0xff] %v5965_v36 }
  0xa8   : > { %8476 = vst [vmem:[#allocation21_spill] sm:$0xff] %v5967_v63 }
  0xa9   : > { %8488 = vst [vmem:[#allocation33_spill] sm:$0xff] %v6009_v31 }
  0xab   : > { %693 = vperm.xlu2 %5538, %v5970_v62   ;;  %688 = vperm.xlu1 %5537, %v5973_v57  }
  0xac   : > { %683 = vperm.xlu0 %5536, %v5976_v56  }
  0xad   : > { %v5981_v51 = vpop.permute.xlu2 %427  ;;  %v5983_v36 = vpop.permute.xlu1 %377 }
  0xae   : > { %8478 = vst [vmem:[#allocation23_spill] sm:$0xff] %v5981_v51  ;;  %v5985_v63 = vpop.permute.xlu0 %372 }
  0xaf   : > { %8479 = vst [vmem:[#allocation24_spill] sm:$0xff] %v5983_v36  ;;  %v798_v36 = vld [vmem:[%s5733_s17 + $0x2] sm:$0xff] }
  0xb0   : > { %8480 = vst [vmem:[#allocation25_spill] sm:$0xff] %v5985_v63 }
  0xb3   : > { %708 = vperm.xlu2 %5538, %v5988_v50   ;;  %703 = vperm.xlu1 %5537, %v5991_v49   ;;  %v6026_v50 = vld [vmem:[%s5733_s17 + $0x171] sm:$0xff]  ;;  %v827_v49 = vld [vmem:[%s5733_s17 + $0x15a] sm:$0xff] }
  0xb4   : > { %698 = vperm.xlu0 %5536, %v5994_v45   ;;  %8493 = vst [vmem:[#allocation38_spill] sm:$0xff] %v6026_v50  ;;  %v829_v45 = vld [vmem:[%s5733_s17 + $0x172] sm:$0xff] }
  0xb5   : > { %v5999_v51 = vpop.permute.xlu2 %442  ;;  %v6001_v41 = vpop.permute.xlu1 %392 }
  0xb6   : > { %8484 = vst [vmem:[#allocation29_spill] sm:$0xff] %v5999_v51  ;;  %v6003_v63 = vpop.permute.xlu0 %387 }
  0xb7   : > { %8485 = vst [vmem:[#allocation30_spill] sm:$0xff] %v6001_v41  ;;  %v799_v41 = vld [vmem:[%s5733_s17 + $0xa] sm:$0xff] }
  0xb8   : > { %8486 = vst [vmem:[#allocation31_spill] sm:$0xff] %v6003_v63 }
  0xbb   : > { %723 = vperm.xlu2 %5538, %v6006_v37   ;;  %718 = vperm.xlu1 %5537, %v6009_v31   ;;  %v6042_v31 = vld [vmem:[%s5733_s17 + $0x1a] sm:$0xff] }
  0xbc   : > { %713 = vperm.xlu0 %5536, %v6012_v61   ;;  %8499 = vst [vmem:[#allocation44_spill] sm:$0xff] %v6042_v31 }
  0xbd   : > { %v6017_v51 = vpop.permute.xlu2 %457  ;;  %v6019_v55 = vpop.permute.xlu1 %407 }
  0xbe   : > { %8490 = vst [vmem:[#allocation35_spill] sm:$0xff] %v6017_v51  ;;  %v6021_v63 = vpop.permute.xlu0 %402 }
  0xbf   : > { %8491 = vst [vmem:[#allocation36_spill] sm:$0xff] %v6019_v55  ;;  %v6036_v55 = vld [vmem:[%s5733_s17 + $0x32] sm:$0xff] }
  0xc0   : > { %8492 = vst [vmem:[#allocation37_spill] sm:$0xff] %v6021_v63  ;;  %v6039_v63 = vld [vmem:[%s5733_s17 + $0x22] sm:$0xff] }
  0xc1   : > { %8497 = vst [vmem:[#allocation42_spill] sm:$0xff] %v6036_v55 }
  0xc2   : > { %8498 = vst [vmem:[#allocation43_spill] sm:$0xff] %v6039_v63 }
  0xc3   : > { %839 = vperm.xlu2 %5538, %v799_v41   ;;  %834 = vperm.xlu1 %5537, %v798_v36  }
  0xc4   : > { %728 = vperm.xlu0 %5536, %v6026_v50   ;;  %v6060_v50 = vld [vmem:[%s5733_s17 + $0x3a] sm:$0xff] }
  0xc5   : > { %v6029_v37 = vpop.permute.xlu2 %573  ;;  %v6031_v61 = vpop.permute.xlu1 %422  ;;  %8505 = vst [vmem:[#allocation50_spill] sm:$0xff] %v6060_v50 }
  0xc6   : > { %8494 = vst [vmem:[#allocation39_spill] sm:$0xff] %v6029_v37  ;;  %v6033_v51 = vpop.permute.xlu0 %417 }
  0xc7   : > { %8495 = vst [vmem:[#allocation40_spill] sm:$0xff] %v6031_v61  ;;  %v6057_v61 = vld [vmem:[%s5733_s17 + $0x4a] sm:$0xff] }
  0xc8   : > { %8496 = vst [vmem:[#allocation41_spill] sm:$0xff] %v6033_v51  ;;  %v6054_v51 = vld [vmem:[%s5733_s17 + $0x52] sm:$0xff] }
  0xc9   : > { %8503 = vst [vmem:[#allocation48_spill] sm:$0xff] %v6054_v51 }
  0xca   : > { %8504 = vst [vmem:[#allocation49_spill] sm:$0xff] %v6057_v61 }
  0xcb   : > { %854 = vperm.xlu2 %5538, %v6036_v55   ;;  %849 = vperm.xlu1 %5537, %v6039_v63   ;;  %v6072_v55 = vld [vmem:[%s5733_s17 + $0x7a] sm:$0xff]  ;;  %v6078_v63 = vld [vmem:[%s5733_s17 + $0x62] sm:$0xff] }
  0xcc   : > { %844 = vperm.xlu0 %5536, %v6042_v31   ;;  %8509 = vst [vmem:[#allocation54_spill] sm:$0xff] %v6072_v55  ;;  %v6075_v31 = vld [vmem:[%s5733_s17 + $0x6a] sm:$0xff] }
  0xcd   : > { %v6047_v41 = vpop.permute.xlu2 %588  ;;  %v6049_v36 = vpop.permute.xlu1 %437  ;;  %8510 = vst [vmem:[#allocation55_spill] sm:$0xff] %v6075_v31 }
  0xce   : > { %8500 = vst [vmem:[#allocation45_spill] sm:$0xff] %v6047_v41  ;;  %v6051_v37 = vpop.permute.xlu0 %432 }
  0xcf   : > { %8501 = vst [vmem:[#allocation46_spill] sm:$0xff] %v6049_v36 }
  0xd0   : > { %8502 = vst [vmem:[#allocation47_spill] sm:$0xff] %v6051_v37 }
  0xd1   : > { %8511 = vst [vmem:[#allocation56_spill] sm:$0xff] %v6078_v63 }
  0xd3   : > { %869 = vperm.xlu2 %5538, %v6054_v51   ;;  %864 = vperm.xlu1 %5537, %v6057_v61   ;;  %v6090_v51 = vld [vmem:[%s5733_s17 + $0x9a] sm:$0xff]  ;;  %v6096_v61 = vld [vmem:[%s5733_s17 + $0x82] sm:$0xff] }
  0xd4   : > { %859 = vperm.xlu0 %5536, %v6060_v50   ;;  %8515 = vst [vmem:[#allocation60_spill] sm:$0xff] %v6090_v51  ;;  %v6093_v50 = vld [vmem:[%s5733_s17 + $0x92] sm:$0xff] }
  0xd5   : > { %v6065_v41 = vpop.permute.xlu2 %603  ;;  %v6067_v36 = vpop.permute.xlu1 %452  ;;  %8516 = vst [vmem:[#allocation61_spill] sm:$0xff] %v6093_v50 }
  0xd6   : > { %8506 = vst [vmem:[#allocation51_spill] sm:$0xff] %v6065_v41  ;;  %v6069_v37 = vpop.permute.xlu0 %447 }
  0xd7   : > { %8507 = vst [vmem:[#allocation52_spill] sm:$0xff] %v6067_v36 }
  0xd8   : > { %8508 = vst [vmem:[#allocation53_spill] sm:$0xff] %v6069_v37 }
  0xd9   : > { %8517 = vst [vmem:[#allocation62_spill] sm:$0xff] %v6096_v61 }
  0xdb   : > { %884 = vperm.xlu2 %5538, %v6072_v55   ;;  %879 = vperm.xlu1 %5537, %v6075_v31   ;;  %v6108_v55 = vld [vmem:[%s5733_s17 + $0xc2] sm:$0xff]  ;;  %v6114_v31 = vld [vmem:[%s5733_s17 + $0xaa] sm:$0xff] }
  0xdc   : > { %874 = vperm.xlu0 %5536, %v6078_v63   ;;  %8521 = vst [vmem:[#allocation66_spill] sm:$0xff] %v6108_v55  ;;  %v6111_v63 = vld [vmem:[%s5733_s17 + $0xb2] sm:$0xff] }
  0xdd   : > { %v6083_v41 = vpop.permute.xlu2 %618  ;;  %v6085_v36 = vpop.permute.xlu1 %467  ;;  %8522 = vst [vmem:[#allocation67_spill] sm:$0xff] %v6111_v63 }
  0xde   : > { %8512 = vst [vmem:[#allocation57_spill] sm:$0xff] %v6083_v41  ;;  %v6087_v37 = vpop.permute.xlu0 %462 }
  0xdf   : > { %8513 = vst [vmem:[#allocation58_spill] sm:$0xff] %v6085_v36 }
  0xe0   : > { %8514 = vst [vmem:[#allocation59_spill] sm:$0xff] %v6087_v37 }
  0xe1   : > { %8523 = vst [vmem:[#allocation68_spill] sm:$0xff] %v6114_v31 }
  0xe3   : > { %899 = vperm.xlu2 %5538, %v6090_v51   ;;  %894 = vperm.xlu1 %5537, %v6093_v50   ;;  %v6126_v51 = vld [vmem:[%s5733_s17 + $0xe2] sm:$0xff]  ;;  %v6132_v50 = vld [vmem:[%s5733_s17 + $0xca] sm:$0xff] }
  0xe4   : > { %889 = vperm.xlu0 %5536, %v6096_v61   ;;  %8527 = vst [vmem:[#allocation72_spill] sm:$0xff] %v6126_v51  ;;  %v6129_v61 = vld [vmem:[%s5733_s17 + $0xda] sm:$0xff] }
  0xe5   : > { %v6101_v41 = vpop.permute.xlu2 %633  ;;  %v6103_v36 = vpop.permute.xlu1 %583  ;;  %8528 = vst [vmem:[#allocation73_spill] sm:$0xff] %v6129_v61 }
  0xe6   : > { %8518 = vst [vmem:[#allocation63_spill] sm:$0xff] %v6101_v41  ;;  %v6105_v37 = vpop.permute.xlu0 %578 }
  0xe7   : > { %8519 = vst [vmem:[#allocation64_spill] sm:$0xff] %v6103_v36 }
  0xe8   : > { %8520 = vst [vmem:[#allocation65_spill] sm:$0xff] %v6105_v37 }
  0xe9   : > { %8529 = vst [vmem:[#allocation74_spill] sm:$0xff] %v6132_v50 }
  0xeb   : > { %914 = vperm.xlu2 %5538, %v6108_v55   ;;  %909 = vperm.xlu1 %5537, %v6111_v63   ;;  %v6144_v55 = vld [vmem:[%s5733_s17 + $0x10a] sm:$0xff]  ;;  %v6150_v63 = vld [vmem:[%s5733_s17 + $0xf2] sm:$0xff] }
  0xec   : > { %904 = vperm.xlu0 %5536, %v6114_v31   ;;  %8533 = vst [vmem:[#allocation78_spill] sm:$0xff] %v6144_v55  ;;  %v6147_v31 = vld [vmem:[%s5733_s17 + $0xfa] sm:$0xff] }
  0xed   : > { %v6119_v41 = vpop.permute.xlu2 %648  ;;  %v6121_v36 = vpop.permute.xlu1 %598  ;;  %8534 = vst [vmem:[#allocation79_spill] sm:$0xff] %v6147_v31 }
  0xee   : > { %8524 = vst [vmem:[#allocation69_spill] sm:$0xff] %v6119_v41  ;;  %v6123_v37 = vpop.permute.xlu0 %593 }
  0xef   : > { %8525 = vst [vmem:[#allocation70_spill] sm:$0xff] %v6121_v36 }
  0xf0   : > { %8526 = vst [vmem:[#allocation71_spill] sm:$0xff] %v6123_v37 }
  0xf1   : > { %8535 = vst [vmem:[#allocation80_spill] sm:$0xff] %v6150_v63 }
  0xf3   : > { %929 = vperm.xlu2 %5538, %v6126_v51   ;;  %924 = vperm.xlu1 %5537, %v6129_v61   ;;  %v823_v51 = vld [vmem:[%s5733_s17 + $0x12a] sm:$0xff]  ;;  %v6166_v61 = vld [vmem:[%s5733_s17 + $0x112] sm:$0xff] }
  0xf4   : > { %919 = vperm.xlu0 %5536, %v6132_v50   ;;  %v6163_v50 = vld [vmem:[%s5733_s17 + $0x122] sm:$0xff]  ;;  %8540 = vst [vmem:[#allocation85_spill] sm:$0xff] %v6166_v61 }
  0xf5   : > { %v6137_v41 = vpop.permute.xlu2 %663  ;;  %v6139_v36 = vpop.permute.xlu1 %613  ;;  %8539 = vst [vmem:[#allocation84_spill] sm:$0xff] %v6163_v50 }
  0xf6   : > { %8530 = vst [vmem:[#allocation75_spill] sm:$0xff] %v6137_v41  ;;  %v6141_v37 = vpop.permute.xlu0 %608 }
  0xf7   : > { %8531 = vst [vmem:[#allocation76_spill] sm:$0xff] %v6139_v36 }
  0xf8   : > { %8532 = vst [vmem:[#allocation77_spill] sm:$0xff] %v6141_v37 }
  0xfb   : > { %944 = vperm.xlu2 %5538, %v6144_v55   ;;  %939 = vperm.xlu1 %5537, %v6147_v31   ;;  %v824_v31 = vld [vmem:[%s5733_s17 + $0x13a] sm:$0xff] }
  0xfc   : > { %934 = vperm.xlu0 %5536, %v6150_v63   ;;  %v825_v63 = vld [vmem:[%s5733_s17 + $0x142] sm:$0xff] }
  0xfd   : > { %v6155_v41 = vpop.permute.xlu2 %678  ;;  %v6157_v36 = vpop.permute.xlu1 %628 }
  0xfe   : > { %8536 = vst [vmem:[#allocation81_spill] sm:$0xff] %v6155_v41  ;;  %v6159_v37 = vpop.permute.xlu0 %623 }
  0xff   : > { %8537 = vst [vmem:[#allocation82_spill] sm:$0xff] %v6157_v36 }
 0x100   : > { %8538 = vst [vmem:[#allocation83_spill] sm:$0xff] %v6159_v37  ;;  %v826_v37 = vld [vmem:[%s5733_s17 + $0x152] sm:$0xff] }
 0x103   : > { %959 = vperm.xlu2 %5538, %v823_v51   ;;  %954 = vperm.xlu1 %5537, %v6163_v50  }
 0x104   : > { %949 = vperm.xlu0 %5536, %v6166_v61   ;;  %v828_v61 = vld [vmem:[%s5733_s17 + $0x16a] sm:$0xff] }
 0x105   : > { %v6170_v55 = vpop.permute.xlu2 %693  ;;  %v6172_v41 = vpop.permute.xlu1 %643 }
 0x106   : > { %8541 = vst [vmem:[#allocation86_spill] sm:$0xff] %v6170_v55  ;;  %v6174_v36 = vpop.permute.xlu0 %638 }
 0x107   : > { %8542 = vst [vmem:[#allocation87_spill] sm:$0xff] %v6172_v41 }
 0x108   : > { %8543 = vst [vmem:[#allocation88_spill] sm:$0xff] %v6174_v36 }
 0x10b   : > { %974 = vperm.xlu2 %5538, %v826_v37   ;;  %969 = vperm.xlu1 %5537, %v825_v63  }
 0x10c   : > { %964 = vperm.xlu0 %5536, %v824_v31  }
 0x10d   : > { %v6179_v62 = vpop.permute.xlu2 %708  ;;  %v6181_v51 = vpop.permute.xlu1 %658 }
 0x10e   : > { %8544 = vst [vmem:[#allocation89_spill] sm:$0xff] %v6179_v62  ;;  %v6183_v50 = vpop.permute.xlu0 %653 }
 0x113   : > { %989 = vperm.xlu2 %5538, %v829_v45   ;;  %984 = vperm.xlu1 %5537, %v828_v61  }
 0x114   : > { %979 = vperm.xlu0 %5536, %v827_v49  }
 0x115   : > { %v6188_v55 = vpop.permute.xlu2 %723  ;;  %v6190_v41 = vpop.permute.xlu1 %673 }
 0x116   : > { %8545 = vst [vmem:[#allocation90_spill] sm:$0xff] %v6188_v55  ;;  %v6192_v36 = vpop.permute.xlu0 %668 }
 0x11b   : > { %1106 = vperm.xlu2 %5538, %v5736_v1   ;;  %1101 = vperm.xlu1 %5537, %v5748_v5  }
 0x11c   : > { %1096 = vperm.xlu0 %5536, %v5739_v2  }
 0x11d   : > { %v6197_v37 = vpop.permute.xlu2 %839  ;;  %v6199_v63 = vpop.permute.xlu1 %688 }
 0x11e   : > { %8546 = vst [vmem:[#allocation91_spill] sm:$0xff] %v6199_v63  ;;  %v6201_v31 = vpop.permute.xlu0 %683 }
 0x123   : > { %1121 = vperm.xlu2 %5538, %v5757_v8   ;;  %1116 = vperm.xlu1 %5537, %v5760_v9  }
 0x124   : > { %1111 = vperm.xlu0 %5536, %v5745_v4  }
 0x125   : > { %v6206_v45 = vpop.permute.xlu2 %854  ;;  %v6208_v49 = vpop.permute.xlu1 %703 }
 0x126   : > { %v6210_v1 = vpop.permute.xlu0 %698 }
 0x127   : > { %8547 = vst [vmem:[#allocation92_spill] sm:$0xff] %v6210_v1 }
 0x12b   : > { %1136 = vperm.xlu2 %5538, %v5769_v11   ;;  %1131 = vperm.xlu1 %5537, %v5772_v12  }
 0x12c   : > { %1126 = vperm.xlu0 %5536, %v5754_v7  }
 0x12d   : > { %v6215_v2 = vpop.permute.xlu2 %869  ;;  %v6217_v5 = vpop.permute.xlu1 %718 }
 0x12e   : > { %8548 = vst [vmem:[#allocation93_spill] sm:$0xff] %v6217_v5  ;;  %v6219_v8 = vpop.permute.xlu0 %713 }
 0x12f   : > { %8549 = vst [vmem:[#allocation94_spill] sm:$0xff] %v6219_v8  ;;  %v8589_v8 = vld [vmem:[#allocation44_spill] sm:$0xff] }
 0x133   : > { %1151 = vperm.xlu2 %5538, %v5781_v14   ;;  %1146 = vperm.xlu1 %5537, %v5784_v15  }
 0x134   : > { %1141 = vperm.xlu0 %5536, %v5766_v10  }
 0x135   : > { %v6224_v4 = vpop.permute.xlu2 %884  ;;  %v6226_v9 = vpop.permute.xlu1 %834 }
 0x136   : > { %v6228_v11 = vpop.permute.xlu0 %728 }
 0x137   : > { %8550 = vst [vmem:[#allocation95_spill] sm:$0xff] %v6228_v11 }
 0x13b   : > { %1166 = vperm.xlu2 %5538, %v5793_v17   ;;  %1161 = vperm.xlu1 %5537, %v5796_v18  }
 0x13c   : > { %1156 = vperm.xlu0 %5536, %v5778_v13  }
 0x13d   : > { %v6233_v7 = vpop.permute.xlu2 %899  ;;  %v6235_v12 = vpop.permute.xlu1 %849 }
 0x13e   : > { %v6237_v14 = vpop.permute.xlu0 %844 }
 0x143   : > { %1181 = vperm.xlu2 %5538, %v5805_v20   ;;  %1176 = vperm.xlu1 %5537, %v5808_v21  }
 0x144   : > { %1171 = vperm.xlu0 %5536, %v5790_v16  }
 0x145   : > { %v6242_v10 = vpop.permute.xlu2 %914  ;;  %v6244_v15 = vpop.permute.xlu1 %864 }
 0x146   : > { %8551 = vst [vmem:[#allocation96_spill] sm:$0xff] %v6244_v15  ;;  %v6246_v17 = vpop.permute.xlu0 %859 }
 0x147   : > { %8552 = vst [vmem:[#allocation97_spill] sm:$0xff] %v6246_v17  ;;  %v5270_v17 = vld [vmem:[%s5733_s17 + $0x82] sm:$0xff] }
 0x14b   : > { %1196 = vperm.xlu2 %5538, %v5817_v23   ;;  %1191 = vperm.xlu1 %5537, %v5820_v24  }
 0x14c   : > { %1186 = vperm.xlu0 %5536, %v5802_v19  }
 0x14d   : > { %v6251_v13 = vpop.permute.xlu2 %929  ;;  %v6253_v18 = vpop.permute.xlu1 %879 }
 0x14e   : > { %8553 = vst [vmem:[#allocation98_spill] sm:$0xff] %v6253_v18  ;;  %v6255_v20 = vpop.permute.xlu0 %874 }
 0x14f   : > { %8554 = vst [vmem:[#allocation99_spill] sm:$0xff] %v6255_v20  ;;  %v5237_v20 = vld [vmem:[%s5733_s17 + $0x81] sm:$0xff] }
 0x153   : > { %1211 = vperm.xlu2 %5538, %v5829_v26   ;;  %1206 = vperm.xlu1 %5537, %v5832_v27  }
 0x154   : > { %1201 = vperm.xlu0 %5536, %v5814_v22  }
 0x155   : > { %v6260_v16 = vpop.permute.xlu2 %944  ;;  %v6262_v21 = vpop.permute.xlu1 %894 }
 0x156   : > { %8555 = vst [vmem:[#allocation100_spill] sm:$0xff] %v6262_v21  ;;  %v6264_v23 = vpop.permute.xlu0 %889 }
 0x157   : > { %8556 = vst [vmem:[#allocation101_spill] sm:$0xff] %v6264_v23  ;;  %v5267_v23 = vld [vmem:[%s5733_s17 + $0x62] sm:$0xff] }
 0x15b   : > { %1226 = vperm.xlu2 %5538, %v5841_v29   ;;  %1221 = vperm.xlu1 %5537, %v5844_v30   ;;  %v5129_v30 = vld [vmem:[%s5733_s17 + $0x188] sm:$0xff] }
 0x15c   : > { %1216 = vperm.xlu0 %5536, %v5826_v25   ;;  %v5128_v25 = vld [vmem:[%s5733_s17 + $0x180] sm:$0xff] }
 0x15d   : > { %v6269_v19 = vpop.permute.xlu2 %959  ;;  %v6271_v24 = vpop.permute.xlu1 %909 }
 0x15e   : > { %8557 = vst [vmem:[#allocation102_spill] sm:$0xff] %v6269_v19  ;;  %v6273_v26 = vpop.permute.xlu0 %904 }
 0x163   : > { %1241 = vperm.xlu2 %5538, %v5851_v32   ;;  %1236 = vperm.xlu1 %5537, %v5854_v33  }
 0x164   : > { %1231 = vperm.xlu0 %5536, %v5838_v28  }
 0x165   : > { %v6278_v22 = vpop.permute.xlu2 %974  ;;  %v6280_v27 = vpop.permute.xlu1 %924 }
 0x166   : > { %8558 = vst [vmem:[#allocation103_spill] sm:$0xff] %v6278_v22  ;;  %v6282_v29 = vpop.permute.xlu0 %919 }
 0x16b   : > { %1357 = vperm.xlu2 %5538, %v5862_v35   ;;  %1251 = vperm.xlu1 %5537, %v5129_v30  }
 0x16c   : > { %1246 = vperm.xlu0 %5536, %v5128_v25   ;;  %v8578_v25 = vld [vmem:[#allocation22_spill] sm:$0xff] }
 0x16d   : > { %v6287_v61 = vpop.permute.xlu2 %989  ;;  %v6289_v19 = vpop.permute.xlu1 %939 }
 0x16e   : > { %8559 = vst [vmem:[#allocation104_spill] sm:$0xff] %v6287_v61  ;;  %v6291_v32 = vpop.permute.xlu0 %934 }
 0x173   : > { %1372 = vperm.xlu2 %5538, %v5873_v39   ;;  %1367 = vperm.xlu1 %5537, %v5876_v40  }
 0x174   : > { %1362 = vperm.xlu0 %5536, %v5859_v34  }
 0x175   : > { %v6296_v28 = vpop.permute.xlu2 %1106  ;;  %v6298_v33 = vpop.permute.xlu1 %954 }
 0x176   : > { %8560 = vst [vmem:[#allocation105_spill] sm:$0xff] %v6298_v33  ;;  %v6300_v22 = vpop.permute.xlu0 %949  ;;  %v8599_v33 = vld [vmem:[#allocation48_spill] sm:$0xff] }
 0x177   : > { %8561 = vst [vmem:[#allocation106_spill] sm:$0xff] %v6300_v22  ;;  %v8586_v22 = vld [vmem:[#allocation32_spill] sm:$0xff] }
 0x17b   : > { %1387 = vperm.xlu2 %5538, %v5887_v43   ;;  %1382 = vperm.xlu1 %5537, %v5890_v44  }
 0x17c   : > { %1377 = vperm.xlu0 %5536, %v5870_v38  }
 0x17d   : > { %v6305_v35 = vpop.permute.xlu2 %1121  ;;  %v6307_v30 = vpop.permute.xlu1 %969 }
 0x17e   : > { %8562 = vst [vmem:[#allocation107_spill] sm:$0xff] %v6305_v35  ;;  %v6309_v39 = vpop.permute.xlu0 %964 }
 0x17f   : > { %8563 = vst [vmem:[#allocation108_spill] sm:$0xff] %v6307_v30 }
 0x180   : > { %8564 = vst [vmem:[#allocation109_spill] sm:$0xff] %v6309_v39 }
 0x183   : > { %1402 = vperm.xlu2 %5538, %v5901_v47   ;;  %1397 = vperm.xlu1 %5537, %v5904_v48  }
 0x184   : > { %1392 = vperm.xlu0 %5536, %v5884_v42  }
 0x185   : > { %v6314_v34 = vpop.permute.xlu2 %1136  ;;  %v6316_v40 = vpop.permute.xlu1 %984 }
 0x186   : > { %8565 = vst [vmem:[#allocation110_spill] sm:$0xff] %v6314_v34  ;;  %v6318_v43 = vpop.permute.xlu0 %979  ;;  %v5202_v34 = vld [vmem:[%s5733_s17 + $0x68] sm:$0xff] }
 0x187   : > { %8566 = vst [vmem:[#allocation111_spill] sm:$0xff] %v6316_v40  ;;  %v8583_v40 = vld [vmem:[#allocation26_spill] sm:$0xff] }
 0x188   : > { %8567 = vst [vmem:[#allocation112_spill] sm:$0xff] %v6318_v43  ;;  %v8582_v43 = vld [vmem:[#allocation34_spill] sm:$0xff] }
 0x18b   : > { %1417 = vperm.xlu2 %5538, %v5919_v53   ;;  %1412 = vperm.xlu1 %5537, %v5922_v54  }
 0x18c   : > { %1407 = vperm.xlu0 %5536, %v5898_v46  }
 0x18d   : > { %v6323_v38 = vpop.permute.xlu2 %1151  ;;  %v6325_v44 = vpop.permute.xlu1 %1101 }
 0x18e   : > { %8568 = vst [vmem:[#allocation113_spill] sm:$0xff] %v6323_v38  ;;  %v6327_v47 = vpop.permute.xlu0 %1096  ;;  %v5264_v38 = vld [vmem:[%s5733_s17 + $0x3a] sm:$0xff] }
 0x18f   : > { %8569 = vst [vmem:[#allocation114_spill] sm:$0xff] %v6325_v44  ;;  %v5266_v44 = vld [vmem:[%s5733_s17 + $0x52] sm:$0xff] }
 0x193   : > { %1432 = vperm.xlu2 %5538, %v5937_v59   ;;  %1427 = vperm.xlu1 %5537, %v5940_v60  }
 0x194   : > { %1422 = vperm.xlu0 %5536, %v5916_v52  }
 0x195   : > { %v6332_v42 = vpop.permute.xlu2 %1166  ;;  %v6334_v48 = vpop.permute.xlu1 %1116 }
 0x196   : > { %8570 = vst [vmem:[#allocation115_spill] sm:$0xff] %v6334_v48  ;;  %v6336_v53 = vpop.permute.xlu0 %1111  ;;  %v5233_v48 = vld [vmem:[%s5733_s17 + $0x51] sm:$0xff] }
 0x197   : > { %8571 = vst [vmem:[#allocation116_spill] sm:$0xff] %v6336_v53  ;;  %v5201_v53 = vld [vmem:[%s5733_s17 + $0x60] sm:$0xff] }
 0x19b   : > { %1447 = vperm.xlu2 %5538, %v5955_v3   ;;  %1442 = vperm.xlu1 %5537, %v5958_v6   ;;  %v8577_v6 = vld [vmem:[#allocation28_spill] sm:$0xff] }
 0x19c   : > { %1437 = vperm.xlu0 %5536, %v5934_v58   ;;  %v8576_v58 = vld [vmem:[#allocation27_spill] sm:$0xff] }
 0x19d   : > { %v6341_v46 = vpop.permute.xlu2 %1181  ;;  %v6343_v54 = vpop.permute.xlu1 %1131 }
 0x19e   : > { %8572 = vst [vmem:[#allocation117_spill] sm:$0xff] %v6343_v54  ;;  %v6345_v59 = vpop.permute.xlu0 %1126  ;;  %v5263_v54 = vld [vmem:[%s5733_s17 + $0x32] sm:$0xff] }
 0x19f   : > { %8573 = vst [vmem:[#allocation118_spill] sm:$0xff] %v6345_v59  ;;  %v5198_v59 = vld [vmem:[%s5733_s17 + $0x38] sm:$0xff] }
 0x1a3   : > { %1462 = vperm.xlu2 %5538, %v5973_v57   ;;  %1457 = vperm.xlu1 %5537, %v5976_v56  }
 0x1a4   : > { %1452 = vperm.xlu0 %5536, %v5952_v0   ;;  %v8581_v0 = vld [vmem:[#allocation33_spill] sm:$0xff] }
 0x1a5   : > { %v6350_v52 = vpop.permute.xlu2 %1196  ;;  %v6352_v60 = vpop.permute.xlu1 %1146 }
 0x1a6   : > { %8574 = vst [vmem:[#allocation119_spill] sm:$0xff] %v6352_v60  ;;  %v6354_v3 = vpop.permute.xlu0 %1141  ;;  %v5199_v60 = vld [vmem:[%s5733_s17 + $0x48] sm:$0xff] }
 0x1a7   : > { %8575 = vst [vmem:[#allocation120_spill] sm:$0xff] %v6354_v3  ;;  %v8626_v3 = vld [vmem:[#allocation85_spill] sm:$0xff] }
 0x1ab   : > { %1477 = vperm.xlu2 %5538, %v8576_v58   ;;  %1472 = vperm.xlu1 %5537, %v8577_v6  }
 0x1ac   : > { %1467 = vperm.xlu0 %5536, %v8578_v25   ;;  %v5161_v25 = vld [vmem:[%s5733_s17 + $0x181] sm:$0xff] }
 0x1ad   : > { %v6359_v61 = vpop.permute.xlu2 %1211  ;;  %v6361_v57 = vpop.permute.xlu1 %1161 }
 0x1ae   : > { %8579 = vst [vmem:[#allocation27_spill] sm:$0xff] %v6359_v61  ;;  %v6363_v56 = vpop.permute.xlu0 %1156  ;;  %v8585_v61 = vld [vmem:[#allocation38_spill] sm:$0xff] }
 0x1af   : > { %8580 = vst [vmem:[#allocation28_spill] sm:$0xff] %v6363_v56 }
 0x1b3   : > { %1492 = vperm.xlu2 %5538, %v8581_v0   ;;  %1487 = vperm.xlu1 %5537, %v8582_v43   ;;  %v5162_v43 = vld [vmem:[%s5733_s17 + $0x189] sm:$0xff] }
 0x1b4   : > { %1482 = vperm.xlu0 %5536, %v8583_v40   ;;  %v8588_v40 = vld [vmem:[#allocation43_spill] sm:$0xff] }
 0x1b5   : > { %v6368_v30 = vpop.permute.xlu2 %1226  ;;  %v6370_v58 = vpop.permute.xlu1 %1176 }
 0x1b6   : > { %8584 = vst [vmem:[#allocation22_spill] sm:$0xff] %v6368_v30  ;;  %v6372_v6 = vpop.permute.xlu0 %1171 }
 0x1bb   : > { %1507 = vperm.xlu2 %5538, %v5161_v25   ;;  %1502 = vperm.xlu1 %5537, %v8585_v61   ;;  %v8591_v61 = vld [vmem:[#allocation49_spill] sm:$0xff] }
 0x1bc   : > { %1497 = vperm.xlu0 %5536, %v8586_v22   ;;  %v8592_v22 = vld [vmem:[#allocation50_spill] sm:$0xff] }
 0x1bd   : > { %v6377_v11 = vpop.permute.xlu2 %1241  ;;  %v6379_v5 = vpop.permute.xlu1 %1191 }
 0x1be   : > { %8587 = vst [vmem:[#allocation33_spill] sm:$0xff] %v6377_v11  ;;  %v6381_v0 = vpop.permute.xlu0 %1186  ;;  %v8593_v11 = vld [vmem:[#allocation42_spill] sm:$0xff] }
 0x1c3   : > { %1623 = vperm.xlu2 %5538, %v8588_v40   ;;  %1618 = vperm.xlu1 %5537, %v8589_v8   ;;  %v8597_v8 = vld [vmem:[#allocation55_spill] sm:$0xff] }
 0x1c4   : > { %1512 = vperm.xlu0 %5536, %v5162_v43   ;;  %v8598_v43 = vld [vmem:[#allocation56_spill] sm:$0xff] }
 0x1c5   : > { %v6386_v1 = vpop.permute.xlu2 %1357  ;;  %v6388_v63 = vpop.permute.xlu1 %1206 }
 0x1c6   : > { %8590 = vst [vmem:[#allocation34_spill] sm:$0xff] %v6386_v1  ;;  %v6390_v25 = vpop.permute.xlu0 %1201 }
 0x1cb   : > { %1638 = vperm.xlu2 %5538, %v8591_v61   ;;  %1633 = vperm.xlu1 %5537, %v8592_v22   ;;  %v8603_v22 = vld [vmem:[#allocation61_spill] sm:$0xff] }
 0x1cc   : > { %1628 = vperm.xlu0 %5536, %v8593_v11   ;;  %v8604_v11 = vld [vmem:[#allocation62_spill] sm:$0xff] }
 0x1cd   : > { %v6395_v55 = vpop.permute.xlu2 %1372  ;;  %v6397_v62 = vpop.permute.xlu1 %1221 }
 0x1ce   : > { %8594 = vst [vmem:[#allocation26_spill] sm:$0xff] %v6395_v55  ;;  %v6399_v40 = vpop.permute.xlu0 %1216  ;;  %v8605_v55 = vld [vmem:[#allocation54_spill] sm:$0xff] }
 0x1cf   : > { %8595 = vst [vmem:[#allocation38_spill] sm:$0xff] %v6397_v62 }
 0x1d0   : > { %8596 = vst [vmem:[#allocation32_spill] sm:$0xff] %v6399_v40 }
 0x1d3   : > { %1653 = vperm.xlu2 %5538, %v8597_v8   ;;  %1648 = vperm.xlu1 %5537, %v8598_v43   ;;  %v8609_v43 = vld [vmem:[#allocation67_spill] sm:$0xff] }
 0x1d4   : > { %1643 = vperm.xlu0 %5536, %v8599_v33   ;;  %v8610_v33 = vld [vmem:[#allocation68_spill] sm:$0xff] }
 0x1d5   : > { %v6404_v30 = vpop.permute.xlu2 %1387  ;;  %v6406_v56 = vpop.permute.xlu1 %1236 }
 0x1d6   : > { %8600 = vst [vmem:[#allocation43_spill] sm:$0xff] %v6404_v30  ;;  %v6408_v61 = vpop.permute.xlu0 %1231  ;;  %v8611_v30 = vld [vmem:[#allocation60_spill] sm:$0xff] }
 0x1d7   : > { %8601 = vst [vmem:[#allocation44_spill] sm:$0xff] %v6406_v56 }
 0x1d8   : > { %8602 = vst [vmem:[#allocation49_spill] sm:$0xff] %v6408_v61 }
 0x1db   : > { %1668 = vperm.xlu2 %5538, %v8603_v22   ;;  %1663 = vperm.xlu1 %5537, %v8604_v11   ;;  %v8615_v11 = vld [vmem:[#allocation73_spill] sm:$0xff] }
 0x1dc   : > { %1658 = vperm.xlu0 %5536, %v8605_v55   ;;  %v8616_v55 = vld [vmem:[#allocation74_spill] sm:$0xff] }
 0x1dd   : > { %v6413_v62 = vpop.permute.xlu2 %1402  ;;  %v6415_v40 = vpop.permute.xlu1 %1251 }
 0x1de   : > { %8606 = vst [vmem:[#allocation50_spill] sm:$0xff] %v6413_v62  ;;  %v6417_v8 = vpop.permute.xlu0 %1246  ;;  %v8617_v62 = vld [vmem:[#allocation66_spill] sm:$0xff] }
 0x1df   : > { %8607 = vst [vmem:[#allocation42_spill] sm:$0xff] %v6415_v40 }
 0x1e0   : > { %8608 = vst [vmem:[#allocation55_spill] sm:$0xff] %v6417_v8  ;;  %v8621_v8 = vld [vmem:[#allocation80_spill] sm:$0xff] }
 0x1e3   : > { %1683 = vperm.xlu2 %5538, %v8609_v43   ;;  %1678 = vperm.xlu1 %5537, %v8610_v33   ;;  %v8620_v33 = vld [vmem:[#allocation79_spill] sm:$0xff] }
 0x1e4   : > { %1673 = vperm.xlu0 %5536, %v8611_v30  }
 0x1e5   : > { %v6422_v56 = vpop.permute.xlu2 %1417  ;;  %v6424_v61 = vpop.permute.xlu1 %1367 }
 0x1e6   : > { %8612 = vst [vmem:[#allocation56_spill] sm:$0xff] %v6422_v56  ;;  %v6426_v22 = vpop.permute.xlu0 %1362  ;;  %v8622_v56 = vld [vmem:[#allocation72_spill] sm:$0xff] }
 0x1e7   : > { %8613 = vst [vmem:[#allocation48_spill] sm:$0xff] %v6424_v61 }
 0x1e8   : > { %8614 = vst [vmem:[#allocation61_spill] sm:$0xff] %v6426_v22  ;;  %v8625_v22 = vld [vmem:[#allocation84_spill] sm:$0xff] }
 0x1eb   : > { %1698 = vperm.xlu2 %5538, %v8615_v11   ;;  %1693 = vperm.xlu1 %5537, %v8616_v55  }
 0x1ec   : > { %1688 = vperm.xlu0 %5536, %v8617_v62  }
 0x1ed   : > { %v6431_v40 = vpop.permute.xlu2 %1432  ;;  %v6433_v43 = vpop.permute.xlu1 %1382 }
 0x1ee   : > { %8618 = vst [vmem:[#allocation62_spill] sm:$0xff] %v6433_v43  ;;  %v6435_v30 = vpop.permute.xlu0 %1377  ;;  %v8627_v43 = vld [vmem:[#allocation78_spill] sm:$0xff] }
 0x1ef   : > { %8619 = vst [vmem:[#allocation54_spill] sm:$0xff] %v6435_v30  ;;  %v5230_v30 = vld [vmem:[%s5733_s17 + $0x31] sm:$0xff] }
 0x1f3   : > { %1713 = vperm.xlu2 %5538, %v8620_v33   ;;  %1708 = vperm.xlu1 %5537, %v8621_v8  }
 0x1f4   : > { %1703 = vperm.xlu0 %5536, %v8622_v56  }
 0x1f5   : > { %v6440_v11 = vpop.permute.xlu2 %1447  ;;  %v6442_v55 = vpop.permute.xlu1 %1397 }
 0x1f6   : > { %8623 = vst [vmem:[#allocation67_spill] sm:$0xff] %v6442_v55  ;;  %v6444_v62 = vpop.permute.xlu0 %1392  ;;  %v5197_v55 = vld [vmem:[%s5733_s17 + $0x30] sm:$0xff] }
 0x1f7   : > { %8624 = vst [vmem:[#allocation68_spill] sm:$0xff] %v6444_v62  ;;  %v5200_v62 = vld [vmem:[%s5733_s17 + $0x50] sm:$0xff] }
 0x1fb   : > { %1728 = vperm.xlu2 %5538, %v8625_v22   ;;  %1723 = vperm.xlu1 %5537, %v8626_v3  }
 0x1fc   : > { %1718 = vperm.xlu0 %5536, %v8627_v43  }
 0x1fd   : > { %v6449_v33 = vpop.permute.xlu2 %1462  ;;  %v6451_v8 = vpop.permute.xlu1 %1412 }
 0x1fe   : > { %8628 = vst [vmem:[#allocation60_spill] sm:$0xff] %v6451_v8  ;;  %v6453_v56 = vpop.permute.xlu0 %1407  ;;  %v5232_v8 = vld [vmem:[%s5733_s17 + $0x49] sm:$0xff] }
 0x1ff   : > { %8629 = vst [vmem:[#allocation73_spill] sm:$0xff] %v6453_v56  ;;  %v5265_v56 = vld [vmem:[%s5733_s17 + $0x4a] sm:$0xff] }
 0x203   : > { %2141 = vperm.xlu2 %5538, %v5230_v30   ;;  %1890 = vperm.xlu1 %5537, %v5199_v60  }
 0x204   : > { %1880 = vperm.xlu0 %5536, %v5197_v55  }
 0x205   : > { %v6458_v22 = vpop.permute.xlu2 %1477  ;;  %v6460_v3 = vpop.permute.xlu1 %1427 }
 0x206   : > { %8630 = vst [vmem:[#allocation74_spill] sm:$0xff] %v6458_v22  ;;  %v6462_v43 = vpop.permute.xlu0 %1422  ;;  %v5231_v22 = vld [vmem:[%s5733_s17 + $0x39] sm:$0xff] }
 0x20b   : > { %1895 = vperm.xlu2 %5538, %v5200_v62   ;;  %1885 = vperm.xlu1 %5537, %v5198_v59  }
 0x20c   : > { %2151 = vperm.xlu0 %5536, %v5232_v8  }
 0x20d   : > { %v6467_v30 = vpop.permute.xlu2 %1492  ;;  %v6469_v60 = vpop.permute.xlu1 %1442 }
 0x20e   : > { %8631 = vst [vmem:[#allocation66_spill] sm:$0xff] %v6467_v30  ;;  %v6471_v55 = vpop.permute.xlu0 %1437  ;;  %v5203_v30 = vld [vmem:[%s5733_s17 + $0x78] sm:$0xff] }
 0x213   : > { %2146 = vperm.xlu2 %5538, %v5231_v22   ;;  %2412 = vperm.xlu1 %5537, %v5265_v56  }
 0x214   : > { %2402 = vperm.xlu0 %5536, %v5263_v54  }
 0x215   : > { %v6476_v62 = vpop.permute.xlu2 %1507  ;;  %v6478_v59 = vpop.permute.xlu1 %1457 }
 0x216   : > { %8632 = vst [vmem:[#allocation79_spill] sm:$0xff] %v6476_v62  ;;  %v6480_v8 = vpop.permute.xlu0 %1452  ;;  %v5234_v62 = vld [vmem:[%s5733_s17 + $0x61] sm:$0xff] }
 0x21b   : > { %1910 = vperm.xlu2 %5538, %v5203_v30   ;;  %1900 = vperm.xlu1 %5537, %v5201_v53  }
 0x21c   : > { %2156 = vperm.xlu0 %5536, %v5233_v48  }
 0x21d   : > { %v6485_v22 = vpop.permute.xlu2 %1623  ;;  %v6487_v56 = vpop.permute.xlu1 %1472 }
 0x21e   : > { %8633 = vst [vmem:[#allocation80_spill] sm:$0xff] %v6485_v22  ;;  %v6489_v54 = vpop.permute.xlu0 %1467  ;;  %v5204_v22 = vld [vmem:[%s5733_s17 + $0x80] sm:$0xff] }
 0x21f   : > { %8634 = vst [vmem:[#allocation72_spill] sm:$0xff] %v6487_v56  ;;  %v5236_v56 = vld [vmem:[%s5733_s17 + $0x79] sm:$0xff] }
 0x223   : > { %2161 = vperm.xlu2 %5538, %v5234_v62   ;;  %2417 = vperm.xlu1 %5537, %v5266_v44   ;;  %v5235_v44 = vld [vmem:[%s5733_s17 + $0x69] sm:$0xff] }
 0x224   : > { %2407 = vperm.xlu0 %5536, %v5264_v38   ;;  %v5269_v38 = vld [vmem:[%s5733_s17 + $0x7a] sm:$0xff] }
 0x225   : > { %v6494_v30 = vpop.permute.xlu2 %1638  ;;  %v6496_v53 = vpop.permute.xlu1 %1487 }
 0x226   : > { %8635 = vst [vmem:[#allocation84_spill] sm:$0xff] %v6494_v30  ;;  %v6498_v48 = vpop.permute.xlu0 %1482 }
 0x227   : > { %8636 = vst [vmem:[#allocation85_spill] sm:$0xff] %v6496_v53  ;;  %v6515_v53 = vld [vmem:[%s8422_s1 + $0x1] ss:$0 sm:$0xff] }
 0x228   : > { %8637 = vst [vmem:[#allocation78_spill] sm:$0xff] %v6498_v48 }
 0x22b   : > { %1915 = vperm.xlu2 %5538, %v5204_v22   ;;  %1905 = vperm.xlu1 %5537, %v5202_v34   ;;  %v6520_v34 = vld [vmem:[%s8422_s1] ss:$0 sm:$0xff]  ;;  %v8641_v22 = vld [vmem:[#allocation88_spill] sm:$0xff] }
 0x22c   : > { %2171 = vperm.xlu0 %5536, %v5236_v56   ;;  %v747_v56 = vmul.f32 %v6515_v53, %v8641_v22  ;;  %v6540_v22 = vld [vmem:[%s8422_s1 + $0x3] ss:$0 sm:$0xff] }
 0x22d   : > { %v6503_v39 = vpop.permute.xlu2 %1653  ;;  %v6505_v35 = vpop.permute.xlu1 %1502 }
 0x22e   : > { %8638 = vst [vmem:[#allocation121_spill] sm:$0xff] %v6503_v39  ;;  %v6507_v62 = vpop.permute.xlu0 %1497 }
 0x22f   : > { %8639 = vst [vmem:[#allocation122_spill] sm:$0xff] %v6505_v35  ;;  %v6527_v35 = vld [vmem:[%s8422_s1 + $0x2] ss:$0 sm:$0xff] }
 0x230   : > { %8640 = vst [vmem:[#allocation123_spill] sm:$0xff] %v6507_v62  ;;  %v1008_v39 = vmul.f32 %v6527_v35, %v6233_v7 }
 0x233   : > { %2166 = vperm.xlu2 %5538, %v5235_v44   ;;  %2432 = vperm.xlu1 %5537, %v5269_v38   ;;  %v8644_v38 = vld [vmem:[#allocation24_spill] sm:$0xff] }
 0x234   : > { %2422 = vperm.xlu0 %5536, %v5267_v23   ;;  %v486_v48 = vmul.f32 %v6520_v34, %v8644_v38  ;;  %v1270_v23 = vmul.f32 %v6540_v22, %v6361_v57  ;;  %v5207_v38 = vld [vmem:[%s5733_s17 + $0xa8] sm:$0xff] }
 0x235   : > { %v6529_v62 = vpop.permute.xlu2 %1668  ;;  %v6531_v44 = vpop.permute.xlu1 %1618 }
 0x236   : > { %8642 = vst [vmem:[#allocation88_spill] sm:$0xff] %v6529_v62  ;;  %v6542_v30 = vpop.permute.xlu0 %1512  ;;  %v779_v21 = vadd.f32 %v747_v56, %v486_v48  ;;  %v6549_v62 = vld [vmem:[%s8422_s1 + $0x4] ss:$0 sm:$0xff]  ;;  %v750_v48 = vmul.f32 %v6515_v53, %v6183_v50  ;;  %v6561_v56 = vld [vmem:[%s8422_s1 + $0x5] ss:$0 sm:$0xff] }
 0x237   : > { %8643 = vst [vmem:[#allocation124_spill] sm:$0xff] %v6531_v44  ;;  %v5205_v44 = vld [vmem:[%s5733_s17 + $0x90] sm:$0xff]  ;;  %v1531_v18 = vmul.f32 %v6549_v62, %v6462_v43 }
 0x238   : > { %8645 = vst [vmem:[#allocation24_spill] sm:$0xff] %v6542_v30  ;;  %v1040_v7 = vadd.f32 %v1008_v39, %v779_v21  ;;  %v8647_v39 = vld [vmem:[#allocation30_spill] sm:$0xff] }
 0x239   : > { %v489_v43 = vmul.f32 %v6520_v34, %v8647_v39  ;;  %v1534_v39 = vmul.f32 %v6549_v62, %v6471_v55 }
 0x23a   : > { %v1302_v57 = vadd.f32 %v1270_v23, %v1040_v7  ;;  %v1273_v7 = vmul.f32 %v6540_v22, %v6370_v58 }
 0x23b   : > { %1930 = vperm.xlu2 %5538, %v5207_v38   ;;  %1920 = vperm.xlu1 %5537, %v5205_v44   ;;  %v1011_v44 = vmul.f32 %v6527_v35, %v6242_v10  ;;  %v782_v23 = vadd.f32 %v750_v48, %v489_v43  ;;  %v753_v10 = vmul.f32 %v6515_v53, %v6192_v36  ;;  %v8649_v48 = vld [vmem:[#allocation36_spill] sm:$0xff] }
 0x23c   : > { %2176 = vperm.xlu0 %5536, %v5237_v20   ;;  %v1563_v38 = vadd.f32 %v1531_v18, %v1302_v57  ;;  %v5238_v20 = vld [vmem:[%s5733_s17 + $0x91] sm:$0xff]  ;;  %v492_v57 = vmul.f32 %v6520_v34, %v8649_v48  ;;  %v1014_v43 = vmul.f32 %v6527_v35, %v6251_v13  ;;  %v1276_v36 = vmul.f32 %v6540_v22, %v6379_v5 }
 0x23d   : > { %v1684_v30 = vpop.permute.xlu2 %1683  ;;  %v6563_v21 = vpop.permute.xlu1 %1633  ;;  %v1043_v15 = vadd.f32 %v1011_v44, %v782_v23  ;;  %v5240_v23 = vld [vmem:[%s5733_s17 + $0xa9] sm:$0xff]  ;;  %v756_v13 = vmul.f32 %v6515_v53, %v6201_v31  ;;  %v1017_v48 = vmul.f32 %v6527_v35, %v6260_v16  ;;  %v1279_v31 = vmul.f32 %v6540_v22, %v6388_v63 }
 0x23e   : > { %8646 = vst [vmem:[#allocation125_spill] sm:$0xff] %v6563_v21  ;;  %v1792_v50 = vmul.f32 %v6561_v56, %v1684_v30  ;;  %v6570_v61 = vpop.permute.xlu0 %1628  ;;  %v5268_v21 = vld [vmem:[%s5733_s17 + $0x6a] sm:$0xff] }
 0x23f   : > { %v1305_v18 = vadd.f32 %v1273_v7, %v1043_v15  ;;  %v8653_v16 = vld [vmem:[#allocation69_spill] sm:$0xff] }
 0x240   : > { %v6574_v1 = vadd.f32 %v1792_v50, %v1563_v38  ;;  %v5206_v50 = vld [vmem:[%s5733_s17 + $0x98] sm:$0xff] }
 0x241   : > { %v1566_v55 = vadd.f32 %v1534_v39, %v1305_v18  ;;  %v8651_v18 = vld [vmem:[#allocation40_spill] sm:$0xff] }
 0x242   : > { %8648 = vst [vmem:[#allocation30_spill] sm:$0xff] %v6574_v1  ;;  %v8696_v1 = vld [vmem:[#allocation83_spill] sm:$0xff] }
 0x243   : > { %2181 = vperm.xlu2 %5538, %v5238_v20   ;;  %2437 = vperm.xlu1 %5537, %v5270_v17   ;;  %v785_v17 = vadd.f32 %v753_v10, %v492_v57  ;;  %v1537_v20 = vmul.f32 %v6549_v62, %v6480_v8 }
 0x244   : > { %2427 = vperm.xlu0 %5536, %v5268_v21   ;;  %v5208_v21 = vld [vmem:[%s5733_s17 + $0xb0] sm:$0xff] }
 0x245   : > { %v1699_v58 = vpop.permute.xlu2 %1698  ;;  %v6583_v30 = vpop.permute.xlu1 %1648  ;;  %v1046_v7 = vadd.f32 %v1014_v43, %v785_v17  ;;  %v5239_v17 = vld [vmem:[%s5733_s17 + $0x99] sm:$0xff] }
 0x246   : > { %v1795_v44 = vmul.f32 %v6561_v56, %v1699_v58  ;;  %v6590_v38 = vpop.permute.xlu0 %1643  ;;  %v495_v58 = vmul.f32 %v6520_v34, %v8651_v18  ;;  %v8655_v18 = vld [vmem:[#allocation31_spill] sm:$0xff] }
 0x247   : > { %v1308_v39 = vadd.f32 %v1276_v36, %v1046_v7  ;;  %v5273_v36 = vld [vmem:[%s5733_s17 + $0xaa] sm:$0xff]  ;;  %v749_v7 = vmul.f32 %v6515_v53, %v8653_v16  ;;  %v5211_v16 = vld [vmem:[%s5733_s17 + $0xd8] sm:$0xff] }
 0x248   : > { %v6594_v15 = vadd.f32 %v1795_v44, %v1566_v55  ;;  %v788_v55 = vadd.f32 %v756_v13, %v495_v58  ;;  %v8654_v13 = vld [vmem:[#allocation87_spill] sm:$0xff]  ;;  %v488_v58 = vmul.f32 %v6520_v34, %v8655_v18  ;;  %v1533_v18 = vmul.f32 %v6549_v62, %v6431_v40 }
 0x249   : > { %v1569_v8 = vadd.f32 %v1537_v20, %v1308_v39  ;;  %v748_v63 = vmul.f32 %v6515_v53, %v8654_v13  ;;  %v5209_v13 = vld [vmem:[%s5733_s17 + $0xc0] sm:$0xff] }
 0x24a   : > { %8650 = vst [vmem:[#allocation36_spill] sm:$0xff] %v6594_v15  ;;  %v8694_v15 = vld [vmem:[#allocation77_spill] sm:$0xff] }
 0x24b   : > { %1935 = vperm.xlu2 %5538, %v5208_v21   ;;  %1925 = vperm.xlu1 %5537, %v5206_v50   ;;  %v5271_v21 = vld [vmem:[%s5733_s17 + $0x92] sm:$0xff]  ;;  %v1049_v50 = vadd.f32 %v1017_v48, %v788_v55 }
 0x24c   : > { %2191 = vperm.xlu0 %5536, %v5240_v23   ;;  %v1540_v23 = vmul.f32 %v6549_v62, %v6489_v54  ;;  %v1010_v54 = vmul.f32 %v6527_v35, %v6271_v24  ;;  %v8656_v55 = vld [vmem:[#allocation13_spill] sm:$0xff] }
 0x24d   : > { %v1714_v5 = vpop.permute.xlu2 %1713  ;;  %v6603_v10 = vpop.permute.xlu1 %1663  ;;  %v1311_v20 = vadd.f32 %v1279_v31, %v1049_v50  ;;  %v487_v31 = vmul.f32 %v6520_v34, %v8656_v55 }
 0x24e   : > { %v1798_v57 = vmul.f32 %v6561_v56, %v1714_v5  ;;  %v6610_v43 = vpop.permute.xlu0 %1658 }
 0x24f   : > { %v1572_v48 = vadd.f32 %v1540_v23, %v1311_v20  ;;  %v780_v24 = vadd.f32 %v748_v63, %v487_v31  ;;  %v1271_v23 = vmul.f32 %v6540_v22, %v6332_v42  ;;  %v5241_v20 = vld [vmem:[%s5733_s17 + $0xb1] sm:$0xff]  ;;  %v751_v63 = vmul.f32 %v6515_v53, %v6181_v51 }
 0x250   : > { %v6614_v44 = vadd.f32 %v1798_v57, %v1569_v8 }
 0x252   : > { %8652 = vst [vmem:[#allocation40_spill] sm:$0xff] %v6614_v44 }
 0x253   : > { %2186 = vperm.xlu2 %5538, %v5239_v17   ;;  %2452 = vperm.xlu1 %5537, %v5273_v36   ;;  %v1009_v17 = vmul.f32 %v6527_v35, %v6273_v26  ;;  %v781_v36 = vadd.f32 %v749_v7, %v488_v58  ;;  %v1532_v26 = vmul.f32 %v6549_v62, %v6460_v3 }
 0x254   : > { %2442 = vperm.xlu0 %5536, %v5271_v21   ;;  %v1272_v21 = vmul.f32 %v6540_v22, %v6372_v6  ;;  %v8658_v6 = vld [vmem:[#allocation75_spill] sm:$0xff]  ;;  %v1013_v3 = vmul.f32 %v6527_v35, %v6280_v27 }
 0x255   : > { %v1729_v39 = vpop.permute.xlu2 %1728  ;;  %v6625_v5 = vpop.permute.xlu1 %1678  ;;  %v1041_v55 = vadd.f32 %v1009_v17, %v780_v24  ;;  %v752_v7 = vmul.f32 %v6515_v53, %v8658_v6  ;;  %v5242_v27 = vld [vmem:[%s5733_s17 + $0xc1] sm:$0xff]  ;;  %v1274_v6 = vmul.f32 %v6540_v22, %v6341_v46  ;;  %v754_v46 = vmul.f32 %v6515_v53, %v6190_v41 }
 0x256   : > { %v1801_v8 = vmul.f32 %v6561_v56, %v1729_v39  ;;  %v6632_v57 = vpop.permute.xlu0 %1673  ;;  %v1042_v39 = vadd.f32 %v1010_v54, %v781_v36 }
 0x257   : > { %v1303_v42 = vadd.f32 %v1271_v23, %v1041_v55 }
 0x258   : > { %v6640_v50 = vadd.f32 %v1801_v8, %v1572_v48  ;;  %v1304_v58 = vadd.f32 %v1272_v21, %v1042_v39  ;;  %v8659_v48 = vld [vmem:[#allocation37_spill] sm:$0xff]  ;;  %v8660_v21 = vld [vmem:[#allocation16_spill] sm:$0xff] }
 0x259   : > { %v491_v8 = vmul.f32 %v6520_v34, %v8659_v48  ;;  %v490_v51 = vmul.f32 %v6520_v34, %v8660_v21 }
 0x25a   : > { %8657 = vst [vmem:[#allocation69_spill] sm:$0xff] %v6640_v50  ;;  %v1565_v31 = vadd.f32 %v1533_v18, %v1304_v58  ;;  %v5274_v18 = vld [vmem:[%s5733_s17 + $0xb2] sm:$0xff]  ;;  %v5277_v50 = vld [vmem:[%s5733_s17 + $0xda] sm:$0xff] }
 0x25b   : > { %1950 = vperm.xlu2 %5538, %v5211_v16   ;;  %1940 = vperm.xlu1 %5537, %v5209_v13   ;;  %v1012_v16 = vmul.f32 %v6527_v35, %v6282_v29  ;;  %v1564_v13 = vadd.f32 %v1532_v26, %v1303_v42  ;;  %v784_v23 = vadd.f32 %v752_v7, %v491_v8 }
 0x25c   : > { %2196 = vperm.xlu0 %5536, %v5241_v20   ;;  %v1275_v20 = vmul.f32 %v6540_v22, %v6381_v0  ;;  %v783_v55 = vadd.f32 %v751_v63, %v490_v51  ;;  %v1536_v29 = vmul.f32 %v6549_v62, %v6440_v11  ;;  %v1535_v7 = vmul.f32 %v6549_v62, %v6469_v60  ;;  %v8663_v0 = vld [vmem:[#allocation81_spill] sm:$0xff] }
 0x25d   : > { %v6655_v54 = vpop.permute.xlu2 %2141  ;;  %v1694_v40 = vpop.permute.xlu1 %1693  ;;  %v1045_v48 = vadd.f32 %v1013_v3, %v784_v23  ;;  %v755_v42 = vmul.f32 %v6515_v53, %v8663_v0  ;;  %v1016_v60 = vmul.f32 %v6527_v35, %v6289_v19  ;;  %v5212_v19 = vld [vmem:[%s5733_s17 + $0xe0] sm:$0xff] }
 0x25e   : > { %v1794_v17 = vmul.f32 %v6561_v56, %v1694_v40  ;;  %v1689_v36 = vpop.permute.xlu0 %1688  ;;  %v5272_v40 = vld [vmem:[%s5733_s17 + $0x9a] sm:$0xff]  ;;  %v1044_v26 = vadd.f32 %v1012_v16, %v783_v55  ;;  %v5210_v55 = vld [vmem:[%s5733_s17 + $0xc8] sm:$0xff] }
 0x25f   : > { %v1793_v24 = vmul.f32 %v6561_v56, %v1689_v36  ;;  %v1307_v63 = vadd.f32 %v1275_v20, %v1045_v48  ;;  %v8665_v16 = vld [vmem:[#allocation19_spill] sm:$0xff] }
 0x260   : > { %v6669_v39 = vadd.f32 %v1794_v17, %v1565_v31  ;;  %v1306_v8 = vadd.f32 %v1274_v6, %v1044_v26  ;;  %v8664_v31 = vld [vmem:[#allocation41_spill] sm:$0xff]  ;;  %v493_v41 = vmul.f32 %v6520_v34, %v8665_v16  ;;  %v8668_v26 = vld [vmem:[#allocation7_spill] sm:$0xff] }
 0x261   : > { %v6675_v58 = vadd.f32 %v1793_v24, %v1564_v13  ;;  %v494_v17 = vmul.f32 %v6520_v34, %v8664_v31  ;;  %v1568_v36 = vadd.f32 %v1536_v29, %v1307_v63  ;;  %v1015_v13 = vmul.f32 %v6527_v35, %v6291_v32  ;;  %v5244_v29 = vld [vmem:[%s5733_s17 + $0xd9] sm:$0xff]  ;;  %v8670_v63 = vld [vmem:[#allocation9_spill] sm:$0xff] }
 0x262   : > { %8661 = vst [vmem:[#allocation87_spill] sm:$0xff] %v6669_v39  ;;  %v1567_v24 = vadd.f32 %v1535_v7, %v1306_v8  ;;  %v786_v6 = vadd.f32 %v754_v46, %v493_v41  ;;  %v6711_v32 = vmul.f32 %v6520_v34, %v8668_v26  ;;  %v8669_v7 = vld [vmem:[#allocation8_spill] sm:$0xff]  ;;  %v481_v46 = vmul.f32 %v6520_v34, %v8670_v63  ;;  %v8675_v41 = vld [vmem:[#allocation15_spill] sm:$0xff]  ;;  %v8679_v63 = vld [vmem:[#allocation21_spill] sm:$0xff] }
 0x263   : > { %8662 = vst [vmem:[#allocation31_spill] sm:$0xff] %v6675_v58  ;;  %2201 = vperm.xlu2 %5538, %v5242_v27   ;;  %2457 = vperm.xlu1 %5537, %v5274_v18   ;;  %v787_v20 = vadd.f32 %v755_v42, %v494_v17  ;;  %v1278_v27 = vmul.f32 %v6540_v22, %v6390_v25  ;;  %v8672_v17 = vld [vmem:[#allocation11_spill] sm:$0xff] }
 0x264   : > { %2447 = vperm.xlu0 %5536, %v5272_v40   ;;  %v1277_v40 = vmul.f32 %v6540_v22, %v6350_v52  ;;  %v478_v0 = vmul.f32 %v6520_v34, %v8669_v7  ;;  %v1539_v25 = vmul.f32 %v6549_v62, %v6449_v33  ;;  %v1047_v8 = vadd.f32 %v1015_v13, %v786_v6  ;;  %v8674_v33 = vld [vmem:[#allocation14_spill] sm:$0xff]  ;;  %v8692_v39 = vld [vmem:[#allocation71_spill] sm:$0xff] }
 0x265   : > { %v6686_v3 = vpop.permute.xlu2 %1895  ;;  %v1709_v11 = vpop.permute.xlu1 %1708  ;;  %v1048_v42 = vadd.f32 %v1016_v60, %v787_v20  ;;  %v1538_v52 = vmul.f32 %v6549_v62, %v6478_v59  ;;  %v476_v16 = vmul.f32 %v6520_v34, %v8674_v33  ;;  %v474_v13 = vmul.f32 %v6520_v34, %v8675_v41  ;;  %v8676_v59 = vld [vmem:[#allocation17_spill] sm:$0xff]  ;;  %v8681_v33 = vld [vmem:[#allocation39_spill] sm:$0xff] }
 0x266   : > { %v1797_v21 = vmul.f32 %v6561_v56, %v1709_v11  ;;  %v1704_v51 = vpop.permute.xlu0 %1703  ;;  %v8671_v11 = vld [vmem:[#allocation10_spill] sm:$0xff]  ;;  %v734_v41 = vmul.f32 %v6515_v53, %v8681_v33 }
 0x267   : > { %v1796_v23 = vmul.f32 %v6561_v56, %v1704_v51  ;;  %v484_v31 = vmul.f32 %v6520_v34, %v8671_v11  ;;  %v1310_v51 = vadd.f32 %v1278_v27, %v1048_v42  ;;  %v8678_v27 = vld [vmem:[#allocation20_spill] sm:$0xff]  ;;  %v482_v11 = vmul.f32 %v6520_v34, %v8679_v63  ;;  %v8685_v63 = vld [vmem:[#allocation29_spill] sm:$0xff] }
 0x268   : > { %v6700_v18 = vadd.f32 %v1797_v21, %v1568_v36  ;;  %v475_v36 = vmul.f32 %v6520_v34, %v8672_v17  ;;  %v8673_v21 = vld [vmem:[#allocation12_spill] sm:$0xff]  ;;  %v499_v44 = vmul.f32 %v6520_v34, %v8685_v63 }
 0x269   : > { %v6706_v48 = vadd.f32 %v1796_v23, %v1567_v24  ;;  %v473_v60 = vmul.f32 %v6520_v34, %v8673_v21  ;;  %v480_v24 = vmul.f32 %v6520_v34, %v8676_v59  ;;  %v1309_v23 = vadd.f32 %v1277_v40, %v1047_v8  ;;  %v8680_v40 = vld [vmem:[#allocation25_spill] sm:$0xff]  ;;  %v8693_v63 = vld [vmem:[#allocation76_spill] sm:$0xff] }
 0x26a   : > { %8666 = vst [vmem:[#allocation13_spill] sm:$0xff] %v6700_v18  ;;  %v1571_v26 = vadd.f32 %v1539_v25, %v1310_v51  ;;  %v485_v8 = vmul.f32 %v6520_v34, %v8680_v40  ;;  %v8682_v59 = vld [vmem:[#allocation45_spill] sm:$0xff]  ;;  %v8683_v25 = vld [vmem:[#allocation51_spill] sm:$0xff] }
 0x26b   : > { %8667 = vst [vmem:[#allocation75_spill] sm:$0xff] %v6706_v48  ;;  %1955 = vperm.xlu2 %5538, %v5212_v19   ;;  %1945 = vperm.xlu1 %5537, %v5210_v55   ;;  %v8677_v55 = vld [vmem:[#allocation18_spill] sm:$0xff]  ;;  %v1570_v17 = vadd.f32 %v1538_v52, %v1309_v23  ;;  %v740_v51 = vmul.f32 %v6515_v53, %v8683_v25  ;;  %v8686_v40 = vld [vmem:[#allocation57_spill] sm:$0xff]  ;;  %v8687_v23 = vld [vmem:[#allocation63_spill] sm:$0xff] }
 0x26c   : > { %2211 = vperm.xlu0 %5536, %v5244_v29   ;;  %v479_v6 = vmul.f32 %v6520_v34, %v8677_v55  ;;  %v483_v29 = vmul.f32 %v6520_v34, %v8678_v27  ;;  %v737_v55 = vmul.f32 %v6515_v53, %v8682_v59  ;;  %v5243_v27 = vld [vmem:[%s5733_s17 + $0xc9] sm:$0xff]  ;;  %v743_v52 = vmul.f32 %v6515_v53, %v8686_v40 }
 0x26d   : > { %v6733_v20 = vpop.permute.xlu2 %2146  ;;  %v1724_v19 = vpop.permute.xlu1 %1723  ;;  %v5275_v48 = vld [vmem:[%s5733_s17 + $0xc2] sm:$0xff]  ;;  %v8690_v25 = vld [vmem:[#allocation65_spill] sm:$0xff]  ;;  %v738_v34 = vmul.f32 %v6515_v53, %v8692_v39  ;;  %v742_v40 = vmul.f32 %v6515_v53, %v8693_v63  ;;  %v996_v63 = vmul.f32 %v6527_v35, %v6197_v37 }
 0x26e   : > { %v1800_v7 = vmul.f32 %v6561_v56, %v1724_v19  ;;  %v1719_v42 = vpop.permute.xlu0 %1718  ;;  %v8689_v59 = vld [vmem:[#allocation64_spill] sm:$0xff]  ;;  %v6780_v58 = vadd.f32 %v743_v52, %v482_v11  ;;  %v8699_v52 = vld [vmem:[#allocation97_spill] sm:$0xff] }
 0x26f   : > { %v1799_v21 = vmul.f32 %v6561_v56, %v1719_v42  ;;  %v746_v42 = vmul.f32 %v6515_v53, %v8687_v23  ;;  %v736_v18 = vmul.f32 %v6515_v53, %v8689_v59  ;;  %v766_v59 = vadd.f32 %v734_v41, %v473_v60 }
 0x270   : > { %v6751_v19 = vadd.f32 %v1800_v7, %v1571_v26  ;;  %v735_v26 = vmul.f32 %v6515_v53, %v8690_v25  ;;  %v8691_v7 = vld [vmem:[#allocation70_spill] sm:$0xff]  ;;  %v772_v25 = vadd.f32 %v740_v51, %v479_v6  ;;  %v770_v11 = vadd.f32 %v738_v34, %v6711_v32 }
 0x271   : > { %v6761_v33 = vadd.f32 %v1799_v21, %v1570_v17  ;;  %v741_v17 = vmul.f32 %v6515_v53, %v8694_v15  ;;  %v8695_v21 = vld [vmem:[#allocation82_spill] sm:$0xff]  ;;  %v6782_v39 = vadd.f32 %v746_v42, %v485_v8  ;;  %v999_v15 = vmul.f32 %v6527_v35, %v6206_v45 }
 0x272   : > { %8684 = vst [vmem:[#allocation37_spill] sm:$0xff] %v6751_v19  ;;  %v739_v19 = vmul.f32 %v6515_v53, %v8691_v7  ;;  %v745_v23 = vmul.f32 %v6515_v53, %v8695_v21  ;;  %v744_v7 = vmul.f32 %v6515_v53, %v8696_v1  ;;  %v768_v60 = vadd.f32 %v736_v18, %v475_v36  ;;  %v6802_v36 = vld [vmem:[%s5733_s17 + $0x152] sm:$0xff] }
 0x273   : > { %8688 = vst [vmem:[#allocation16_spill] sm:$0xff] %v6761_v33  ;;  %2206 = vperm.xlu2 %5538, %v5243_v27   ;;  %2472 = vperm.xlu1 %5537, %v5277_v50   ;;  %v769_v33 = vadd.f32 %v737_v55, %v476_v16  ;;  %v767_v16 = vadd.f32 %v735_v26, %v474_v13  ;;  %v8697_v13 = vld [vmem:[#allocation86_spill] sm:$0xff] }
 0x274   : > { %2462 = vperm.xlu0 %5536, %v5275_v48   ;;  %v771_v6 = vadd.f32 %v739_v19, %v478_v0  ;;  %v995_v1 = vmul.f32 %v6527_v35, %v6226_v9  ;;  %v774_v8 = vadd.f32 %v742_v40, %v481_v46  ;;  %v773_v37 = vadd.f32 %v741_v17, %v480_v24  ;;  %v5188_v9 = vld [vmem:[%s5733_s17 + $0x13a] sm:$0xff] }
 0x275   : > { %v6788_v27 = vpop.permute.xlu2 %1910  ;;  %v1891_v50 = vpop.permute.xlu1 %1890  ;;  %v6793_v41 = vadd.f32 %v745_v23, %v484_v31  ;;  %v776_v45 = vadd.f32 %v744_v7, %v483_v29  ;;  %v760_v55 = vmul.f32 %v6515_v53, %v6208_v49  ;;  %v1002_v18 = vmul.f32 %v6527_v35, %v6215_v2  ;;  %v5245_v24 = vld [vmem:[%s5733_s17 + $0xe1] sm:$0xff]  ;;  %v8700_v26 = vld [vmem:[#allocation34_spill] sm:$0xff] }
 0x276   : > { %v1881_v48 = vpop.permute.xlu0 %1880  ;;  %v997_v0 = vmul.f32 %v6527_v35, %v6237_v14  ;;  %v6807_v32 = vmul.f32 %v6515_v53, %v8697_v13  ;;  %v6809_v46 = vadd.f32 %v996_v63, %v767_v16  ;;  %v6811_v31 = vadd.f32 %v999_v15, %v770_v11  ;;  %v8698_v53 = vld [vmem:[#allocation96_spill] sm:$0xff]  ;;  %v8703_v23 = vld [vmem:[#allocation99_spill] sm:$0xff] }
 0x277   : > { %v1257_v49 = vmul.f32 %v6540_v22, %v6327_v47  ;;  %v1005_v2 = vmul.f32 %v6527_v35, %v6224_v4  ;;  %v1027_v29 = vadd.f32 %v995_v1, %v766_v59  ;;  %v998_v14 = vmul.f32 %v6527_v35, %v6235_v12  ;;  %v8701_v12 = vld [vmem:[#allocation48_spill] sm:$0xff] }
 0x278   : > { %v1259_v51 = vmul.f32 %v6540_v22, %v6296_v28  ;;  %v1001_v19 = vmul.f32 %v6527_v35, %v8698_v53  ;;  %v1000_v42 = vmul.f32 %v6527_v35, %v8699_v52  ;;  %v1518_v47 = vmul.f32 %v6549_v62, %v8700_v26  ;;  %v8702_v28 = vld [vmem:[#allocation98_spill] sm:$0xff]  ;;  %v8704_v63 = vld [vmem:[#allocation124_spill] sm:$0xff]  ;;  %v8706_v53 = vld [vmem:[#allocation101_spill] sm:$0xff] }
 0x279   : > { %v792_v4 = vadd.f32 %v760_v55, %v499_v44  ;;  %v6829_v34 = vadd.f32 %v1002_v18, %v773_v37  ;;  %v1029_v40 = vadd.f32 %v997_v0, %v768_v60  ;;  %v1520_v17 = vmul.f32 %v6549_v62, %v8701_v12  ;;  %v6842_v44 = vld [vmem:[%s8422_s1 + $0x6] ss:$0 sm:$0xff]  ;;  %v8708_v26 = vld [vmem:[#allocation109_spill] sm:$0xff] }
 0x27a   : > { %v1004_v21 = vmul.f32 %v6527_v35, %v8702_v28  ;;  %v1003_v59 = vmul.f32 %v6527_v35, %v8703_v23  ;;  %v1289_v7 = vadd.f32 %v1257_v49, %v1027_v29  ;;  %v1779_v15 = vmul.f32 %v6561_v56, %v8704_v63 }
 0x27b   : > { %1748 = vperm.xlu2 %5538, %v6802_v36   ;;  %1738 = vperm.xlu1 %5537, %v5188_v9   ;;  %v6848_v1 = vadd.f32 %v1005_v2, %v776_v45  ;;  %v6850_v11 = vadd.f32 %v998_v14, %v769_v33  ;;  %v1291_v37 = vadd.f32 %v1259_v51, %v1029_v40  ;;  %v6864_v2 = vld [vmem:[%s8422_s1 + $0x7] ss:$0 sm:$0xff]  ;;  %v5215_v14 = vld [vmem:[%s5733_s17 + $0x108] sm:$0xff]  ;;  %v8709_v40 = vld [vmem:[#allocation110_spill] sm:$0xff] }
 0x27c   : > { %2216 = vperm.xlu0 %5536, %v5245_v24   ;;  %v1781_v55 = vmul.f32 %v6561_v56, %v6570_v61  ;;  %v6854_v0 = vadd.f32 %v1001_v19, %v772_v25  ;;  %v1032_v9 = vadd.f32 %v1000_v42, %v771_v6  ;;  %v1550_v13 = vadd.f32 %v1518_v47, %v1289_v7  ;;  %v8705_v24 = vld [vmem:[#allocation100_spill] sm:$0xff]  ;;  %v8707_v51 = vld [vmem:[#allocation107_spill] sm:$0xff]  ;;  %v5213_v42 = vld [vmem:[%s5733_s17 + $0xf0] sm:$0xff] }
 0x27d   : > { %v6844_v60 = vpop.permute.xlu2 %2161  ;;  %v6846_v16 = vpop.permute.xlu1 %1885  ;;  %v2041_v49 = vmul.f32 %v6842_v44, %v1881_v48  ;;  %v1007_v29 = vmul.f32 %v6527_v35, %v8705_v24  ;;  %v1006_v45 = vmul.f32 %v6527_v35, %v8706_v53  ;;  %v1552_v33 = vadd.f32 %v1520_v17, %v1291_v37  ;;  %v5276_v25 = vld [vmem:[%s5733_s17 + $0xca] sm:$0xff] }
 0x27e   : > { %v2152_v18 = vpop.permute.xlu0 %2151  ;;  %v2043_v61 = vmul.f32 %v6842_v44, %v1891_v50  ;;  %v6870_v6 = vadd.f32 %v1004_v21, %v6780_v58  ;;  %v1035_v48 = vadd.f32 %v1003_v59, %v774_v8  ;;  %v1262_v19 = vmul.f32 %v6540_v22, %v8707_v51  ;;  %v6883_v58 = vld [vmem:[%s8422_s1 + $0x8] ss:$0 sm:$0xff]  ;;  %v8710_v8 = vld [vmem:[#allocation113_spill] sm:$0xff]  ;;  %v8715_v51 = vld [vmem:[#allocation118_spill] sm:$0xff] }
 0x27f   : > { %v1811_v52 = vadd.f32 %v1779_v15, %v1550_v13  ;;  %v1021_v47 = vmul.f32 %v6527_v35, %v8708_v26  ;;  %v1265_v12 = vmul.f32 %v6540_v22, %v8709_v40  ;;  %v1813_v17 = vadd.f32 %v1781_v55, %v1552_v33  ;;  %v8711_v15 = vld [vmem:[#allocation114_spill] sm:$0xff]  ;;  %v8712_v55 = vld [vmem:[#allocation115_spill] sm:$0xff]  ;;  %v8713_v33 = vld [vmem:[#allocation116_spill] sm:$0xff] }
 0x280   : > { %v2304_v50 = vmul.f32 %v6864_v2, %v2152_v18  ;;  %v1268_v28 = vmul.f32 %v6540_v22, %v8710_v8  ;;  %v6888_v35 = vadd.f32 %v1007_v29, %v6782_v39  ;;  %v1038_v23 = vadd.f32 %v1006_v45, %v6793_v41  ;;  %v6910_v29 = vld [vmem:[%s8423_s2] ss:$0 sm:$0xff]  ;;  %v5221_v40 = vld [vmem:[%s5733_s17 + $0x150] sm:$0xff] }
 0x281   : > { %v2073_v21 = vadd.f32 %v2041_v49, %v1811_v52  ;;  %v2075_v59 = vadd.f32 %v2043_v61, %v1813_v17  ;;  %v5637_v7 = vmov 0.0   ;;  %v6893_v63 = vadd.f32 %v1262_v19, %v1032_v9  ;;  %v8716_v52 = vld [vmem:[#allocation119_spill] sm:$0xff] }
 0x282   : > { %3307 = vst.msk [vmem:[#allocation2 + $0x10] sm:$0xff] %vm2695_vm0, %v5637_v7  ;;  %v1258_v37 = vmul.f32 %v6540_v22, %v8711_v15  ;;  %v1261_v18 = vmul.f32 %v6540_v22, %v8712_v55  ;;  %v2302_v39 = vmul.f32 %v6864_v2, %v6655_v54  ;;  %v1053_v49 = vadd.f32 %v1021_v47, %v792_v4  ;;  %v5223_v47 = vld [vmem:[%s5733_s17 + $0x168] sm:$0xff]  ;;  %v8719_v15 = vld [vmem:[#allocation22_spill] sm:$0xff] }
 0x283   : > { %2467 = vperm.xlu2 %5538, %v5276_v25   ;;  %1970 = vperm.xlu1 %5537, %v5215_v14   ;;  %3308 = vst.msk [vmem:[#allocation2 + $0x18] sm:$0x3] %vm2856_vm1, %v5637_v7  ;;  %v6905_v24 = vadd.f32 %v1265_v12, %v1035_v48  ;;  %v2336_v9 = vadd.f32 %v2304_v50, %v2075_v59  ;;  %v8714_v14 = vld [vmem:[#allocation117_spill] sm:$0xff]  ;;  %v8717_v50 = vld [vmem:[#allocation120_spill] sm:$0xff] }
 0x284   : > { %1960 = vperm.xlu0 %5536, %v5213_v42   ;;  %3305 = vst.msk [vmem:[#allocation2] sm:$0xff] %vm2695_vm0, %v5637_v7  ;;  %v6915_v45 = vadd.f32 %v1268_v28, %v1038_v23  ;;  %v1260_v4 = vmul.f32 %v6540_v22, %v8713_v33  ;;  %v2334_v61 = vadd.f32 %v2302_v39, %v2073_v21  ;;  %v5278_v21 = vld [vmem:[%s5733_s17 + $0xe2] sm:$0xff]  ;;  %v8720_v39 = vld [vmem:[#allocation26_spill] sm:$0xff] }
 0x285   : > { %v6901_v13 = vpop.permute.xlu2 %1915  ;;  %v2413_v41 = vpop.permute.xlu1 %2412  ;;  %3306 = vst.msk [vmem:[#allocation2 + $0x8] sm:$0x3] %vm2856_vm1, %v5637_v7  ;;  %v1264_v48 = vmul.f32 %v6540_v22, %v8714_v14  ;;  %v1263_v19 = vmul.f32 %v6540_v22, %v8715_v51  ;;  %v1267_v42 = vmul.f32 %v6540_v22, %v8716_v52  ;;  %v1290_v12 = vadd.f32 %v1258_v37, %v6809_v46  ;;  %v8718_v23 = vld [vmem:[#allocation28_spill] sm:$0xff] }
 0x286   : > { %v2565_v53 = vmul.f32 %v6883_v58, %v2413_v41  ;;  %v2403_v54 = vpop.permute.xlu0 %2402  ;;  %3309 = vst.msk [vmem:[#allocation2 + $0x20] sm:$0xff] %vm2695_vm0, %v5637_v7  ;;  %v6934_v17 = vadd.f32 %v1261_v18, %v6811_v31  ;;  %v1266_v8 = vmul.f32 %v6540_v22, %v8717_v50  ;;  %v1269_v59 = vmul.f32 %v6540_v22, %v8718_v23  ;;  %v8721_v18 = vld [vmem:[#allocation61_spill] sm:$0xff]  ;;  %v8724_v50 = vld [vmem:[#allocation43_spill] sm:$0xff] }
 0x287   : > { %v2563_v25 = vmul.f32 %v6883_v58, %v2403_v54  ;;  %3310 = vst.msk [vmem:[#allocation2 + $0x28] sm:$0x3] %vm2856_vm1, %v5637_v7  ;;  %v1283_v55 = vmul.f32 %v6540_v22, %v8719_v15  ;;  %v1521_v46 = vmul.f32 %v6549_v62, %v8720_v39  ;;  %v1292_v37 = vadd.f32 %v1260_v4, %v6850_v11  ;;  %v8722_v4 = vld [vmem:[#allocation80_spill] sm:$0xff]  ;;  %v5318_v23 = vld [vmem:[%s8424_s3 + $0x50] sm:$0xff] }
 0x288   : > { %v2597_v26 = vadd.f32 %v2565_v53, %v2336_v9  ;;  %3311 = vst.msk [vmem:[#allocation2 + $0x30] sm:$0xff] %vm2695_vm0, %v5637_v7  ;;  %v1519_v41 = vmul.f32 %v6549_v62, %v8721_v18  ;;  %v6957_v22 = vadd.f32 %v1264_v48, %v6829_v34  ;;  %v6960_v53 = vadd.f32 %v1263_v19, %v6854_v0  ;;  %v5246_v39 = vld [vmem:[%s5733_s17 + $0xf1] sm:$0xff]  ;;  %v5297_v18 = vld [vmem:[%s8424_s3 + $0x28] sm:$0xff] }
 0x289   : > { %v2595_v28 = vadd.f32 %v2563_v25, %v2334_v61  ;;  %3312 = vst.msk [vmem:[#allocation2 + $0x38] sm:$0x3] %vm2856_vm1, %v5637_v7  ;;  %v6963_v54 = vadd.f32 %v1267_v42, %v6848_v1  ;;  %v6968_v33 = vadd.f32 %v1266_v8, %v6870_v6  ;;  %v1780_v61 = vmul.f32 %v6561_v56, %v8722_v4  ;;  %v8723_v25 = vld [vmem:[#allocation125_spill] sm:$0xff]  ;;  %v5299_v42 = vld [vmem:[%s8424_s3 + $0x38] sm:$0xff] }
 0x28a   : > { %v2633_v31 = vadd.f32 %v6910_v29, %v2597_v26  ;;  %3313 = vst.msk [vmem:[#allocation2 + $0x40] sm:$0xff] %vm2695_vm0, %v5637_v7  ;;  %v1782_v34 = vmul.f32 %v6561_v56, %v8723_v25  ;;  %v6981_v48 = vadd.f32 %v1269_v59, %v6888_v35  ;;  %v6983_v6 = vadd.f32 %v1283_v55, %v1053_v49  ;;  %v5319_v26 = vld [vmem:[%s8424_s3 + $0x58] sm:$0xff] }
 0x28b   : > { %v2631_v9 = vadd.f32 %v6910_v29, %v2595_v28  ;;  %2010 = vperm.xlu2 %5538, %v5223_v47   ;;  %2000 = vperm.xlu1 %5537, %v5221_v40   ;;  %3314 = vst.msk [vmem:[#allocation2 + $0x48] sm:$0x3] %vm2856_vm1, %v5637_v7  ;;  %v1553_v51 = vadd.f32 %v1521_v46, %v1292_v37  ;;  %v5189_v40 = vld [vmem:[%s5733_s17 + $0x142] sm:$0xff] }
 0x28c   : > { %v2665_v11 = vmax.f32 %v2633_v31, 0.0  ;;  %2477 = vperm.xlu0 %5536, %v5278_v21   ;;  %3315 = vst.msk [vmem:[#allocation2 + $0x50] sm:$0xff] %vm2695_vm0, %v5637_v7  ;;  %v1551_v35 = vadd.f32 %v1519_v41, %v1290_v12  ;;  %v2042_v49 = vmul.f32 %v6842_v44, %v6846_v16  ;;  %3530 = vmatpush.msra.mxu0 %v5299_v42  ;;  %v5248_v12 = vld [vmem:[%s5733_s17 + $0x109] sm:$0xff]  ;;  %v8725_v41 = vld [vmem:[#allocation54_spill] sm:$0xff] }
 0x28d   : > { %v2663_v0 = vmax.f32 %v2631_v9, 0.0  ;;  %v6974_v14 = vpop.permute.xlu2 %2166  ;;  %v6976_v1 = vpop.permute.xlu1 %1900  ;;  %3316 = vst.msk [vmem:[#allocation2 + $0x58] sm:$0x3] %vm2856_vm1, %v5637_v7  ;;  %3673 = vmatpush.msra.mxu2 %v5319_v26  ;;  %v1524_v8 = vmul.f32 %v6549_v62, %v8724_v50  ;;  %v2044_v28 = vmul.f32 %v6842_v44, %v6686_v3  ;;  %v5298_v16 = vld [vmem:[%s8424_s3 + $0x30] sm:$0xff]  ;;  %5488 = vmatpush.msra.mxu1 %v5299_v42 }
 0x28e   : > { %v2697_v19 = vsel %vm2695_vm0, %v2665_v11, -inf  ;;  %v2157_v52 = vpop.permute.xlu0 %2156  ;;  %3317 = vst.msk [vmem:[#allocation2 + $0x60] sm:$0xff] %vm2695_vm0, %v5637_v7  ;;  %v1812_v59 = vadd.f32 %v1780_v61, %v1551_v35  ;;  %v1814_v15 = vadd.f32 %v1782_v34, %v1553_v51  ;;  %3531 = vmatpush.msra.mxu0 %v5298_v16  ;;  %v1522_v9 = vmul.f32 %v6549_v62, %v8725_v41  ;;  %v5317_v61 = vld [vmem:[%s8424_s3 + $0x48] sm:$0xff]  ;;  %v8727_v41 = vld [vmem:[#allocation62_spill] sm:$0xff] }
 0x28f   : > { %v2696_v47 = vsel %vm2695_vm0, %v2663_v0, -inf  ;;  %v2305_v55 = vmul.f32 %v6864_v2, %v2157_v52  ;;  %3318 = vst.msk [vmem:[#allocation2 + $0x68] sm:$0x3] %vm2856_vm1, %v5637_v7  ;;  %3674 = vmatpush.msra.mxu2 %v5318_v23  ;;  %5489 = vmatpush.msra.mxu1 %v5298_v16  ;;  %v5316_v52 = vld [vmem:[%s8424_s3 + $0x40] sm:$0xff]  ;;  %v2303_v42 = vmul.f32 %v6864_v2, %v6733_v20  ;;  %v3481_v50 = vld [vmem:[#allocation2 + $0x1] sm:$0xff] }
 0x290   : > { %v2698_v21 = vmax.f32 %v2696_v47, %v2697_v19  ;;  %3319 = vst.msk [vmem:[#allocation2 + $0x70] sm:$0xff] %vm2695_vm0, %v5637_v7  ;;  %v2074_v11 = vadd.f32 %v2042_v49, %v1812_v59  ;;  %v2076_v25 = vadd.f32 %v2044_v28, %v1814_v15  ;;  %3532 = vmatpush.msra.mxu0 %v5297_v18  ;;  %v5296_v19 = vld [vmem:[%s8424_s3 + $0x20] sm:$0xff]  ;;  %v3624_v20 = vld [vmem:[#allocation2 + $0x2] sm:$0xff] }
 0x291   : > { %3320 = vst.msk [vmem:[#allocation2 + $0x78] sm:$0x3] %vm2856_vm1, %v5637_v7  ;;  %3675 = vmatpush.msra.mxu2 %v5317_v61  ;;  %5490 = vmatpush.msra.mxu1 %v5297_v18  ;;  %v1556_v28 = vadd.f32 %v1524_v8, %v6960_v53  ;;  %v8726_v23 = vld [vmem:[#allocation84_spill] sm:$0xff]  ;;  %v5331_v53 = vld [vmem:[%s8424_s3 + $0x78] sm:$0xff] }
 0x292   : > { %v2760_v3 = vrot.slane %v2698_v21, 2  ;;  %v2761_v46 = vrot.slane %v2698_v21, 4  ;;  %v2762_v31 = vrot.slane %v2698_v21, 6  ;;  %v2857_v37 = vsel %vm2856_vm1, %v2698_v21, -inf  ;;  %3321 = vst.msk [vmem:[#allocation2 + $0x80] sm:$0xff] %vm2695_vm0, %v5637_v7  ;;  %3533 = vmatpush.msra.mxu0 %v5296_v19  ;;  %v5214_v18 = vld [vmem:[%s5733_s17 + $0xf8] sm:$0xff]  ;;  %3759 = vmatpush.msra.mxu3 %v5331_v53 }
 0x293   : > { %v2858_v4 = vrot.slane %v2857_v37, 4  ;;  %1743 = vperm.xlu2 %5538, %v5189_v40   ;;  %2231 = vperm.xlu1 %5537, %v5248_v12   ;;  %3322 = vst.msk [vmem:[#allocation2 + $0x88] sm:$0x3] %vm2856_vm1, %v5637_v7  ;;  %v2337_v21 = vadd.f32 %v2305_v55, %v2076_v25  ;;  %v1783_v59 = vmul.f32 %v6561_v56, %v8726_v23  ;;  %v8728_v61 = vld [vmem:[#allocation68_spill] sm:$0xff] }
 0x294   : > { %v2864_v34 = vsel %vm2856_vm1, %v2760_v3, -inf  ;;  %v2871_v0 = vsel %vm2856_vm1, %v2761_v46, -inf  ;;  %v2878_v51 = vsel %vm2856_vm1, %v2762_v31, -inf  ;;  %2221 = vperm.xlu0 %5536, %v5246_v39   ;;  %3323 = vst.msk [vmem:[#allocation2 + $0x90] sm:$0xff] %vm2695_vm0, %v5637_v7  ;;  %v2335_v3 = vadd.f32 %v2303_v42, %v2074_v11  ;;  %3676 = vmatpush.msra.mxu2 %v5316_v52 }
 0x295   : > { %v2859_v26 = vmax.f32 %v2857_v37, %v2858_v4  ;;  %v2865_v35 = vrot.slane %v2864_v34, 4  ;;  %v2872_v49 = vrot.slane %v2871_v0, 4  ;;  %v7043_v47 = vpop.permute.xlu2 %1930  ;;  %v2418_v40 = vpop.permute.xlu1 %2417  ;;  %v2879_v39 = vrot.slane %v2878_v51, 4  ;;  %3324 = vst.msk [vmem:[#allocation2 + $0x98] sm:$0x3] %vm2856_vm1, %v5637_v7  ;;  %v5216_v37 = vld [vmem:[%s5733_s17 + $0x110] sm:$0xff]  ;;  %5300 = vmatmul.msk.f32.vlgmr.msra.gmra.mxu0 %vm2695_vm0, %v3481_v50  ;;  %5320 = vmatmul.msk.f32.vlgmr.msra.gmra.mxu2 %vm2695_vm0, %v3624_v20 }
 0x296   : > { %v2566_v12 = vmul.f32 %v6883_v58, %v2418_v40  ;;  %v2408_v16 = vpop.permute.xlu0 %2407  ;;  %v1523_v11 = vmul.f32 %v6549_v62, %v8727_v41  ;;  %v1554_v4 = vadd.f32 %v1522_v9, %v6934_v17  ;;  %v1525_v25 = vmul.f32 %v6549_v62, %v8728_v61  ;;  %5491 = vmatpush.msra.mxu1 %v5296_v19  ;;  %v5329_v50 = vld [vmem:[%s8424_s3 + $0x68] sm:$0xff]  ;;  %v8729_v20 = vld [vmem:[#allocation121_spill] sm:$0xff] }
 0x297   : > { %v2866_v15 = vmax.f32 %v2864_v34, %v2865_v35  ;;  %v2860_v8 = vrot.slane %v2859_v26, 2  ;;  %v2873_v55 = vmax.f32 %v2871_v0, %v2872_v49  ;;  %v2564_v31 = vmul.f32 %v6883_v58, %v2408_v16  ;;  %v7069_v34 = vld [vmem:[%s5733_s17 + $0x15a] sm:$0xff]  ;;  %v5330_v0 = vld [vmem:[%s8424_s3 + $0x70] sm:$0xff]  ;;  %4402 = vst.msk [vmem:[#allocation3] sm:$0x3f] %vm4401_vm9, %v5637_v7 }
 0x298   : > { %v2598_v46 = vadd.f32 %v2566_v12, %v2337_v21  ;;  %v2045_v42 = vmul.f32 %v6842_v44, %v6976_v1  ;;  %v1815_v40 = vadd.f32 %v1783_v59, %v1554_v4  ;;  %v1785_v17 = vmul.f32 %v6561_v56, %v6583_v30  ;;  %3760 = vmatpush.msra.mxu3 %v5330_v0  ;;  %v5279_v4 = vld [vmem:[%s5733_s17 + $0xf2] sm:$0xff]  ;;  %v5256_v61 = vld [vmem:[%s5733_s17 + $0x169] sm:$0xff] }
 0x299   : > { %v2867_v52 = vrot.slane %v2866_v15, 2  ;;  %v2596_v49 = vadd.f32 %v2564_v31, %v2335_v3  ;;  %v2880_v9 = vmax.f32 %v2878_v51, %v2879_v39  ;;  %v2861_v21 = vmax.f32 %v2859_v26, %v2860_v8  ;;  %v5328_v39 = vld [vmem:[%s8424_s3 + $0x60] sm:$0xff]  ;;  %4403 = vst.msk [vmem:[#allocation3 + $0x8] sm:$0x3f] %vm4401_vm9, %v5637_v7 }
 0x29a   : > { %v2634_v35 = vadd.f32 %v6910_v29, %v2598_v46  ;;  %v2874_v19 = vrot.slane %v2873_v55, 2  ;;  %v1555_v1 = vadd.f32 %v1523_v11, %v6893_v63  ;;  %v1786_v30 = vmul.f32 %v6561_v56, %v8729_v20  ;;  %3761 = vmatpush.msra.mxu3 %v5329_v50  ;;  %4407 = vst.msk [vmem:[#allocation3 + $0x28] sm:$0x3f] %vm4401_vm9, %v5637_v7 }
 0x29b   : > { %1975 = vperm.xlu2 %5538, %v5216_v37   ;;  %1965 = vperm.xlu1 %5537, %v5214_v18   ;;  %v2632_v16 = vadd.f32 %v6910_v29, %v2596_v49  ;;  %v1784_v51 = vmul.f32 %v6561_v56, %v6590_v38  ;;  %v2047_v23 = vmul.f32 %v6842_v44, %v6788_v27  ;;  %v8730_v56 = vld [vmem:[#allocation67_spill] sm:$0xff]  ;;  %v2862_v18 = vrot.slane %v2861_v21, 1 }
 0x29c   : > { %v2666_v12 = vmax.f32 %v2634_v35, 0.0  ;;  %1753 = vperm.xlu0 %5536, %v7069_v34   ;;  %v2868_v63 = vmax.f32 %v2866_v15, %v2867_v52  ;;  %v2077_v3 = vadd.f32 %v2045_v42, %v1815_v40  ;;  %v7101_v38 = vmul.f32 %v6549_v62, %v8730_v56  ;;  %3762 = vmatpush.msra.mxu3 %v5328_v39  ;;  %v5254_v42 = vld [vmem:[%s5733_s17 + $0x151] sm:$0xff] }
 0x29d   : > { %v7091_v59 = vpop.permute.xlu2 %2181  ;;  %v7093_v26 = vpop.permute.xlu1 %1905  ;;  %v2664_v8 = vmax.f32 %v2632_v16, 0.0  ;;  %v1557_v27 = vadd.f32 %v1525_v25, %v6957_v22  ;;  %v1817_v31 = vadd.f32 %v1785_v17, %v1556_v28  ;;  %v2306_v37 = vmul.f32 %v6864_v2, %v6844_v60  ;;  %4404 = vst.msk [vmem:[#allocation3 + $0x10] sm:$0x3f] %vm4401_vm9, %v5637_v7 }
 0x29e   : > { %v2700_v53 = vsel %vm2695_vm0, %v2666_v12, -inf  ;;  %v2172_v46 = vpop.permute.xlu0 %2171  ;;  %v2875_v41 = vmax.f32 %v2873_v55, %v2874_v19  ;;  %v2881_v15 = vrot.slane %v2880_v9, 2  ;;  %v7111_v52 = vadd.f32 %v1784_v51, %v1555_v1  ;;  %4405 = vst.msk [vmem:[#allocation3 + $0x18] sm:$0x3f] %vm4401_vm9, %v5637_v7 }
 0x29f   : > { %v2699_v11 = vsel %vm2695_vm0, %v2664_v8, -inf  ;;  %v7109_v0 = vadd.f32 %v1786_v30, %v1557_v27  ;;  %v2079_v22 = vadd.f32 %v2047_v23, %v1817_v31  ;;  %v2869_v28 = vrot.slane %v2868_v63, 1  ;;  %4406 = vst.msk [vmem:[#allocation3 + $0x20] sm:$0x3f] %vm4401_vm9, %v5637_v7 }
 0x2a0   : > { %v2701_v62 = vmax.f32 %v2699_v11, %v2700_v53  ;;  %v2338_v25 = vadd.f32 %v2306_v37, %v2077_v3  ;;  %v2308_v49 = vmul.f32 %v6864_v2, %v2172_v46  ;;  %v2863_v40 = vmax.f32 %v2861_v21, %v2862_v18 }
 0x2a1   : > { %v2876_v17 = vrot.slane %v2875_v41, 1  ;;  %v2882_v50 = vmax.f32 %v2880_v9, %v2881_v15  ;;  %v2870_v23 = vmax.f32 %v2868_v63, %v2869_v28  ;;  %v5224_v15 = vld [vmem:[%s5733_s17 + $0x170] sm:$0xff]  ;;  %v5222_v63 = vld [vmem:[%s5733_s17 + $0x158] sm:$0xff] }
 0x2a2   : > { %v2763_v60 = vrot.slane %v2701_v62, 2  ;;  %v2764_v35 = vrot.slane %v2701_v62, 4  ;;  %v2765_v55 = vrot.slane %v2701_v62, 6  ;;  %v2885_v19 = vsel %vm2856_vm1, %v2701_v62, -inf }
 0x2a3   : > { %2482 = vperm.xlu2 %5538, %v5279_v4   ;;  %2271 = vperm.xlu1 %5537, %v5256_v61   ;;  %v2886_v12 = vrot.slane %v2885_v19, 4  ;;  %v2340_v8 = vadd.f32 %v2308_v49, %v2079_v22  ;;  %v2883_v27 = vrot.slane %v2882_v50, 1  ;;  %v2877_v11 = vmax.f32 %v2875_v41, %v2876_v17 }
 0x2a4   : > { %2261 = vperm.xlu0 %5536, %v5254_v42   ;;  %v2892_v16 = vsel %vm2856_vm1, %v2763_v60, -inf  ;;  %v2899_v1 = vsel %vm2856_vm1, %v2764_v35, -inf  ;;  %v2906_v20 = vsel %vm2856_vm1, %v2765_v55, -inf  ;;  %v5281_v42 = vld [vmem:[%s5733_s17 + $0x10a] sm:$0xff]  ;;  %v3390_v28 = vsel %vm3389_vm2, %v2870_v23, %v2863_v40 }
 0x2a5   : > { %v7119_v30 = vpop.permute.xlu2 %1935  ;;  %v2433_v51 = vpop.permute.xlu1 %2432  ;;  %v2893_v21 = vrot.slane %v2892_v16, 4  ;;  %v2900_v9 = vrot.slane %v2899_v1, 4  ;;  %v2907_v39 = vrot.slane %v2906_v20, 4  ;;  %v2887_v53 = vmax.f32 %v2885_v19, %v2886_v12 }
 0x2a6   : > { %v2423_v3 = vpop.permute.xlu0 %2422  ;;  %v2569_v46 = vmul.f32 %v6883_v58, %v2433_v51  ;;  %v2048_v41 = vmul.f32 %v6842_v44, %v6901_v13  ;;  %v3392_v40 = vsel %vm3391_vm3, %v2877_v11, %v3390_v28 }
 0x2a7   : > { %v2567_v56 = vmul.f32 %v6883_v58, %v2423_v3  ;;  %v2894_v31 = vmax.f32 %v2892_v16, %v2893_v21  ;;  %v2901_v37 = vmax.f32 %v2899_v1, %v2900_v9  ;;  %v2908_v18 = vmax.f32 %v2906_v20, %v2907_v39 }
 0x2a8   : > { %v2888_v4 = vrot.slane %v2887_v53, 2  ;;  %v2601_v61 = vadd.f32 %v2569_v46, %v2340_v8  ;;  %v2884_v21 = vmax.f32 %v2882_v50, %v2883_v27  ;;  %v2046_v8 = vmul.f32 %v6842_v44, %v7093_v26 }
 0x2a9   : > { %v2599_v62 = vadd.f32 %v2567_v56, %v2338_v25  ;;  %v2895_v60 = vrot.slane %v2894_v31, 2  ;;  %v2902_v35 = vrot.slane %v2901_v37, 2  ;;  %v2909_v22 = vrot.slane %v2908_v18, 2 }
 0x2aa   : > { %v2889_v55 = vmax.f32 %v2887_v53, %v2888_v4  ;;  %v2637_v49 = vadd.f32 %v6910_v29, %v2601_v61  ;;  %v5247_v4 = vld [vmem:[%s5733_s17 + $0xf9] sm:$0xff]  ;;  %v2080_v28 = vadd.f32 %v2048_v41, %v7109_v0  ;;  %v2307_v0 = vmul.f32 %v6864_v2, %v6974_v14 }
 0x2ab   : > { %v2635_v19 = vadd.f32 %v6910_v29, %v2599_v62  ;;  %2015 = vperm.xlu2 %5538, %v5224_v15   ;;  %2005 = vperm.xlu1 %5537, %v5222_v63   ;;  %v2896_v17 = vmax.f32 %v2894_v31, %v2895_v60  ;;  %v2903_v12 = vmax.f32 %v2901_v37, %v2902_v35  ;;  %v5249_v63 = vld [vmem:[%s5733_s17 + $0x111] sm:$0xff] }
 0x2ac   : > { %v2910_v25 = vmax.f32 %v2908_v18, %v2909_v22  ;;  %2492 = vperm.xlu0 %5536, %v5281_v42   ;;  %v2890_v16 = vrot.slane %v2889_v55, 1  ;;  %v2669_v1 = vmax.f32 %v2637_v49, 0.0  ;;  %v3394_v31 = vsel %vm3393_vm4, %v2884_v21, %v3392_v40 }
 0x2ad   : > { %v2667_v20 = vmax.f32 %v2635_v19, 0.0  ;;  %v7132_v51 = vpop.permute.xlu2 %2186  ;;  %v7134_v23 = vpop.permute.xlu1 %1920  ;;  %v2897_v9 = vrot.slane %v2896_v17, 1  ;;  %v2904_v39 = vrot.slane %v2903_v12, 1  ;;  %v2078_v35 = vadd.f32 %v2046_v8, %v7111_v52 }
 0x2ae   : > { %v2911_v3 = vrot.slane %v2910_v25, 1  ;;  %v2177_v13 = vpop.permute.xlu0 %2176  ;;  %v2891_v53 = vmax.f32 %v2889_v55, %v2890_v16  ;;  %v2703_v46 = vsel %vm2695_vm0, %v2669_v1, -inf }
 0x2af   : > { %v2702_v56 = vsel %vm2695_vm0, %v2667_v20, -inf  ;;  %v2898_v37 = vmax.f32 %v2896_v17, %v2897_v9  ;;  %v2905_v18 = vmax.f32 %v2903_v12, %v2904_v39  ;;  %v2309_v11 = vmul.f32 %v6864_v2, %v2177_v13  ;;  %v7165_v13 = vld [vmem:[%s8422_s1 + $0x4] ss:$0 sm:$0xff] }
 0x2b0   : > { %v2704_v15 = vmax.f32 %v2702_v56, %v2703_v46  ;;  %v2912_v50 = vmax.f32 %v2910_v25, %v2911_v3  ;;  %v3396_v27 = vsel %vm3395_vm5, %v2891_v53, %v3394_v31  ;;  %v2339_v39 = vadd.f32 %v2307_v0, %v2078_v35  ;;  %v8731_v53 = vld [vmem:[#allocation50_spill] sm:$0xff]  ;;  %v8732_v46 = vld [vmem:[#allocation73_spill] sm:$0xff]  ;;  %v7174_v31 = vld [vmem:[%s8422_s1 + $0x5] ss:$0 sm:$0xff] }
 0x2b1   : > { %v3398_v61 = vsel %vm3397_vm6, %v2898_v37, %v3396_v27  ;;  %v2341_v1 = vadd.f32 %v2309_v11, %v2080_v28  ;;  %v1527_v8 = vmul.f32 %v7165_v13, %v8731_v53  ;;  %v1528_v56 = vmul.f32 %v7165_v13, %v8732_v46  ;;  %v8734_v28 = vld [vmem:[#allocation88_spill] sm:$0xff] }
 0x2b2   : > { %v2766_v26 = vrot.slane %v2704_v15, 2  ;;  %v2767_v62 = vrot.slane %v2704_v15, 4  ;;  %v2768_v42 = vrot.slane %v2704_v15, 6  ;;  %v3400_v60 = vsel %vm3399_vm7, %v2905_v18, %v3398_v61  ;;  %v7181_v61 = vld [vmem:[%s5733_s17 + $0x16a] sm:$0xff] }
 0x2b3   : > { %v2913_v22 = vsel %vm2856_vm1, %v2704_v15, -inf  ;;  %2522 = vperm.xlu2 %5538, %v6802_v36   ;;  %2236 = vperm.xlu1 %5537, %v5249_v63   ;;  %v3402_v55 = vsel %vm3401_vm8, %v2912_v50, %v3400_v60  ;;  %v1787_v37 = vmul.f32 %v7174_v31, %v6610_v43  ;;  %v5219_v15 = vld [vmem:[%s5733_s17 + $0x138] sm:$0xff]  ;;  %v5217_v63 = vld [vmem:[%s5733_s17 + $0x120] sm:$0xff]  ;;  %v1789_v60 = vmul.f32 %v7174_v31, %v8734_v28 }
 0x2b4   : > { %v2914_v49 = vrot.slane %v2913_v22, 4  ;;  %v2920_v19 = vsel %vm2856_vm1, %v2766_v26, -inf  ;;  %v2927_v17 = vsel %vm2856_vm1, %v2767_v62, -inf  ;;  %2226 = vperm.xlu0 %5536, %v5247_v4   ;;  %3461 = vst.msk [vmem:[#allocation2 + $0x11] sm:$0xff] %vm2695_vm0, %v3402_v55  ;;  %v2934_v12 = vsel %vm2856_vm1, %v2768_v42, -inf  ;;  %v8733_v62 = vld [vmem:[#allocation60_spill] sm:$0xff] }
 0x2b5   : > { %v2921_v41 = vrot.slane %v2920_v19, 4  ;;  %v2928_v52 = vrot.slane %v2927_v17, 4  ;;  %v7158_v25 = vpop.permute.xlu2 %1950  ;;  %v2438_v36 = vpop.permute.xlu1 %2437  ;;  %v2935_v16 = vrot.slane %v2934_v12, 4  ;;  %v1558_v26 = vadd.f32 %v7101_v38, %v6905_v24  ;;  %v8735_v24 = vld [vmem:[#allocation85_spill] sm:$0xff] }
 0x2b6   : > { %v2915_v40 = vmax.f32 %v2913_v22, %v2914_v49  ;;  %v2570_v20 = vmul.f32 %v6883_v58, %v2438_v36  ;;  %v2428_v21 = vpop.permute.xlu0 %2427  ;;  %v1529_v42 = vmul.f32 %v7165_v13, %v8733_v62  ;;  %v2049_v55 = vmul.f32 %v6842_v44, %v7134_v23  ;;  %v5255_v62 = vld [vmem:[%s5733_s17 + $0x159] sm:$0xff] }
 0x2b7   : > { %v2922_v9 = vmax.f32 %v2920_v19, %v2921_v41  ;;  %v2929_v14 = vmax.f32 %v2927_v17, %v2928_v52  ;;  %v2568_v3 = vmul.f32 %v6883_v58, %v2428_v21  ;;  %v2936_v11 = vmax.f32 %v2934_v12, %v2935_v16 }
 0x2b8   : > { %v2602_v18 = vadd.f32 %v2570_v20, %v2341_v1  ;;  %v2916_v50 = vrot.slane %v2915_v40, 2  ;;  %v1560_v19 = vadd.f32 %v1528_v56, %v6963_v54  ;;  %v1544_v38 = vmul.f32 %v7165_v13, %v8735_v24 }
 0x2b9   : > { %v2923_v27 = vrot.slane %v2922_v9, 2  ;;  %v2600_v4 = vadd.f32 %v2568_v3, %v2339_v39  ;;  %v2930_v22 = vrot.slane %v2929_v14, 2  ;;  %v1819_v17 = vadd.f32 %v1787_v37, %v1558_v26 }
 0x2ba   : > { %v2638_v43 = vadd.f32 %v6910_v29, %v2602_v18  ;;  %v2051_v36 = vmul.f32 %v6842_v44, %v7043_v47  ;;  %v2917_v23 = vmax.f32 %v2915_v40, %v2916_v50  ;;  %v2937_v16 = vrot.slane %v2936_v11, 2  ;;  %v5257_v50 = vld [vmem:[%s5733_s17 + $0x171] sm:$0xff] }
 0x2bb   : > { %v2924_v35 = vmax.f32 %v2922_v9, %v2923_v27  ;;  %v2636_v49 = vadd.f32 %v6910_v29, %v2600_v4  ;;  %1990 = vperm.xlu2 %5538, %v5219_v15   ;;  %1980 = vperm.xlu1 %5537, %v5217_v63   ;;  %v3482_v41 = vld [vmem:[#allocation2 + $0x11] sm:$0xff]  ;;  %v7206_v21 = vadd.f32 %v1527_v8, %v6968_v33  ;;  %v8736_v9 = vld [vmem:[#allocation56_spill] sm:$0xff] }
 0x2bc   : > { %v2670_v0 = vmax.f32 %v2638_v43, 0.0  ;;  %2532 = vperm.xlu0 %5536, %v7181_v61   ;;  %v3625_v52 = vld [vmem:[#allocation2 + $0x12] sm:$0xff]  ;;  %5301 = vmatmul.msk.f32.gmra.mxu0 %vm2695_vm0, %v3482_v41  ;;  %v7210_v39 = vmul.f32 %v7165_v13, %v8736_v9  ;;  %v1821_v47 = vadd.f32 %v1789_v60, %v1560_v19  ;;  %v2931_v46 = vmax.f32 %v2929_v14, %v2930_v22 }
 0x2bd   : > { %v3710_v12 = vld [vmem:[#allocation2 + $0x10] sm:$0xff]  ;;  %v2668_v1 = vmax.f32 %v2636_v49, 0.0  ;;  %5321 = vmatmul.msk.f32.gmra.mxu2 %vm2695_vm0, %v3625_v52  ;;  %v7201_v54 = vpop.permute.xlu2 %2201  ;;  %v7203_v20 = vpop.permute.xlu1 %1925  ;;  %v2925_v53 = vrot.slane %v2924_v35, 1  ;;  %v2081_v56 = vadd.f32 %v2049_v55, %v1819_v17  ;;  %v7216_v18 = vadd.f32 %v1529_v42, %v6915_v45 }
 0x2be   : > { %v2706_v40 = vsel %vm2695_vm0, %v2670_v0, -inf  ;;  %5332 = vmatmul.msk.f32.vlgmr.msra.gmra.mxu3 %vm2695_vm0, %v3710_v12  ;;  %v2192_v3 = vpop.permute.xlu0 %2191  ;;  %v7219_v33 = vadd.f32 %v1544_v38, %v6983_v6  ;;  %v7223_v8 = vmul.f32 %v7174_v31, %v6603_v10  ;;  %v5280_v63 = vld [vmem:[%s5733_s17 + $0xfa] sm:$0xff]  ;;  %v2083_v27 = vadd.f32 %v2051_v36, %v1821_v47 }
 0x2bf   : > { %v2705_v37 = vsel %vm2695_vm0, %v2668_v1, -inf  ;;  %v2310_v14 = vmul.f32 %v6864_v2, %v7091_v59  ;;  %v2918_v4 = vrot.slane %v2917_v23, 1  ;;  %v2938_v26 = vmax.f32 %v2936_v11, %v2937_v16 }
 0x2c0   : > { %v2707_v15 = vmax.f32 %v2705_v37, %v2706_v40  ;;  %v2312_v6 = vmul.f32 %v6864_v2, %v2192_v3  ;;  %v2926_v60 = vmax.f32 %v2924_v35, %v2925_v53  ;;  %v2932_v43 = vrot.slane %v2931_v46, 1  ;;  %v5250_v37 = vld [vmem:[%s5733_s17 + $0x121] sm:$0xff] }
 0x2c1   : > { %v2342_v22 = vadd.f32 %v2310_v14, %v2081_v56  ;;  %v2919_v19 = vmax.f32 %v2917_v23, %v2918_v4  ;;  %v2939_v41 = vrot.slane %v2938_v26, 1  ;;  %v7242_v14 = vld [vmem:[%s5733_s17 + $0x12a] sm:$0xff]  ;;  %v5282_v4 = vld [vmem:[%s5733_s17 + $0x112] sm:$0xff] }
 0x2c2   : > { %v2769_v28 = vrot.slane %v2707_v15, 2  ;;  %v2770_v45 = vrot.slane %v2707_v15, 4  ;;  %v2771_v42 = vrot.slane %v2707_v15, 6  ;;  %v2941_v10 = vsel %vm2856_vm1, %v2707_v15, -inf }
 0x2c3   : > { %2487 = vperm.xlu2 %5538, %v5280_v63   ;;  %2276 = vperm.xlu1 %5537, %v5257_v50   ;;  %v2942_v55 = vrot.slane %v2941_v10, 4  ;;  %v2344_v12 = vadd.f32 %v2312_v6, %v2083_v27  ;;  %v2933_v40 = vmax.f32 %v2931_v46, %v2932_v43  ;;  %v3403_v3 = vsel %vm3389_vm2, %v2926_v60, %v2919_v19 }
 0x2c4   : > { %v2948_v49 = vsel %vm2856_vm1, %v2769_v28, -inf  ;;  %v2955_v59 = vsel %vm2856_vm1, %v2770_v45, -inf  ;;  %v2962_v11 = vsel %vm2856_vm1, %v2771_v42, -inf  ;;  %2266 = vperm.xlu0 %5536, %v5255_v62   ;;  %v1790_v62 = vmul.f32 %v7174_v31, %v6632_v57 }
 0x2c5   : > { %v2949_v24 = vrot.slane %v2948_v49, 4  ;;  %v2956_v38 = vrot.slane %v2955_v59, 4  ;;  %v2963_v17 = vrot.slane %v2962_v11, 4  ;;  %v7235_v35 = vpop.permute.xlu2 %1955  ;;  %v2453_v0 = vpop.permute.xlu1 %2452  ;;  %v2943_v52 = vmax.f32 %v2941_v10, %v2942_v55 }
 0x2c6   : > { %v2573_v36 = vmul.f32 %v6883_v58, %v2453_v0  ;;  %v2443_v16 = vpop.permute.xlu0 %2442  ;;  %v2050_v45 = vmul.f32 %v6842_v44, %v7203_v20  ;;  %v2940_v10 = vmax.f32 %v2938_v26, %v2939_v41  ;;  %v2052_v26 = vmul.f32 %v6842_v44, %v7119_v30  ;;  %v7267_v44 = vld [vmem:[%s5733_s17 + $0x172] sm:$0xff] }
 0x2c7   : > { %v2950_v1 = vmax.f32 %v2948_v49, %v2949_v24  ;;  %v2957_v9 = vmax.f32 %v2955_v59, %v2956_v38  ;;  %v2964_v47 = vmax.f32 %v2962_v11, %v2963_v17  ;;  %v2571_v23 = vmul.f32 %v6883_v58, %v2443_v16 }
 0x2c8   : > { %v2944_v53 = vrot.slane %v2943_v52, 2  ;;  %v2605_v56 = vadd.f32 %v2573_v36, %v2344_v12  ;;  %v1820_v38 = vadd.f32 %v7223_v8, %v7206_v21 }
 0x2c9   : > { %v2951_v15 = vrot.slane %v2950_v1, 2  ;;  %v2958_v63 = vrot.slane %v2957_v9, 2  ;;  %v2965_v50 = vrot.slane %v2964_v47, 2  ;;  %v2603_v27 = vadd.f32 %v2571_v23, %v2342_v22 }
 0x2ca   : > { %v2945_v28 = vmax.f32 %v2943_v52, %v2944_v53  ;;  %v2641_v46 = vadd.f32 %v6910_v29, %v2605_v56  ;;  %v3404_v22 = vsel %vm3391_vm3, %v2933_v40, %v3403_v3  ;;  %v2082_v23 = vadd.f32 %v2050_v45, %v1820_v38  ;;  %v5252_v3 = vld [vmem:[%s5733_s17 + $0x139] sm:$0xff] }
 0x2cb   : > { %v2952_v42 = vmax.f32 %v2950_v1, %v2951_v15  ;;  %v2959_v6 = vmax.f32 %v2957_v9, %v2958_v63  ;;  %v2966_v60 = vmax.f32 %v2964_v47, %v2965_v50  ;;  %v2639_v43 = vadd.f32 %v6910_v29, %v2603_v27  ;;  %2241 = vperm.xlu2 %5538, %v5250_v37  }
 0x2cc   : > { %v2946_v55 = vrot.slane %v2945_v28, 1  ;;  %v2673_v49 = vmax.f32 %v2641_v46, 0.0  ;;  %1733 = vperm.xlu1 %5537, %v7242_v14   ;;  %2497 = vperm.xlu0 %5536, %v5282_v4   ;;  %v3405_v52 = vsel %vm3393_vm4, %v2940_v10, %v3404_v22  ;;  %v1791_v1 = vmul.f32 %v7174_v31, %v6625_v5 }
 0x2cd   : > { %v2953_v57 = vrot.slane %v2952_v42, 1  ;;  %v2960_v59 = vrot.slane %v2959_v6, 1  ;;  %v2967_v11 = vrot.slane %v2966_v60, 1  ;;  %v2671_v20 = vmax.f32 %v2639_v43, 0.0  ;;  %v7253_v19 = vpop.permute.xlu2 %2206  ;;  %v1941_v24 = vpop.permute.xlu1 %1940 }
 0x2ce   : > { %v2947_v17 = vmax.f32 %v2945_v28, %v2946_v55  ;;  %v2709_v0 = vsel %vm2695_vm0, %v2673_v49, -inf  ;;  %v2197_v41 = vpop.permute.xlu0 %2196  ;;  %v1822_v9 = vadd.f32 %v1790_v62, %v7216_v18  ;;  %v2311_v18 = vmul.f32 %v6864_v2, %v7132_v51 }
 0x2cf   : > { %v2954_v12 = vmax.f32 %v2952_v42, %v2953_v57  ;;  %v2961_v36 = vmax.f32 %v2959_v6, %v2960_v59  ;;  %v2708_v16 = vsel %vm2695_vm0, %v2671_v20, -inf  ;;  %v2968_v30 = vmax.f32 %v2966_v60, %v2967_v11 }
 0x2d0   : > { %v3406_v21 = vsel %vm3395_vm5, %v2947_v17, %v3405_v52  ;;  %v2710_v8 = vmax.f32 %v2708_v16, %v2709_v0  ;;  %v2313_v40 = vmul.f32 %v6864_v2, %v2197_v41  ;;  %v2084_v5 = vadd.f32 %v2052_v26, %v1822_v9  ;;  %v5283_v17 = vld [vmem:[%s5733_s17 + $0x122] sm:$0xff]  ;;  %v8738_v9 = vld [vmem:[#allocation105_spill] sm:$0xff] }
 0x2d1   : > { %v3407_v47 = vsel %vm3397_vm6, %v2954_v12, %v3406_v21  ;;  %v2343_v6 = vadd.f32 %v2311_v18, %v2082_v23  ;;  %v1562_v11 = vadd.f32 %v7210_v39, %v6981_v48  ;;  %v7295_v41 = vld [vmem:[%s8422_s1 + $0x6] ss:$0 sm:$0xff]  ;;  %v7303_v48 = vld [vmem:[%s8422_s1] ss:$0 sm:$0xff]  ;;  %v7310_v16 = vld [vmem:[%s8422_s1 + $0x2] ss:$0 sm:$0xff] }
 0x2d2   : > { %v3408_v53 = vsel %vm3399_vm7, %v2961_v36, %v3407_v47  ;;  %v2772_v56 = vrot.slane %v2710_v8, 2  ;;  %v2773_v37 = vrot.slane %v2710_v8, 4  ;;  %v2774_v15 = vrot.slane %v2710_v8, 6  ;;  %v5220_v36 = vld [vmem:[%s5733_s17 + $0x140] sm:$0xff] }
 0x2d3   : > { %v3409_v63 = vsel %vm3401_vm8, %v2968_v30, %v3408_v53  ;;  %v2969_v50 = vsel %vm2856_vm1, %v2710_v8, -inf  ;;  %2537 = vperm.xlu2 %5538, %v7267_v44   ;;  %v2345_v43 = vadd.f32 %v2313_v40, %v2084_v5  ;;  %v2053_v52 = vmul.f32 %v7295_v41, %v1941_v24  ;;  %v8737_v39 = vld [vmem:[#allocation47_spill] sm:$0xff]  ;;  %v8739_v5 = vld [vmem:[#allocation32_spill] sm:$0xff] }
 0x2d4   : > { %3462 = vst.msk [vmem:[#allocation2 + $0x21] sm:$0xff] %vm2695_vm0, %v3409_v63  ;;  %v2970_v27 = vrot.slane %v2969_v50, 4  ;;  %v2976_v4 = vsel %vm2856_vm1, %v2772_v56, -inf  ;;  %v2983_v62 = vsel %vm2856_vm1, %v2773_v37, -inf  ;;  %v2990_v28 = vsel %vm2856_vm1, %v2774_v15, -inf  ;;  %2527 = vperm.xlu1 %5537, %v7069_v34   ;;  %2251 = vperm.xlu0 %5536, %v5252_v3  }
 0x2d5   : > { %v2977_v45 = vrot.slane %v2976_v4, 4  ;;  %v2984_v2 = vrot.slane %v2983_v62, 4  ;;  %v2991_v51 = vrot.slane %v2990_v28, 4  ;;  %v1749_v46 = vpop.permute.xlu2 %1748  ;;  %v2458_v42 = vpop.permute.xlu1 %2457  ;;  %v1019_v21 = vmul.f32 %v7310_v16, %v8738_v9  ;;  %v7320_v15 = vld [vmem:[%s8422_s1 + $0x3] ss:$0 sm:$0xff] }
 0x2d6   : > { %v2971_v60 = vmax.f32 %v2969_v50, %v2970_v27  ;;  %v1805_v10 = vmul.f32 %v7174_v31, %v1749_v46  ;;  %v2574_v22 = vmul.f32 %v6883_v58, %v2458_v42  ;;  %v2448_v55 = vpop.permute.xlu0 %2447  ;;  %v1823_v24 = vadd.f32 %v1791_v1, %v1562_v11  ;;  %v5251_v11 = vld [vmem:[%s5733_s17 + $0x129] sm:$0xff] }
 0x2d7   : > { %v2978_v49 = vmax.f32 %v2976_v4, %v2977_v45  ;;  %v2985_v57 = vmax.f32 %v2983_v62, %v2984_v2  ;;  %v2992_v34 = vmax.f32 %v2990_v28, %v2991_v51  ;;  %v2572_v59 = vmul.f32 %v6883_v58, %v2448_v55  ;;  %v5218_v58 = vld [vmem:[%s5733_s17 + $0x128] sm:$0xff]  ;;  %v7335_v28 = vld [vmem:[%s8422_s1 + $0x7] ss:$0 sm:$0xff] }
 0x2d8   : > { %v2972_v20 = vrot.slane %v2971_v60, 2  ;;  %v7289_v38 = vadd.f32 %v1805_v10, %v7219_v33  ;;  %v2606_v26 = vadd.f32 %v2574_v22, %v2345_v43  ;;  %v497_v33 = vmul.f32 %v7303_v48, %v8737_v39  ;;  %v5253_v10 = vld [vmem:[%s5733_s17 + $0x141] sm:$0xff]  ;;  %v8740_v22 = vld [vmem:[#allocation74_spill] sm:$0xff] }
 0x2d9   : > { %v2979_v0 = vrot.slane %v2978_v49, 2  ;;  %v2604_v12 = vadd.f32 %v2572_v59, %v2343_v6  ;;  %v2986_v47 = vrot.slane %v2985_v57, 2  ;;  %v2993_v23 = vrot.slane %v2992_v34, 2 }
 0x2da   : > { %v2642_v8 = vadd.f32 %v6910_v29, %v2606_v26  ;;  %v2973_v30 = vmax.f32 %v2971_v60, %v2972_v20  ;;  %v790_v37 = vadd.f32 %v6807_v32, %v497_v33  ;;  %v1281_v1 = vmul.f32 %v7320_v15, %v8739_v5  ;;  %v5285_v20 = vld [vmem:[%s5733_s17 + $0x13a] sm:$0xff] }
 0x2db   : > { %v2640_v40 = vadd.f32 %v6910_v29, %v2604_v12  ;;  %2502 = vperm.xlu2 %5538, %v5283_v17   ;;  %v3483_v3 = vld [vmem:[#allocation2 + $0x21] sm:$0xff]  ;;  %v2055_v29 = vmul.f32 %v7295_v41, %v7158_v25  ;;  %v2980_v63 = vmax.f32 %v2978_v49, %v2979_v0  ;;  %v2085_v50 = vadd.f32 %v2053_v52, %v1823_v24  ;;  %v8741_v49 = vld [vmem:[#allocation31_spill] sm:$0xff] }
 0x2dc   : > { %v3626_v53 = vld [vmem:[#allocation2 + $0x22] sm:$0xff]  ;;  %v2674_v18 = vmax.f32 %v2642_v8, 0.0  ;;  %1995 = vperm.xlu1 %5537, %v5220_v36   ;;  %1985 = vperm.xlu0 %5536, %v5218_v58   ;;  %v1051_v62 = vadd.f32 %v1019_v21, %v790_v37  ;;  %v2314_v25 = vmul.f32 %v7335_v28, %v7201_v54  ;;  %v2974_v51 = vrot.slane %v2973_v30, 1 }
 0x2dd   : > { %v3711_v56 = vld [vmem:[#allocation2 + $0x20] sm:$0xff]  ;;  %v2672_v27 = vmax.f32 %v2640_v40, 0.0  ;;  %5302 = vmatmul.msk.f32.gmra.mxu0 %vm2695_vm0, %v3483_v3  ;;  %5322 = vmatmul.msk.f32.gmra.mxu2 %vm2695_vm0, %v3626_v53  ;;  %v7328_v32 = vpop.permute.xlu2 %2467  ;;  %v7330_v4 = vpop.permute.xlu1 %1945  ;;  %v2987_v46 = vmax.f32 %v2985_v57, %v2986_v47  ;;  %v7341_v42 = vmax.f32 %v2992_v34, %v2993_v23  ;;  %v1542_v55 = vmul.f32 %v7165_v13, %v8740_v22 }
 0x2de   : > { %v2712_v45 = vsel %vm2695_vm0, %v2674_v18, -inf  ;;  %5333 = vmatmul.msk.f32.gmra.mxu3 %vm2695_vm0, %v3711_v56  ;;  %v2212_v2 = vpop.permute.xlu0 %2211  ;;  %v1313_v60 = vadd.f32 %v1281_v1, %v1051_v62  ;;  %v2087_v59 = vadd.f32 %v2055_v29, %v8741_v49  ;;  %v2981_v54 = vrot.slane %v2980_v63, 1  ;;  %v7360_v56 = vld [vmem:[%s8422_s1 + $0x8] ss:$0 sm:$0xff] }
 0x2df   : > { %v2711_v6 = vsel %vm2695_vm0, %v2672_v27, -inf  ;;  %v2346_v26 = vadd.f32 %v2314_v25, %v2085_v50  ;;  %v2316_v57 = vmul.f32 %v7335_v28, %v2212_v2  ;;  %v2975_v34 = vmax.f32 %v2973_v30, %v2974_v51 }
 0x2e0   : > { %v2713_v43 = vmax.f32 %v2711_v6, %v2712_v45  ;;  %v2988_v12 = vrot.slane %v2987_v46, 1  ;;  %v2995_v36 = vrot.slane %v7341_v42, 1  ;;  %v2982_v21 = vmax.f32 %v2980_v63, %v2981_v54 }
 0x2e1   : > { %v2348_v3 = vadd.f32 %v2316_v57, %v2087_v59 }
 0x2e2   : > { %v2775_v17 = vrot.slane %v2713_v43, 2  ;;  %v2776_v0 = vrot.slane %v2713_v43, 4  ;;  %v2777_v52 = vrot.slane %v2713_v43, 6  ;;  %v2997_v58 = vsel %vm2856_vm1, %v2713_v43, -inf }
 0x2e3   : > { %2256 = vperm.xlu2 %5538, %v5253_v10   ;;  %v2998_v39 = vrot.slane %v2997_v58, 4  ;;  %v2989_v1 = vmax.f32 %v2987_v46, %v2988_v12  ;;  %v3410_v45 = vsel %vm3389_vm2, %v2982_v21, %v2975_v34  ;;  %v7371_v46 = vld [vmem:[%s8423_s2] ss:$0 sm:$0xff]  ;;  %v2996_v57 = vmax.f32 %v7341_v42, %v2995_v36 }
 0x2e4   : > { %v3004_v13 = vsel %vm2856_vm1, %v2775_v17, -inf  ;;  %v3011_v33 = vsel %vm2856_vm1, %v2776_v0, -inf  ;;  %v3018_v9 = vsel %vm2856_vm1, %v2777_v52, -inf  ;;  %2246 = vperm.xlu1 %5537, %v5251_v11   ;;  %2512 = vperm.xlu0 %5536, %v5285_v20   ;;  %v5560_v52 = vld [vmem:[%s5733_s17 + $0x142] sm:$0xff] }
 0x2e5   : > { %v3005_v24 = vrot.slane %v3004_v13, 4  ;;  %v3012_v8 = vrot.slane %v3011_v33, 4  ;;  %v3019_v47 = vrot.slane %v3018_v9, 4  ;;  %v2011_v30 = vpop.permute.xlu2 %2010  ;;  %v2473_v23 = vpop.permute.xlu1 %2472  ;;  %v2999_v40 = vmax.f32 %v2997_v58, %v2998_v39 }
 0x2e6   : > { %v2067_v53 = vmul.f32 %v7295_v41, %v2011_v30  ;;  %v2577_v37 = vmul.f32 %v7360_v56, %v2473_v23  ;;  %v2463_v5 = vpop.permute.xlu0 %2462  ;;  %v3411_v11 = vsel %vm3391_vm3, %v2989_v1, %v3410_v45  ;;  %v2054_v58 = vmul.f32 %v7295_v41, %v7330_v4 }
 0x2e7   : > { %v3006_v18 = vmax.f32 %v3004_v13, %v3005_v24  ;;  %v3013_v29 = vmax.f32 %v3011_v33, %v3012_v8  ;;  %v3020_v63 = vmax.f32 %v3018_v9, %v3019_v47  ;;  %v3000_v50 = vrot.slane %v2999_v40, 2  ;;  %v5227_v8 = vld [vmem:[%s5733_s17 + $0x198] sm:$0xff] }
 0x2e8   : > { %v7364_v27 = vadd.f32 %v2067_v53, %v7289_v38  ;;  %v2609_v62 = vadd.f32 %v2577_v37, %v2348_v3  ;;  %v2575_v25 = vmul.f32 %v7360_v56, %v2463_v5  ;;  %v1574_v38 = vadd.f32 %v1542_v55, %v1313_v60  ;;  %v7393_v3 = vld [vmem:[%s5733_s17 + $0x182] sm:$0xff]  ;;  %v8742_v37 = vld [vmem:[#allocation30_spill] sm:$0xff] }
 0x2e9   : > { %v3007_v2 = vrot.slane %v3006_v18, 2  ;;  %v3014_v51 = vrot.slane %v3013_v29, 2  ;;  %v3021_v6 = vrot.slane %v3020_v63, 2  ;;  %v3001_v43 = vmax.f32 %v2999_v40, %v3000_v50  ;;  %v5225_v40 = vld [vmem:[%s5733_s17 + $0x180] sm:$0xff] }
 0x2ea   : > { %v2645_v10 = vadd.f32 %v7371_v46, %v2609_v62  ;;  %v2607_v22 = vadd.f32 %v2575_v25, %v2346_v26  ;;  %v2086_v5 = vadd.f32 %v2054_v58, %v8742_v37 }
 0x2eb   : > { %v3008_v49 = vmax.f32 %v3006_v18, %v3007_v2  ;;  %v3015_v59 = vmax.f32 %v3013_v29, %v3014_v51  ;;  %v3022_v54 = vmax.f32 %v3020_v63, %v3021_v6  ;;  %1758 = vperm.xlu2 %5538, %v7181_v61   ;;  %v3002_v20 = vrot.slane %v3001_v43, 1 }
 0x2ec   : > { %v2677_v17 = vmax.f32 %v2645_v10, 0.0  ;;  %v2643_v0 = vadd.f32 %v7371_v46, %v2607_v22  ;;  %2517 = vperm.xlu1 %5537, %v5560_v52   ;;  %2507 = vperm.xlu0 %5536, %v7242_v14   ;;  %v3412_v14 = vsel %vm3393_vm4, %v2996_v57, %v3411_v11  ;;  %v2315_v29 = vmul.f32 %v7335_v28, %v7253_v19  ;;  %v8743_v11 = vld [vmem:[#allocation36_spill] sm:$0xff] }
 0x2ed   : > { %v3009_v34 = vrot.slane %v3008_v49, 1  ;;  %v3016_v60 = vrot.slane %v3015_v59, 1  ;;  %v3023_v55 = vrot.slane %v3022_v54, 1  ;;  %v7380_v26 = vpop.permute.xlu2 %1743  ;;  %v1739_v12 = vpop.permute.xlu1 %1738  ;;  %v3003_v61 = vmax.f32 %v3001_v43, %v3002_v20 }
 0x2ee   : > { %v2715_v39 = vsel %vm2695_vm0, %v2677_v17, -inf  ;;  %v2675_v13 = vmax.f32 %v2643_v0, 0.0  ;;  %v2217_v33 = vpop.permute.xlu0 %2216  ;;  %v1803_v9 = vmul.f32 %v7174_v31, %v1739_v12  ;;  %v2347_v45 = vadd.f32 %v2315_v29, %v2086_v5  ;;  %v7419_v17 = vld [vmem:[%s5733_s17 + $0x18a] sm:$0xff] }
 0x2ef   : > { %v3010_v42 = vmax.f32 %v3008_v49, %v3009_v34  ;;  %v3017_v36 = vmax.f32 %v3015_v59, %v3016_v60  ;;  %v3413_v21 = vsel %vm3395_vm5, %v3003_v61, %v3412_v14  ;;  %v3024_v47 = vmax.f32 %v3022_v54, %v3023_v55 }
 0x2f0   : > { %v2714_v24 = vsel %vm2695_vm0, %v2675_v13, -inf  ;;  %v1835_v23 = vadd.f32 %v1803_v9, %v1574_v38  ;;  %v2576_v43 = vmul.f32 %v7360_v56, %v7328_v32  ;;  %v5258_v38 = vld [vmem:[%s5733_s17 + $0x181] sm:$0xff]  ;;  %v2056_v49 = vmul.f32 %v7295_v41, %v7235_v35 }
 0x2f1   : > { %v3414_v30 = vsel %vm3397_vm6, %v3010_v42, %v3413_v21  ;;  %v2716_v4 = vmax.f32 %v2714_v24, %v2715_v39  ;;  %v2317_v52 = vmul.f32 %v7335_v28, %v2217_v33  ;;  %v8744_v35 = vld [vmem:[#allocation87_spill] sm:$0xff] }
 0x2f2   : > { %v3415_v53 = vsel %vm3399_vm7, %v3017_v36, %v3414_v30  ;;  %v2608_v0 = vadd.f32 %v2576_v43, %v2347_v45  ;;  %v2088_v12 = vadd.f32 %v2056_v49, %v8744_v35  ;;  %v5228_v24 = vld [vmem:[%s5733_s17 + $0x1a0] sm:$0xff] }
 0x2f3   : > { %v3416_v1 = vsel %vm3401_vm8, %v3024_v47, %v3415_v53  ;;  %v2778_v31 = vrot.slane %v2716_v4, 2  ;;  %v2779_v18 = vrot.slane %v2716_v4, 4  ;;  %2030 = vperm.xlu2 %5538, %v5227_v8   ;;  %v3025_v63 = vsel %vm2856_vm1, %v2716_v4, -inf  ;;  %v5260_v53 = vld [vmem:[%s5733_s17 + $0x199] sm:$0xff] }
 0x2f4   : > { %3463 = vst.msk [vmem:[#allocation2 + $0x31] sm:$0xff] %vm2695_vm0, %v3416_v1  ;;  %2020 = vperm.xlu1 %5537, %v5225_v40   ;;  %1768 = vperm.xlu0 %5536, %v7393_v3   ;;  %v2780_v10 = vrot.slane %v2716_v4, 6  ;;  %v3026_v22 = vrot.slane %v3025_v63, 4  ;;  %v2644_v33 = vadd.f32 %v7371_v46, %v2608_v0  ;;  %v2349_v42 = vadd.f32 %v2317_v52, %v2088_v12  ;;  %v5226_v40 = vld [vmem:[%s5733_s17 + $0x188] sm:$0xff]  ;;  %v5293_v49 = vld [vmem:[%s5733_s17 + $0x19a] sm:$0xff] }
 0x2f5   : > { %v3032_v50 = vsel %vm2856_vm1, %v2778_v31, -inf  ;;  %v7404_v62 = vpop.permute.xlu2 %1975  ;;  %v7406_v25 = vpop.permute.xlu1 %1970  ;;  %v3039_v51 = vsel %vm2856_vm1, %v2779_v18, -inf }
 0x2f6   : > { %v3033_v2 = vrot.slane %v3032_v50, 4  ;;  %v1961_v19 = vpop.permute.xlu0 %1960  ;;  %v3040_v54 = vrot.slane %v3039_v51, 4  ;;  %v3027_v60 = vmax.f32 %v3025_v63, %v3026_v22  ;;  %v3046_v55 = vsel %vm2856_vm1, %v2780_v10, -inf  ;;  %v5259_v10 = vld [vmem:[%s5733_s17 + $0x189] sm:$0xff] }
 0x2f7   : > { %v2057_v6 = vmul.f32 %v7295_v41, %v1961_v19  ;;  %v2676_v37 = vmax.f32 %v2644_v33, 0.0 }
 0x2f8   : > { %v3034_v59 = vmax.f32 %v3032_v50, %v3033_v2  ;;  %v3041_v58 = vmax.f32 %v3039_v51, %v3040_v54  ;;  %v3028_v21 = vrot.slane %v3027_v60, 2 }
 0x2f9   : > { %v7416_v20 = vadd.f32 %v2057_v6, %v8743_v11  ;;  %v2717_v51 = vsel %vm2695_vm0, %v2676_v37, -inf  ;;  %v5261_v37 = vld [vmem:[%s5733_s17 + $0x1a1] sm:$0xff] }
 0x2fa   : > { %v3035_v61 = vrot.slane %v3034_v59, 2  ;;  %v3042_v47 = vrot.slane %v3041_v58, 2  ;;  %v3029_v31 = vmax.f32 %v3027_v60, %v3028_v21 }
 0x2fb   : > { %2281 = vperm.xlu2 %5538, %v5258_v38   ;;  %v3484_v57 = vld [vmem:[#allocation2 + $0x31] sm:$0xff] }
 0x2fc   : > { %v3627_v34 = vld [vmem:[#allocation2 + $0x32] sm:$0xff]  ;;  %1773 = vperm.xlu1 %5537, %v7419_v17   ;;  %1763 = vperm.xlu0 %5536, %v7267_v44   ;;  %v3047_v44 = vrot.slane %v3046_v55, 4  ;;  %v3036_v8 = vmax.f32 %v3034_v59, %v3035_v61  ;;  %v3043_v29 = vmax.f32 %v3041_v58, %v3042_v47  ;;  %v3030_v6 = vrot.slane %v3029_v31, 1 }
 0x2fd   : > { %v3712_v32 = vld [vmem:[#allocation2 + $0x30] sm:$0xff]  ;;  %5303 = vmatmul.msk.f32.gmra.mxu0 %vm2695_vm0, %v3484_v57  ;;  %5323 = vmatmul.msk.f32.gmra.mxu2 %vm2695_vm0, %v3627_v34  ;;  %v7428_v39 = vpop.permute.xlu2 %2482  ;;  %v2001_v13 = vpop.permute.xlu1 %2000 }
 0x2fe   : > { %5334 = vmatmul.msk.f32.gmra.mxu3 %vm2695_vm0, %v3712_v32  ;;  %v2478_v14 = vpop.permute.xlu0 %2477  ;;  %v2065_v36 = vmul.f32 %v7295_v41, %v2001_v13  ;;  %v3048_v5 = vmax.f32 %v3046_v55, %v3047_v44  ;;  %v3037_v18 = vrot.slane %v3036_v8, 1  ;;  %v3044_v38 = vrot.slane %v3043_v29, 1 }
 0x2ff   : > { %v2578_v9 = vmul.f32 %v7360_v56, %v2478_v14  ;;  %v3031_v34 = vmax.f32 %v3029_v31, %v3030_v6 }
 0x300   : > { %v7435_v30 = vadd.f32 %v2065_v36, %v1835_v23  ;;  %v3049_v2 = vrot.slane %v3048_v5, 2  ;;  %v3038_v22 = vmax.f32 %v3036_v8, %v3037_v18  ;;  %v3045_v14 = vmax.f32 %v3043_v29, %v3044_v38 }
 0x301   : > { %v2610_v4 = vadd.f32 %v2578_v9, %v2349_v42 }
 0x302   : > { %v3050_v52 = vmax.f32 %v3048_v5, %v3049_v2  ;;  %v3417_v44 = vsel %vm3389_vm2, %v3038_v22, %v3031_v34 }
 0x303   : > { %v2646_v1 = vadd.f32 %v7371_v46, %v2610_v4  ;;  %2035 = vperm.xlu2 %5538, %v5228_v24   ;;  %v3418_v5 = vsel %vm3391_vm3, %v3045_v14, %v3417_v44  ;;  %v8748_v14 = vld [vmem:[#allocation91_spill] sm:$0xff] }
 0x304   : > { %2025 = vperm.xlu1 %5537, %v5226_v40   ;;  %2291 = vperm.xlu0 %5536, %v5260_v53   ;;  %v3051_v8 = vrot.slane %v3050_v52, 1 }
 0x305   : > { %v2678_v63 = vmax.f32 %v2646_v1, 0.0  ;;  %v7440_v50 = vpop.permute.xlu2 %2015  ;;  %v7442_v23 = vpop.permute.xlu1 %2231 }
 0x306   : > { %v2222_v45 = vpop.permute.xlu0 %2221  ;;  %v3052_v2 = vmax.f32 %v3050_v52, %v3051_v8 }
 0x307   : > { %v2718_v19 = vsel %vm2695_vm0, %v2678_v63, -inf  ;;  %v2318_v1 = vmul.f32 %v7335_v28, %v2222_v45 }
 0x308   : > { %v2719_v43 = vmax.f32 %v2717_v51, %v2718_v19  ;;  %v3419_v38 = vsel %vm3393_vm4, %v3052_v2, %v3418_v5  ;;  %v8755_v2 = vld [vmem:[#allocation52_spill] sm:$0xff] }
 0x30a   : > { %v2781_v59 = vrot.slane %v2719_v43, 2  ;;  %v2782_v54 = vrot.slane %v2719_v43, 4  ;;  %v2783_v11 = vrot.slane %v2719_v43, 6  ;;  %v3053_v0 = vsel %vm2856_vm1, %v2719_v43, -inf }
 0x30b   : > { %v3054_v57 = vrot.slane %v3053_v0, 4  ;;  %2286 = vperm.xlu2 %5538, %v5259_v10  }
 0x30c   : > { %v3060_v32 = vsel %vm2856_vm1, %v2781_v59, -inf  ;;  %v3067_v60 = vsel %vm2856_vm1, %v2782_v54, -inf  ;;  %v3074_v55 = vsel %vm2856_vm1, %v2783_v11, -inf  ;;  %2552 = vperm.xlu1 %5537, %v5293_v49   ;;  %2542 = vperm.xlu0 %5536, %v7393_v3   ;;  %v5294_v3 = vld [vmem:[%s5733_s17 + $0x1a2] sm:$0xff]  ;;  %v2350_v11 = vadd.f32 %v2318_v1, %v7416_v20  ;;  %v5561_v20 = vld [vmem:[%s8422_s1 + $0x1] ss:$0 sm:$0xff] }
 0x30d   : > { %v3055_v35 = vmax.f32 %v3053_v0, %v3054_v57  ;;  %v3061_v12 = vrot.slane %v3060_v32, 4  ;;  %v3068_v61 = vrot.slane %v3067_v60, 4  ;;  %v3075_v58 = vrot.slane %v3074_v55, 4  ;;  %v7453_v13 = vpop.permute.xlu2 %2522  ;;  %v7455_v33 = vpop.permute.xlu1 %1965  ;;  %v8754_v1 = vld [vmem:[#allocation92_spill] sm:$0xff]  ;;  %s5588_s17 = scalar_lea.hbm %s5587_s13, 4 }
 0x30e   : > { %v7458_v42 = vpop.permute.xlu0 %1753  ;;  %v2579_v0 = vmul.f32 %v7360_v56, %v7428_v39  ;;  %v8746_v39 = vld [vmem:[#allocation23_spill] sm:$0xff]  ;;  %v757_v44 = vmul.f32 %v5561_v20, %v8748_v14  ;;  %p5589_p11 = scmp.ne.s32.totalorder %s5587_s13, %s5588_s17  ;;  %p5594_p1 = scmp.lt.s32.totalorder %s5592_s16, %s5588_s17 }
 0x30f   : > { %v3056_v36 = vrot.slane %v3055_v35, 2  ;;  %v3062_v9 = vmax.f32 %v3060_v32, %v3061_v12  ;;  %v3069_v21 = vmax.f32 %v3067_v60, %v3068_v61  ;;  %v3076_v24 = vmax.f32 %v3074_v55, %v3075_v58  ;;  %v8747_v61 = vld [vmem:[#allocation90_spill] sm:$0xff] }
 0x310   : > { %v2320_v60 = vmul.f32 %v7335_v28, %v7442_v23  ;;  %v2611_v55 = vadd.f32 %v2579_v0, %v2350_v11  ;;  %v496_v12 = vmul.f32 %v7303_v48, %v8746_v39  ;;  %v764_v58 = vmul.f32 %v5561_v20, %v8747_v61  ;;  %v8758_v11 = vld [vmem:[#allocation93_spill] sm:$0xff]  ;;  %p5590_p12 = pnand %p5589_p11, %p5718_p5  ;;  %p5595_p2 = por %p5594_p1, %p5593_p0 }
 0x311   : > { %v3057_v47 = vmax.f32 %v3055_v35, %v3056_v36  ;;  %v3063_v4 = vrot.slane %v3062_v9, 2  ;;  %v3070_v40 = vrot.slane %v3069_v21, 2  ;;  %v3077_v53 = vrot.slane %v3076_v24, 2  ;;  %v8745_v35 = vld [vmem:[#allocation89_spill] sm:$0xff] }
 0x312   : > { %v8749_v36 = vld [vmem:[#allocation13_spill] sm:$0xff]  ;;  %p5591_p13 = pneg %p5590_p12 }
 0x313   : > { %v3058_v31 = vrot.slane %v3057_v47, 1  ;;  %v3064_v18 = vmax.f32 %v3062_v9, %v3063_v4  ;;  %v3071_v29 = vmax.f32 %v3069_v21, %v3070_v40  ;;  %v3078_v63 = vmax.f32 %v3076_v24, %v3077_v53  ;;  %2557 = vperm.xlu2 %5538, %v5294_v3   ;;  %v8750_v24 = vld [vmem:[#allocation35_spill] sm:$0xff]  ;;  %v8751_v3 = vld [vmem:[#allocation46_spill] sm:$0xff]  ;;  %v8752_v4 = vld [vmem:[#allocation53_spill] sm:$0xff] }
 0x314   : > { %2547 = vperm.xlu1 %5537, %v7419_v17   ;;  %2296 = vperm.xlu0 %5536, %v5261_v37   ;;  %v2059_v17 = vmul.f32 %v7295_v41, %v7406_v25  ;;  %v761_v25 = vmul.f32 %v5561_v20, %v8745_v35  ;;  %v502_v8 = vmul.f32 %v7303_v48, %v8750_v24  ;;  %v8753_v53 = vld [vmem:[#allocation59_spill] sm:$0xff]  ;;  %v8762_v35 = vld [vmem:[#allocation106_spill] sm:$0xff]  ;;  %p5596_p3 = pnand %p5595_p2, %p5591_p13 }
 0x315   : > { %v3059_v51 = vmax.f32 %v3057_v47, %v3058_v31  ;;  %v3065_v19 = vrot.slane %v3064_v18, 1  ;;  %v3072_v6 = vrot.slane %v3071_v29, 1  ;;  %v3079_v43 = vrot.slane %v3078_v63, 1  ;;  %v7465_v10 = vpop.permute.xlu2 %1990  ;;  %v7467_v22 = vpop.permute.xlu1 %2271 }
 0x316   : > { %v2262_v45 = vpop.permute.xlu0 %2261  ;;  %v2091_v9 = vadd.f32 %v2059_v17, %v8749_v36  ;;  %v498_v47 = vmul.f32 %v7303_v48, %v8751_v3  ;;  %v500_v40 = vmul.f32 %v7303_v48, %v8752_v4  ;;  %v503_v37 = vmul.f32 %v7303_v48, %v8753_v53  ;;  %v8765_v4 = vld [vmem:[#allocation27_spill] sm:$0xff]  ;;  %v8766_v53 = vld [vmem:[#allocation38_spill] sm:$0xff] }
 0x317   : > { %v3066_v49 = vmax.f32 %v3064_v18, %v3065_v19  ;;  %v3073_v59 = vmax.f32 %v3071_v29, %v3072_v6  ;;  %v3420_v54 = vsel %vm3395_vm5, %v3059_v51, %v3419_v38  ;;  %v3080_v52 = vmax.f32 %v3078_v63, %v3079_v43  ;;  %v8756_v19 = vld [vmem:[#allocation58_spill] sm:$0xff] }
 0x318   : > { %v759_v31 = vmul.f32 %v5561_v20, %v8754_v1  ;;  %v2352_v18 = vadd.f32 %v2320_v60, %v2091_v9  ;;  %v2647_v29 = vadd.f32 %v7371_v46, %v2611_v55  ;;  %v501_v51 = vmul.f32 %v7303_v48, %v8755_v2  ;;  %v8757_v38 = vld [vmem:[#allocation94_spill] sm:$0xff]  ;;  %v8761_v60 = vld [vmem:[#allocation103_spill] sm:$0xff] }
 0x319   : > { %v3421_v57 = vsel %vm3397_vm6, %v3066_v49, %v3420_v54  ;;  %v504_v6 = vmul.f32 %v7303_v48, %v8756_v19  ;;  %v793_v43 = vadd.f32 %v761_v25, %v500_v40  ;;  %v762_v49 = vmul.f32 %v5561_v20, %v8757_v38  ;;  %v8763_v25 = vld [vmem:[#allocation108_spill] sm:$0xff]  ;;  %v8764_v9 = vld [vmem:[#allocation111_spill] sm:$0xff] }
 0x31a   : > { %v3422_v34 = vsel %vm3399_vm7, %v3073_v59, %v3421_v57  ;;  %v796_v59 = vadd.f32 %v764_v58, %v503_v37  ;;  %v789_v54 = vadd.f32 %v757_v44, %v496_v12  ;;  %v763_v17 = vmul.f32 %v5561_v20, %v8758_v11 }
 0x31b   : > { %v3423_v32 = vsel %vm3401_vm8, %v3080_v52, %v3422_v34  ;;  %v8759_v52 = vld [vmem:[#allocation95_spill] sm:$0xff]  ;;  %v8760_v34 = vld [vmem:[#allocation102_spill] sm:$0xff]  ;;  %v1023_v55 = vmul.f32 %v7310_v16, %v8761_v60  ;;  %v1018_v39 = vmul.f32 %v7310_v16, %v8762_v35  ;;  %v791_v48 = vadd.f32 %v759_v31, %v498_v47 }
 0x31c   : > { %3464 = vst.msk [vmem:[#allocation2 + $0x41] sm:$0xff] %vm2695_vm0, %v3423_v32  ;;  %v765_v57 = vmul.f32 %v5561_v20, %v8759_v52  ;;  %v1020_v32 = vmul.f32 %v7310_v16, %v8760_v34  ;;  %v1022_v61 = vmul.f32 %v7310_v16, %v8763_v25  ;;  %v2679_v58 = vmax.f32 %v2647_v29, 0.0  ;;  %v8769_v34 = vld [vmem:[#allocation44_spill] sm:$0xff] }
 0x31d   : > { %v7491_v21 = vpop.permute.xlu2 %2487  ;;  %v7493_v23 = vpop.permute.xlu1 %2005  ;;  %v794_v20 = vadd.f32 %v762_v49, %v501_v51  ;;  %v1025_v24 = vmul.f32 %v7310_v16, %v8764_v9  ;;  %v2326_v3 = vmul.f32 %v7335_v28, %v2262_v45  ;;  %v7527_v47 = vadd.f32 %v763_v17, %v502_v8  ;;  %v8767_v51 = vld [vmem:[#allocation49_spill] sm:$0xff]  ;;  %v8768_v17 = vld [vmem:[#allocation112_spill] sm:$0xff]  ;;  %v8771_v9 = vld [vmem:[#allocation55_spill] sm:$0xff] }
 0x31e   : > { %v2493_v5 = vpop.permute.xlu0 %2492  ;;  %v1280_v40 = vmul.f32 %v7320_v15, %v8765_v4  ;;  %v1282_v37 = vmul.f32 %v7320_v15, %v8766_v53  ;;  %v7538_v45 = vadd.f32 %v765_v57, %v504_v6  ;;  %v1050_v8 = vadd.f32 %v1018_v39, %v789_v54 }
 0x31f   : > { %v2581_v63 = vmul.f32 %v7360_v56, %v2493_v5  ;;  %v7540_v29 = vadd.f32 %v1023_v55, %v794_v20  ;;  %v1054_v2 = vadd.f32 %v1022_v61, %v793_v43  ;;  %v1284_v19 = vmul.f32 %v7320_v15, %v8767_v51 }
 0x320   : > { %v2720_v38 = vsel %vm2695_vm0, %v2679_v58, -inf  ;;  %v7546_v11 = vadd.f32 %v1025_v24, %v796_v59  ;;  %v2358_v6 = vadd.f32 %v2326_v3, %v7435_v30  ;;  %v1312_v57 = vadd.f32 %v1280_v40, %v1050_v8  ;;  %v8772_v3 = vld [vmem:[#allocation78_spill] sm:$0xff]  ;;  %v7585_v8 = vld [vmem:[%s8422_s1 + $0x5] ss:$0 sm:$0xff] }
 0x321   : > { %v2613_v0 = vadd.f32 %v2581_v63, %v2352_v18  ;;  %v1052_v18 = vadd.f32 %v1020_v32, %v791_v48  ;;  %v7555_v43 = vmul.f32 %v7320_v15, %v8769_v34  ;;  %v2587_v32 = vmul.f32 %v7360_v56, %v7453_v13 }
 0x322   : > { %v1316_v39 = vadd.f32 %v1284_v19, %v1054_v2  ;;  %v2328_v30 = vmul.f32 %v7335_v28, %v7467_v22  ;;  %v7577_v24 = vmul.f32 %v7320_v15, %v8771_v9  ;;  %v8774_v19 = vld [vmem:[#allocation72_spill] sm:$0xff]  ;;  %v1804_v34 = vmul.f32 %v7585_v8, %v7380_v26 }
 0x323   : > { %v2649_v12 = vadd.f32 %v7371_v46, %v2613_v0  ;;  %v3485_v14 = vld [vmem:[#allocation2 + $0x41] sm:$0xff]  ;;  %v7550_v0 = vmul.f32 %v7310_v16, %v8768_v17  ;;  %v1314_v54 = vadd.f32 %v1282_v37, %v1052_v18  ;;  %v2058_v16 = vmul.f32 %v7295_v41, %v7455_v33 }
 0x324   : > { %v3628_v44 = vld [vmem:[#allocation2 + $0x42] sm:$0xff]  ;;  %5304 = vmatmul.msk.f32.gmra.mxu0 %vm2695_vm0, %v3485_v14  ;;  %v2619_v25 = vadd.f32 %v2587_v32, %v2358_v6  ;;  %v8770_v14 = vld [vmem:[#allocation66_spill] sm:$0xff] }
 0x325   : > { %v3713_v36 = vld [vmem:[#allocation2 + $0x40] sm:$0xff]  ;;  %5324 = vmatmul.msk.f32.gmra.mxu2 %vm2695_vm0, %v3628_v44  ;;  %v2681_v5 = vmax.f32 %v2649_v12, 0.0  ;;  %v7534_v1 = vpop.permute.xlu2 %2241  ;;  %v7536_v31 = vpop.permute.xlu1 %2236  ;;  %v7570_v12 = vld [vmem:[%s8422_s1 + $0x4] ss:$0 sm:$0xff] }
 0x326   : > { %5335 = vmatmul.msk.f32.gmra.mxu3 %vm2695_vm0, %v3713_v36  ;;  %v2227_v63 = vpop.permute.xlu0 %2226  ;;  %v1545_v44 = vmul.f32 %v7570_v12, %v8770_v14  ;;  %v1543_v4 = vmul.f32 %v7570_v12, %v8772_v3  ;;  %v2655_v17 = vadd.f32 %v7371_v46, %v2619_v25  ;;  %v2066_v3 = vmul.f32 %v7295_v41, %v7493_v23 }
 0x327   : > { %v2721_v49 = vsel %vm2695_vm0, %v2681_v5, -inf  ;;  %v2319_v22 = vmul.f32 %v7335_v28, %v2227_v63  ;;  %v8773_v5 = vld [vmem:[#allocation75_spill] sm:$0xff]  ;;  %v1806_v63 = vmul.f32 %v7585_v8, %v7458_v42 }
 0x328   : > { %v2722_v52 = vmax.f32 %v2720_v38, %v2721_v49  ;;  %v2090_v18 = vadd.f32 %v2058_v16, %v8773_v5  ;;  %v1541_v38 = vmul.f32 %v7570_v12, %v8774_v19  ;;  %v2360_v49 = vadd.f32 %v2328_v30, %v7364_v27 }
 0x329   : > { %v2060_v16 = vmul.f32 %v7295_v41, %v7404_v62  ;;  %v2580_v27 = vmul.f32 %v7360_v56, %v7491_v21 }
 0x32a   : > { %v2784_v60 = vrot.slane %v2722_v52, 2  ;;  %v2785_v55 = vrot.slane %v2722_v52, 4  ;;  %v2786_v59 = vrot.slane %v2722_v52, 6  ;;  %v3081_v35 = vsel %vm2856_vm1, %v2722_v52, -inf }
 0x32b   : > { %v3082_v48 = vrot.slane %v3081_v35, 4  ;;  %v1577_v52 = vadd.f32 %v1545_v44, %v1316_v39  ;;  %v7600_v25 = vadd.f32 %v1541_v38, %v1312_v57  ;;  %v2687_v39 = vmax.f32 %v2655_v17, 0.0  ;;  %v8776_v38 = vld [vmem:[#allocation16_spill] sm:$0xff] }
 0x32c   : > { %v3088_v61 = vsel %vm2856_vm1, %v2784_v60, -inf  ;;  %v3095_v58 = vsel %vm2856_vm1, %v2785_v55, -inf  ;;  %v3102_v13 = vsel %vm2856_vm1, %v2786_v59, -inf  ;;  %v2351_v60 = vadd.f32 %v2319_v22, %v2090_v18  ;;  %v8775_v22 = vld [vmem:[#allocation40_spill] sm:$0xff] }
 0x32d   : > { %v3089_v33 = vrot.slane %v3088_v61, 4  ;;  %v3096_v36 = vrot.slane %v3095_v58, 4  ;;  %v1981_v20 = vpop.permute.xlu1 %1980  ;;  %v3083_v40 = vmax.f32 %v3081_v35, %v3082_v48  ;;  %v3103_v53 = vrot.slane %v3102_v13, 4  ;;  %v2538_v15 = vpop.permute.xlu2 %2537 }
 0x32e   : > { %v2533_v37 = vpop.permute.xlu0 %2532  ;;  %v1575_v55 = vadd.f32 %v1543_v4, %v1314_v54  ;;  %v1838_v48 = vadd.f32 %v1806_v63, %v1577_v52  ;;  %v2068_v54 = vmul.f32 %v7295_v41, %v7440_v50  ;;  %v2612_v62 = vadd.f32 %v2580_v27, %v2351_v60 }
 0x32f   : > { %v3090_v2 = vmax.f32 %v3088_v61, %v3089_v33  ;;  %v3097_v51 = vmax.f32 %v3095_v58, %v3096_v36  ;;  %v2589_v6 = vmul.f32 %v7360_v56, %v2533_v37  ;;  %v3084_v42 = vrot.slane %v3083_v40, 2 }
 0x330   : > { %v3104_v59 = vmax.f32 %v3102_v13, %v3103_v53  ;;  %v7603_v58 = vadd.f32 %v1804_v34, %v1575_v55  ;;  %v2321_v13 = vmul.f32 %v7335_v28, %v7536_v31  ;;  %v2061_v21 = vmul.f32 %v7295_v41, %v1981_v20 }
 0x331   : > { %v3091_v32 = vrot.slane %v3090_v2, 2  ;;  %v2621_v35 = vadd.f32 %v2589_v6, %v2360_v49  ;;  %v3098_v30 = vrot.slane %v3097_v51, 2  ;;  %v3085_v44 = vmax.f32 %v3083_v40, %v3084_v42 }
 0x332   : > { %v3105_v33 = vrot.slane %v3104_v59, 2  ;;  %v2092_v9 = vadd.f32 %v2060_v16, %v8775_v22  ;;  %v2100_v53 = vadd.f32 %v2068_v54, %v1838_v48  ;;  %v2732_v50 = vsel %vm2695_vm0, %v2687_v39, -inf }
 0x333   : > { %v3092_v61 = vmax.f32 %v3090_v2, %v3091_v32  ;;  %v2657_v26 = vadd.f32 %v7371_v46, %v2621_v35  ;;  %v3099_v4 = vmax.f32 %v3097_v51, %v3098_v30  ;;  %v2322_v40 = vmul.f32 %v7335_v28, %v7534_v1 }
 0x334   : > { %v2353_v20 = vadd.f32 %v2321_v13, %v2092_v9  ;;  %v7619_v18 = vadd.f32 %v7371_v46, %v2612_v62  ;;  %v3086_v19 = vrot.slane %v3085_v44, 1  ;;  %v3106_v23 = vmax.f32 %v3104_v59, %v3105_v33 }
 0x335   : > { %v2277_v14 = vpop.permute.xlu1 %2276  ;;  %v2689_v57 = vmax.f32 %v2657_v26, 0.0  ;;  %v3093_v37 = vrot.slane %v3092_v61, 1  ;;  %v2503_v2 = vpop.permute.xlu2 %2502  ;;  %v2590_v51 = vmul.f32 %v7360_v56, %v2538_v15  ;;  %v2093_v49 = vadd.f32 %v2061_v21, %v8776_v38 }
 0x336   : > { %v2267_v36 = vpop.permute.xlu0 %2266  ;;  %v2329_v5 = vmul.f32 %v7335_v28, %v2277_v14  ;;  %v3100_v17 = vrot.slane %v3099_v4, 1  ;;  %v2583_v1 = vmul.f32 %v7360_v56, %v2503_v2  ;;  %v3087_v54 = vmax.f32 %v3085_v44, %v3086_v19 }
 0x337   : > { %v2733_v31 = vsel %vm2695_vm0, %v2689_v57, -inf  ;;  %v3094_v32 = vmax.f32 %v3092_v61, %v3093_v37  ;;  %v2354_v30 = vadd.f32 %v2322_v40, %v2093_v49  ;;  %v3107_v13 = vrot.slane %v3106_v23, 1 }
 0x338   : > { %v2734_v63 = vmax.f32 %v2732_v50, %v2733_v31  ;;  %v2361_v55 = vadd.f32 %v2329_v5, %v2100_v53  ;;  %v3101_v61 = vmax.f32 %v3099_v4, %v3100_v17  ;;  %v2063_v44 = vmul.f32 %v7295_v41, %v7465_v10 }
 0x339   : > { %v3424_v22 = vsel %vm3389_vm2, %v3094_v32, %v3087_v54  ;;  %v2615_v53 = vadd.f32 %v2583_v1, %v2354_v30  ;;  %v2680_v4 = vmax.f32 %v7619_v18, 0.0  ;;  %v2327_v2 = vmul.f32 %v7335_v28, %v2267_v36 }
 0x33a   : > { %v2796_v6 = vrot.slane %v2734_v63, 2  ;;  %v2797_v52 = vrot.slane %v2734_v63, 4  ;;  %v2798_v34 = vrot.slane %v2734_v63, 6  ;;  %v3193_v60 = vsel %vm2856_vm1, %v2734_v63, -inf }
 0x33b   : > { %v3194_v42 = vrot.slane %v3193_v60, 4  ;;  %v2622_v37 = vadd.f32 %v2590_v51, %v2361_v55  ;;  %v2098_v19 = vadd.f32 %v2066_v3, %v7603_v58  ;;  %v3425_v51 = vsel %vm3391_vm3, %v3101_v61, %v3424_v22  ;;  %v5343_v58 = vld [vmem:[%s8424_s3 + $0x98] sm:$0xff]  ;;  %v8777_v3 = vld [vmem:[#allocation69_spill] sm:$0xff] }
 0x33c   : > { %v3200_v35 = vsel %vm2856_vm1, %v2796_v6, -inf  ;;  %v3207_v16 = vsel %vm2856_vm1, %v2797_v52, -inf  ;;  %v3214_v59 = vsel %vm2856_vm1, %v2798_v34, -inf  ;;  %v3108_v6 = vmax.f32 %v3106_v23, %v3107_v13  ;;  %3845 = vmatpush.msrb.mxu0 %v5343_v58 }
 0x33d   : > { %v3201_v15 = vrot.slane %v3200_v35, 4  ;;  %v3208_v48 = vrot.slane %v3207_v16, 4  ;;  %v3215_v27 = vrot.slane %v3214_v59, 4  ;;  %v3195_v62 = vmax.f32 %v3193_v60, %v3194_v42  ;;  %v2257_v55 = vpop.permute.xlu2 %2256 }
 0x33e   : > { %v1734_v39 = vpop.permute.xlu1 %1733  ;;  %v2498_v26 = vpop.permute.xlu0 %2497  ;;  %v7638_v52 = vadd.f32 %v7371_v46, %v2615_v53  ;;  %v2095_v1 = vadd.f32 %v2063_v44, %v8777_v3  ;;  %v2359_v23 = vadd.f32 %v2327_v2, %v2098_v19  ;;  %v2723_v42 = vsel %vm2695_vm0, %v2680_v4, -inf }
 0x33f   : > { %v3202_v14 = vmax.f32 %v3200_v35, %v3201_v15  ;;  %v3209_v33 = vmax.f32 %v3207_v16, %v3208_v48  ;;  %v3216_v21 = vmax.f32 %v3214_v59, %v3215_v27  ;;  %v2582_v57 = vmul.f32 %v7360_v56, %v2498_v26 }
 0x340   : > { %v3196_v9 = vrot.slane %v3195_v62, 2  ;;  %v7648_v16 = vsel %vm3393_vm4, %v3108_v6, %v3425_v51  ;;  %v2683_v27 = vmax.f32 %v7638_v52, 0.0 }
 0x341   : > { %v3203_v50 = vrot.slane %v3202_v14, 2  ;;  %v3210_v31 = vrot.slane %v3209_v33, 2  ;;  %v3217_v5 = vrot.slane %v3216_v21, 2  ;;  %v2614_v40 = vadd.f32 %v2582_v57, %v2353_v20 }
 0x342   : > { %v3197_v63 = vmax.f32 %v3195_v62, %v3196_v9  ;;  %v2658_v20 = vadd.f32 %v7371_v46, %v2622_v37  ;;  %v7653_v62 = vmul.f32 %v7335_v28, %v2257_v55 }
 0x343   : > { %v3204_v38 = vmax.f32 %v3202_v14, %v3203_v50  ;;  %v3211_v49 = vmax.f32 %v3209_v33, %v3210_v31  ;;  %v2650_v17 = vadd.f32 %v7371_v46, %v2614_v40  ;;  %v3218_v18 = vmax.f32 %v3216_v21, %v3217_v5 }
 0x344   : > { %v3198_v10 = vrot.slane %v3197_v63, 1  ;;  %v2690_v30 = vmax.f32 %v2658_v20, 0.0  ;;  %v1802_v14 = vmul.f32 %v7585_v8, %v1734_v39 }
 0x345   : > { %v3205_v34 = vrot.slane %v3204_v38, 1  ;;  %v2682_v32 = vmax.f32 %v2650_v17, 0.0  ;;  %v3212_v15 = vrot.slane %v3211_v49, 1  ;;  %v3219_v13 = vrot.slane %v3218_v18, 1 }
 0x346   : > { %v2528_v60 = vpop.permute.xlu1 %2527  ;;  %v2252_v36 = vpop.permute.xlu0 %2251  ;;  %v3199_v61 = vmax.f32 %v3197_v63, %v3198_v10  ;;  %v2736_v6 = vsel %vm2695_vm0, %v2690_v30, -inf }
 0x347   : > { %v2588_v35 = vmul.f32 %v7360_v56, %v2528_v60  ;;  %v3206_v59 = vmax.f32 %v3204_v38, %v3205_v34  ;;  %v2724_v48 = vsel %vm2695_vm0, %v2682_v32, -inf  ;;  %v2324_v22 = vmul.f32 %v7335_v28, %v2252_v36 }
 0x348   : > { %v2725_v26 = vmax.f32 %v2723_v42, %v2724_v48  ;;  %v3213_v9 = vmax.f32 %v3211_v49, %v3212_v15  ;;  %v7663_v38 = vmax.f32 %v3218_v18, %v3219_v13  ;;  %v1834_v49 = vadd.f32 %v1802_v14, %v7600_v25  ;;  %v7670_v25 = vpop.permute.xlu2 %1758 }
 0x349   : > { %v2620_v54 = vadd.f32 %v2588_v35, %v2359_v23  ;;  %v3438_v53 = vsel %vm3389_vm2, %v3206_v59, %v3199_v61  ;;  %v2356_v58 = vadd.f32 %v2324_v22, %v2095_v1 }
 0x34a   : > { %v2787_v33 = vrot.slane %v2725_v26, 2  ;;  %v2788_v21 = vrot.slane %v2725_v26, 4  ;;  %v2789_v57 = vrot.slane %v2725_v26, 6  ;;  %v3109_v37 = vsel %vm2856_vm1, %v2725_v26, -inf }
 0x34b   : > { %v2656_v50 = vadd.f32 %v7371_v46, %v2620_v54  ;;  %v3110_v31 = vrot.slane %v3109_v37, 4  ;;  %v3439_v32 = vsel %vm3391_vm3, %v3213_v9, %v3438_v53 }
 0x34c   : > { %v3116_v5 = vsel %vm2856_vm1, %v2787_v33, -inf  ;;  %v3123_v40 = vsel %vm2856_vm1, %v2788_v21, -inf  ;;  %v3130_v44 = vsel %vm2856_vm1, %v2789_v57, -inf }
 0x34d   : > { %v3117_v39 = vrot.slane %v3116_v5, 4  ;;  %v3124_v4 = vrot.slane %v3123_v40, 4  ;;  %v3131_v63 = vrot.slane %v3130_v44, 4  ;;  %v2688_v2 = vmax.f32 %v2656_v50, 0.0 }
 0x34e   : > { %v1996_v19 = vpop.permute.xlu1 %1995  ;;  %v1986_v28 = vpop.permute.xlu0 %1985  ;;  %v3111_v17 = vmax.f32 %v3109_v37, %v3110_v31 }
 0x34f   : > { %v3118_v51 = vmax.f32 %v3116_v5, %v3117_v39  ;;  %v3125_v20 = vmax.f32 %v3123_v40, %v3124_v4  ;;  %v3132_v10 = vmax.f32 %v3130_v44, %v3131_v63  ;;  %v2735_v34 = vsel %vm2695_vm0, %v2688_v2, -inf  ;;  %v7679_v39 = vld [vmem:[%s8422_s1 + $0x6] ss:$0 sm:$0xff] }
 0x350   : > { %v3112_v60 = vrot.slane %v3111_v17, 2  ;;  %v2737_v36 = vmax.f32 %v2735_v34, %v2736_v6  ;;  %v2064_v18 = vmul.f32 %v7295_v41, %v1996_v19  ;;  %v2062_v4 = vmul.f32 %v7679_v39, %v1986_v28  ;;  %v3480_v28 = vld [vmem:[%s8424_s3 + $0x18] sm:$0xff] }
 0x351   : > { %v3119_v3 = vrot.slane %v3118_v51, 2  ;;  %v3126_v23 = vrot.slane %v3125_v20, 2  ;;  %v3133_v55 = vrot.slane %v3132_v10, 2  ;;  %3595 = vmatpush.msrb.mxu1 %v3480_v28  ;;  %v2726_v28 = vsel %vm2695_vm0, %v2683_v27, -inf  ;;  %v7772_v27 = vld [vmem:[%s8422_s1 + $0x3] ss:$0 sm:$0xff] }
 0x352   : > { %v3113_v42 = vmax.f32 %v3111_v17, %v3112_v60  ;;  %v2799_v35 = vrot.slane %v2737_v36, 2  ;;  %v2800_v59 = vrot.slane %v2737_v36, 4  ;;  %v2801_v15 = vrot.slane %v2737_v36, 6 }
 0x353   : > { %v3120_v48 = vmax.f32 %v3118_v51, %v3119_v3  ;;  %v3127_v30 = vmax.f32 %v3125_v20, %v3126_v23  ;;  %v3134_v26 = vmax.f32 %v3132_v10, %v3133_v55  ;;  %v3221_v54 = vsel %vm2856_vm1, %v2737_v36, -inf  ;;  %v7693_v55 = vld [vmem:[%s8422_s1 + $0x7] ss:$0 sm:$0xff] }
 0x354   : > { %v3114_v61 = vrot.slane %v3113_v42, 1  ;;  %v3222_v13 = vrot.slane %v3221_v54, 4  ;;  %v3228_v1 = vsel %vm2856_vm1, %v2799_v35, -inf  ;;  %v3235_v14 = vsel %vm2856_vm1, %v2800_v59, -inf }
 0x355   : > { %v3121_v33 = vrot.slane %v3120_v48, 1  ;;  %v3128_v21 = vrot.slane %v3127_v30, 1  ;;  %v3135_v41 = vrot.slane %v3134_v26, 1  ;;  %v3229_v57 = vrot.slane %v3228_v1, 4 }
 0x356   : > { %v2247_v22 = vpop.permute.xlu1 %2246  ;;  %v2513_v9 = vpop.permute.xlu0 %2512  ;;  %v3115_v53 = vmax.f32 %v3113_v42, %v3114_v61  ;;  %v3223_v37 = vmax.f32 %v3221_v54, %v3222_v13  ;;  %v3236_v50 = vrot.slane %v3235_v14, 4  ;;  %v3242_v31 = vsel %vm2856_vm1, %v2801_v15, -inf  ;;  %v8778_v54 = vld [vmem:[#allocation37_spill] sm:$0xff] }
 0x357   : > { %v3122_v5 = vmax.f32 %v3120_v48, %v3121_v33  ;;  %v3129_v40 = vmax.f32 %v3127_v30, %v3128_v21  ;;  %v3230_v44 = vmax.f32 %v3228_v1, %v3229_v57  ;;  %v3243_v17 = vrot.slane %v3242_v31, 4  ;;  %v7700_v48 = vpop.permute.xlu2 %2030  ;;  %v3479_v30 = vld [vmem:[%s8424_s3 + $0x10] sm:$0xff]  ;;  %v3478_v21 = vld [vmem:[%s8424_s3 + $0x8] sm:$0xff] }
 0x358   : > { %v3427_v63 = vsel %vm3395_vm5, %v3115_v53, %v7648_v16  ;;  %v3224_v2 = vrot.slane %v3223_v37, 2  ;;  %v3237_v19 = vmax.f32 %v3235_v14, %v3236_v50  ;;  %v3136_v6 = vmax.f32 %v3134_v26, %v3135_v41  ;;  %3596 = vmatpush.msrb.mxu1 %v3479_v30  ;;  %v7724_v50 = vld [vmem:[%s8422_s1 + $0x8] ss:$0 sm:$0xff] }
 0x359   : > { %v3428_v51 = vsel %vm3397_vm6, %v3122_v5, %v3427_v63  ;;  %v3231_v20 = vrot.slane %v3230_v44, 2  ;;  %v2096_v10 = vadd.f32 %v2064_v18, %v1834_v49  ;;  %v3244_v3 = vmax.f32 %v3242_v31, %v3243_v17  ;;  %v8779_v63 = vld [vmem:[#allocation79_spill] sm:$0xff] }
 0x35a   : > { %v3429_v34 = vsel %vm3399_vm7, %v3129_v40, %v3428_v51  ;;  %v3225_v60 = vmax.f32 %v3223_v37, %v3224_v2  ;;  %v3238_v36 = vrot.slane %v3237_v19, 2  ;;  %v2323_v42 = vmul.f32 %v7693_v55, %v2247_v22  ;;  %3597 = vmatpush.msrb.mxu1 %v3478_v21  ;;  %v8780_v51 = vld [vmem:[#allocation104_spill] sm:$0xff] }
 0x35b   : > { %v3430_v23 = vsel %vm3401_vm8, %v3136_v6, %v3429_v34  ;;  %v3232_v16 = vmax.f32 %v3230_v44, %v3231_v20  ;;  %v2585_v49 = vmul.f32 %v7360_v56, %v2513_v9  ;;  %v3440_v18 = vsel %vm3393_vm4, %v7663_v38, %v3439_v32  ;;  %v5342_v38 = vld [vmem:[%s8424_s3 + $0x90] sm:$0xff]  ;;  %v5341_v32 = vld [vmem:[%s8424_s3 + $0x88] sm:$0xff]  ;;  %v5567_v6 = vld [vmem:[%s8422_s1 + $0x2] ss:$0 sm:$0xff] }
 0x35c   : > { %3465 = vst.msk [vmem:[#allocation2 + $0x51] sm:$0xff] %vm2695_vm0, %v3430_v23  ;;  %v3226_v35 = vrot.slane %v3225_v60, 1  ;;  %v3239_v59 = vmax.f32 %v3237_v19, %v3238_v36  ;;  %v3245_v15 = vrot.slane %v3244_v3, 2  ;;  %v2094_v61 = vadd.f32 %v2062_v4, %v8778_v54  ;;  %3846 = vmatpush.msrb.mxu0 %v5342_v38 }
 0x35d   : > { %v3233_v26 = vrot.slane %v3232_v16, 1  ;;  %v2617_v13 = vadd.f32 %v2585_v49, %v2356_v58  ;;  %v2357_v14 = vadd.f32 %v7653_v62, %v2096_v10  ;;  %v3477_v62 = vld [vmem:[%s8424_s3] sm:$0xff]  ;;  %v7738_v20 = vmul.f32 %v5567_v6, %v8780_v51 }
 0x35e   : > { %v2518_v1 = vpop.permute.xlu1 %2517  ;;  %v2508_v33 = vpop.permute.xlu0 %2507  ;;  %v3227_v41 = vmax.f32 %v3225_v60, %v3226_v35  ;;  %v3240_v57 = vrot.slane %v3239_v59, 1  ;;  %v3246_v58 = vmax.f32 %v3244_v3, %v3245_v15  ;;  %v2355_v53 = vadd.f32 %v2323_v42, %v2094_v61  ;;  %3847 = vmatpush.msrb.mxu0 %v5341_v32  ;;  %3598 = vmatpush.msrb.mxu1 %v3477_v62  ;;  %v7744_v60 = vld [vmem:[%s8423_s2] ss:$0 sm:$0xff] }
 0x35f   : > { %v2586_v22 = vmul.f32 %v7360_v56, %v2518_v1  ;;  %v3234_v9 = vmax.f32 %v3232_v16, %v3233_v26  ;;  %v2653_v37 = vadd.f32 %v7371_v46, %v2617_v13  ;;  %v2584_v31 = vmul.f32 %v7724_v50, %v2508_v33  ;;  %v5340_v56 = vld [vmem:[%s8424_s3 + $0x80] sm:$0xff]  ;;  %v7789_v61 = vpop.permute.xlu2 %2281 }
 0x360   : > { %v3241_v5 = vmax.f32 %v3239_v59, %v3240_v57  ;;  %v3247_v40 = vrot.slane %v3246_v58, 1  ;;  %v3441_v44 = vsel %vm3395_vm5, %v3227_v41, %v3440_v18  ;;  %v1548_v46 = vmul.f32 %v7570_v12, %v8779_v63  ;;  %3848 = vmatpush.msrb.mxu0 %v5340_v56  ;;  %v8781_v59 = vld [vmem:[#allocation33_spill] sm:$0xff] }
 0x361   : > { %v2618_v4 = vadd.f32 %v2586_v22, %v2357_v14  ;;  %v3442_v2 = vsel %vm3397_vm6, %v3234_v9, %v3441_v44  ;;  %v2685_v19 = vmax.f32 %v2653_v37, 0.0  ;;  %v2616_v17 = vadd.f32 %v2584_v31, %v2355_v53 }
 0x362   : > { %v3248_v10 = vmax.f32 %v3246_v58, %v3247_v40  ;;  %v3443_v34 = vsel %vm3399_vm7, %v3241_v5, %v3442_v2  ;;  %v1319_v3 = vadd.f32 %v7577_v24, %v7546_v11  ;;  %v7762_v35 = vadd.f32 %v7550_v0, %v7527_v47 }
 0x363   : > { %v2654_v36 = vadd.f32 %v7744_v60, %v2618_v4  ;;  %v2727_v23 = vsel %vm2695_vm0, %v2685_v19, -inf  ;;  %v2652_v16 = vadd.f32 %v7744_v60, %v2616_v17  ;;  %v7754_v42 = vld [vmem:[#allocation2 + $0x51] sm:$0xff]  ;;  %v7776_v15 = vmul.f32 %v7772_v27, %v8781_v59 }
 0x364   : > { %v7756_v49 = vld [vmem:[#allocation2 + $0x52] sm:$0xff]  ;;  %v3444_v11 = vsel %vm3401_vm8, %v3248_v10, %v3443_v34  ;;  %v2728_v24 = vmax.f32 %v2726_v28, %v2727_v23  ;;  %5305 = vmatmul.msk.f32.gmra.mxu0 %vm2695_vm0, %v7754_v42  ;;  %v1317_v47 = vadd.f32 %v7555_v43, %v7540_v29  ;;  %v7780_v0 = vadd.f32 %v1548_v46, %v1319_v3 }
 0x365   : > { %v7758_v18 = vld [vmem:[#allocation2 + $0x50] sm:$0xff]  ;;  %v2686_v52 = vmax.f32 %v2654_v36, 0.0  ;;  %5325 = vmatmul.msk.f32.gmra.mxu2 %vm2695_vm0, %v7756_v49  ;;  %3467 = vst.msk [vmem:[#allocation2 + $0x71] sm:$0xff] %vm2695_vm0, %v3444_v11  ;;  %v2684_v30 = vmax.f32 %v2652_v16, 0.0  ;;  %v8782_v29 = vld [vmem:[#allocation123_spill] sm:$0xff] }
 0x366   : > { %5336 = vmatmul.msk.f32.gmra.mxu3 %vm2695_vm0, %v7758_v18  ;;  %v7785_v26 = vpop.permute.xlu1 %2020  ;;  %v7787_v54 = vpop.permute.xlu0 %1768  ;;  %v2790_v13 = vrot.slane %v2728_v24, 2  ;;  %v2791_v1 = vrot.slane %v2728_v24, 4  ;;  %v2792_v14 = vrot.slane %v2728_v24, 6  ;;  %v3137_v33 = vsel %vm2856_vm1, %v2728_v24, -inf }
 0x367   : > { %v1546_v43 = vmul.f32 %v7570_v12, %v8782_v29  ;;  %v3138_v38 = vrot.slane %v3137_v33, 4  ;;  %v2730_v32 = vsel %vm2695_vm0, %v2686_v52, -inf  ;;  %v2729_v21 = vsel %vm2695_vm0, %v2684_v30, -inf }
 0x368   : > { %v3144_v41 = vsel %vm2856_vm1, %v2790_v13, -inf  ;;  %v3151_v57 = vsel %vm2856_vm1, %v2791_v1, -inf  ;;  %v3158_v58 = vsel %vm2856_vm1, %v2792_v14, -inf  ;;  %v2731_v22 = vmax.f32 %v2729_v21, %v2730_v32  ;;  %v7811_v14 = vpop.permute.xlu2 %2035 }
 0x369   : > { %v3139_v62 = vmax.f32 %v3137_v33, %v3138_v38  ;;  %v3145_v9 = vrot.slane %v3144_v41, 4  ;;  %v3152_v53 = vrot.slane %v3151_v57, 4  ;;  %v3159_v37 = vrot.slane %v3158_v58, 4 }
 0x36a   : > { %v2793_v31 = vrot.slane %v2731_v22, 2  ;;  %v2794_v56 = vrot.slane %v2731_v22, 4  ;;  %v2795_v5 = vrot.slane %v2731_v22, 6  ;;  %v3165_v40 = vsel %vm2856_vm1, %v2731_v22, -inf }
 0x36b   : > { %v3140_v44 = vrot.slane %v3139_v62, 2  ;;  %v3146_v4 = vmax.f32 %v3144_v41, %v3145_v9  ;;  %v3153_v63 = vmax.f32 %v3151_v57, %v3152_v53  ;;  %v3160_v46 = vmax.f32 %v3158_v58, %v3159_v37  ;;  %v3469_v37 = vld [vmem:[#allocation2] sm:$0xff] }
 0x36c   : > { %v3166_v2 = vrot.slane %v3165_v40, 4  ;;  %v3172_v19 = vsel %vm2856_vm1, %v2793_v31, -inf  ;;  %v3179_v17 = vsel %vm2856_vm1, %v2794_v56, -inf  ;;  %v3186_v6 = vsel %vm2856_vm1, %v2795_v5, -inf  ;;  %v7803_v51 = vld [vmem:[#allocation2 + $0x71] sm:$0xff] }
 0x36d   : > { %v3141_v10 = vmax.f32 %v3139_v62, %v3140_v44  ;;  %v3147_v34 = vrot.slane %v3146_v4, 2  ;;  %v3154_v36 = vrot.slane %v3153_v63, 2  ;;  %v3161_v3 = vrot.slane %v3160_v46, 2  ;;  %5307 = vmatmul.msk.f32.vlgmr.msra.gmra.mxu1 %vm2695_vm0, %v7803_v51 }
 0x36e   : > { %v7807_v28 = vpop.permute.xlu1 %1773  ;;  %v7809_v23 = vpop.permute.xlu0 %1763  ;;  %v3167_v16 = vmax.f32 %v3165_v40, %v3166_v2  ;;  %v3173_v11 = vrot.slane %v3172_v19, 4  ;;  %v3180_v24 = vrot.slane %v3179_v17, 4  ;;  %v3187_v52 = vrot.slane %v3186_v6, 4 }
 0x36f   : > { %v3142_v59 = vrot.slane %v3141_v10, 1  ;;  %v3148_v30 = vmax.f32 %v3146_v4, %v3147_v34  ;;  %v3155_v13 = vmax.f32 %v3153_v63, %v3154_v36  ;;  %v3162_v1 = vmax.f32 %v3160_v46, %v3161_v3  ;;  %v8783_v3 = vld [vmem:[#allocation42_spill] sm:$0xff] }
 0x370   : > { %v3168_v33 = vrot.slane %v3167_v16, 2  ;;  %v3174_v29 = vmax.f32 %v3172_v19, %v3173_v11  ;;  %v3181_v38 = vmax.f32 %v3179_v17, %v3180_v24  ;;  %v3188_v32 = vmax.f32 %v3186_v6, %v3187_v52 }
 0x371   : > { %v1578_v21 = vadd.f32 %v1546_v43, %v1317_v47  ;;  %v3149_v41 = vrot.slane %v3148_v30, 1  ;;  %v3156_v57 = vrot.slane %v3155_v13, 1  ;;  %v3163_v58 = vrot.slane %v3162_v1, 1 }
 0x372   : > { %v3169_v22 = vmax.f32 %v3167_v16, %v3168_v33  ;;  %v3175_v62 = vrot.slane %v3174_v29, 2  ;;  %v3182_v9 = vrot.slane %v3181_v38, 2  ;;  %v3189_v53 = vrot.slane %v3188_v32, 2  ;;  %v8784_v33 = vld [vmem:[#allocation122_spill] sm:$0xff] }
 0x373   : > { %v1807_v31 = vmul.f32 %v7585_v8, %v7670_v25  ;;  %v3143_v56 = vmax.f32 %v3141_v10, %v3142_v59  ;;  %v3150_v5 = vmax.f32 %v3148_v30, %v3149_v41  ;;  %v3157_v40 = vmax.f32 %v3155_v13, %v3156_v57 }
 0x374   : > { %v3170_v44 = vrot.slane %v3169_v22, 1  ;;  %v3176_v4 = vmax.f32 %v3174_v29, %v3175_v62  ;;  %v3183_v63 = vmax.f32 %v3181_v38, %v3182_v9  ;;  %v3190_v46 = vmax.f32 %v3188_v32, %v3189_v53 }
 0x375   : > { %v3164_v2 = vmax.f32 %v3162_v1, %v3163_v58  ;;  %v3431_v47 = vsel %vm3389_vm2, %v3150_v5, %v3143_v56  ;;  %v2069_v43 = vmul.f32 %v7679_v39, %v7785_v26  ;;  %v1809_v19 = vmul.f32 %v7585_v8, %v7787_v54  ;;  %5308 = vmatmul.msk.f32.vlgmr.msrb.gmra.mxu1 %vm2695_vm0, %v3469_v37  ;;  %v3470_v37 = vld [vmem:[#allocation2 + $0x10] sm:$0xff] }
 0x376   : > { %v2026_v17 = vpop.permute.xlu1 %2025  ;;  %v2292_v25 = vpop.permute.xlu0 %2291  ;;  %v3432_v6 = vsel %vm3391_vm3, %v3157_v40, %v3431_v47  ;;  %v3171_v10 = vmax.f32 %v3169_v22, %v3170_v44  ;;  %v3177_v34 = vrot.slane %v3176_v4, 1  ;;  %v3184_v36 = vrot.slane %v3183_v63, 1 }
 0x377   : > { %v1288_v16 = vmul.f32 %v7772_v27, %v8783_v3  ;;  %v1839_v11 = vadd.f32 %v1807_v31, %v1578_v21  ;;  %v3433_v24 = vsel %vm3393_vm4, %v3164_v2, %v3432_v6  ;;  %v3191_v52 = vrot.slane %v3190_v46, 1  ;;  %v2287_v21 = vpop.permute.xlu2 %2286 }
 0x378   : > { %v3178_v26 = vmax.f32 %v3176_v4, %v3177_v34  ;;  %v3185_v59 = vmax.f32 %v3183_v63, %v3184_v36  ;;  %v3434_v54 = vsel %vm3395_vm5, %v3171_v10, %v3433_v24  ;;  %v1841_v30 = vadd.f32 %v1809_v19, %v7780_v0  ;;  %v7875_v36 = vld [vmem:[#allocation2 + $0x20] sm:$0xff] }
 0x379   : > { %v1058_v13 = vadd.f32 %v7738_v20, %v7538_v45  ;;  %v1318_v1 = vadd.f32 %v7776_v15, %v7762_v35  ;;  %v1547_v29 = vmul.f32 %v7570_v12, %v8784_v33  ;;  %v2071_v27 = vmul.f32 %v7679_v39, %v7700_v48  ;;  %v5367_v45 = vld [vmem:[%s8424_s3 + $0xd8] sm:$0xff]  ;;  %v8785_v48 = vld [vmem:[#allocation24_spill] sm:$0xff] }
 0x37a   : > { %v3192_v38 = vmax.f32 %v3190_v46, %v3191_v52  ;;  %v3435_v32 = vsel %vm3397_vm6, %v3178_v26, %v3434_v54  ;;  %v2101_v41 = vadd.f32 %v2069_v43, %v1839_v11  ;;  %v2332_v57 = vmul.f32 %v7693_v55, %v2292_v25  ;;  %v5379_v20 = vld [vmem:[%s8424_s3 + $0xf8] sm:$0xff]  ;;  %4018 = vmatpush.msrb.mxu2 %v5367_v45  ;;  %v5377_v45 = vld [vmem:[%s8424_s3 + $0xe8] sm:$0xff] }
 0x37b   : > { %v5355_v35 = vld [vmem:[%s8424_s3 + $0xb8] sm:$0xff]  ;;  %v1549_v15 = vmul.f32 %v7570_v12, %v8785_v48  ;;  %v3436_v0 = vsel %vm3399_vm7, %v3185_v59, %v3435_v32  ;;  %v1808_v58 = vmul.f32 %v7585_v8, %v7809_v23  ;;  %4104 = vmatpush.msrb.mxu3 %v5379_v20  ;;  %v1320_v22 = vadd.f32 %v1288_v16, %v1058_v13  ;;  %v5354_v32 = vld [vmem:[%s8424_s3 + $0xb0] sm:$0xff]  ;;  %v5353_v20 = vld [vmem:[%s8424_s3 + $0xa8] sm:$0xff] }
 0x37c   : > { %v2330_v62 = vmul.f32 %v7693_v55, %v7789_v61  ;;  %v3437_v9 = vsel %vm3401_vm8, %v3192_v38, %v3436_v0  ;;  %v2103_v53 = vadd.f32 %v2071_v27, %v1841_v30  ;;  %3931 = vmatpush.msra.mxu1 %v5355_v35  ;;  %v1579_v31 = vadd.f32 %v1547_v29, %v1318_v1  ;;  %v5366_v61 = vld [vmem:[%s8424_s3 + $0xd0] sm:$0xff]  ;;  %v5391_v27 = vld [vmem:[%s8424_s3 + $0x118] sm:$0xff] }
 0x37d   : > { %3466 = vst.msk [vmem:[#allocation2 + $0x61] sm:$0xff] %vm2695_vm0, %v3437_v9  ;;  %v1810_v12 = vmul.f32 %v7585_v8, %v7807_v28  ;;  %v2070_v56 = vmul.f32 %v7679_v39, %v2026_v17  ;;  %5309 = vmatmul.msk.f32.gmra.mxu1 %vm2695_vm0, %v3470_v37  ;;  %4019 = vmatpush.msrb.mxu2 %v5366_v61  ;;  %v5365_v8 = vld [vmem:[%s8424_s3 + $0xc8] sm:$0xff]  ;;  %v5364_v17 = vld [vmem:[%s8424_s3 + $0xc0] sm:$0xff]  ;;  %v5378_v38 = vld [vmem:[%s8424_s3 + $0xf0] sm:$0xff] }
 0x37e   : > { %v2553_v23 = vpop.permute.xlu1 %2552  ;;  %v2543_v5 = vpop.permute.xlu0 %2542  ;;  %v2364_v40 = vadd.f32 %v2332_v57, %v2103_v53  ;;  %v2362_v4 = vadd.f32 %v2330_v62, %v2101_v41  ;;  %v1581_v46 = vadd.f32 %v1549_v15, %v1320_v22  ;;  %v1840_v2 = vadd.f32 %v1808_v58, %v1579_v31  ;;  %4190 = vmatpush.msra.mxu0 %v5391_v27 }
 0x37f   : > { %v2593_v44 = vmul.f32 %v7724_v50, %v2553_v23  ;;  %v2591_v63 = vmul.f32 %v7724_v50, %v2543_v5  ;;  %4020 = vmatpush.msrb.mxu2 %v5365_v8  ;;  %v2072_v10 = vmul.f32 %v7679_v39, %v7811_v14  ;;  %v2331_v34 = vmul.f32 %v7693_v55, %v2287_v21  ;;  %v2558_v3 = vpop.permute.xlu2 %2557  ;;  %v7919_v23 = vld [vmem:[#allocation2 + $0x30] sm:$0xff] }
 0x380   : > { %v1842_v43 = vadd.f32 %v1810_v12, %v1581_v46  ;;  %v2102_v19 = vadd.f32 %v2070_v56, %v1840_v2  ;;  %v2594_v21 = vmul.f32 %v7724_v50, %v2558_v3  ;;  %4105 = vmatpush.msrb.mxu3 %v5378_v38  ;;  %3932 = vmatpush.msra.mxu1 %v5354_v32  ;;  %v3796_v5 = vld [vmem:[#allocation2 + $0x11] sm:$0xff] }
 0x381   : > { %v2625_v28 = vadd.f32 %v2593_v44, %v2364_v40  ;;  %v2623_v47 = vadd.f32 %v2591_v63, %v2362_v4  ;;  %4021 = vmatpush.msrb.mxu2 %v5364_v17  ;;  %v7924_v44 = vld [vmem:[#allocation2 + $0x72] sm:$0xff] }
 0x382   : > { %v2363_v14 = vadd.f32 %v2331_v34, %v2102_v19  ;;  %v2104_v59 = vadd.f32 %v2072_v10, %v1842_v43  ;;  %4106 = vmatpush.msrb.mxu3 %v5377_v45  ;;  %3933 = vmatpush.msra.mxu1 %v5353_v20  ;;  %v7926_v4 = vld [vmem:[#allocation2 + $0x70] sm:$0xff]  ;;  %v5376_v38 = vld [vmem:[%s8424_s3 + $0xe0] sm:$0xff] }
 0x383   : > { %v2661_v25 = vadd.f32 %v7744_v60, %v2625_v28  ;;  %v2659_v6 = vadd.f32 %v7744_v60, %v2623_v47  ;;  %v5352_v47 = vld [vmem:[%s8424_s3 + $0xa0] sm:$0xff] }
 0x384   : > { %v7877_v24 = vld [vmem:[#allocation2 + $0x61] sm:$0xff]  ;;  %3934 = vmatpush.msra.mxu1 %v5352_v47  ;;  %4107 = vmatpush.msrb.mxu3 %v5376_v38 }
 0x385   : > { %v2693_v16 = vmax.f32 %v2661_v25, 0.0  ;;  %v2691_v11 = vmax.f32 %v2659_v6, 0.0  ;;  %v7879_v52 = vld [vmem:[#allocation2 + $0x62] sm:$0xff]  ;;  %5306 = vmatmul.msk.f32.gmra.mxu0 %vm2695_vm0, %v7877_v24  ;;  %5310 = vmatmul.msk.f32.gmra.mxu1 %vm2695_vm0, %v7875_v36 }
 0x386   : > { %v7881_v26 = vld [vmem:[#allocation2 + $0x60] sm:$0xff]  ;;  %v2548_v39 = vpop.permute.xlu1 %2547  ;;  %v2297_v54 = vpop.permute.xlu0 %2296  ;;  %5326 = vmatmul.msk.f32.gmra.mxu2 %vm2695_vm0, %v7879_v52 }
 0x387   : > { %v2739_v30 = vsel %vm2695_vm0, %v2693_v16, -inf  ;;  %v2738_v13 = vsel %vm2695_vm0, %v2691_v11, -inf  ;;  %5337 = vmatmul.msk.f32.gmra.mxu3 %vm2695_vm0, %v7881_v26  ;;  %v2592_v1 = vmul.f32 %v7724_v50, %v2548_v39  ;;  %v2333_v33 = vmul.f32 %v7693_v55, %v2297_v54  ;;  %v5390_v55 = vld [vmem:[%s8424_s3 + $0x110] sm:$0xff] }
 0x388   : > { %v2740_v29 = vmax.f32 %v2738_v13, %v2739_v30  ;;  %4191 = vmatpush.msra.mxu0 %v5390_v55 }
 0x389   : > { %v2624_v41 = vadd.f32 %v2592_v1, %v2363_v14  ;;  %v2365_v57 = vadd.f32 %v2333_v33, %v2104_v59  ;;  %v7941_v14 = vld [vmem:[#allocation2 + $0x21] sm:$0xff] }
 0x38a   : > { %v2802_v35 = vrot.slane %v2740_v29, 2  ;;  %v2803_v48 = vrot.slane %v2740_v29, 4  ;;  %v2804_v15 = vrot.slane %v2740_v29, 6  ;;  %v3249_v50 = vsel %vm2856_vm1, %v2740_v29, -inf  ;;  %v5570_v1 = vld [vmem:[#allocation2 + $0x40] sm:$0xff] }
 0x38b   : > { %v3250_v0 = vrot.slane %v3249_v50, 4  ;;  %v2660_v58 = vadd.f32 %v7744_v60, %v2624_v41  ;;  %v2626_v22 = vadd.f32 %v2594_v21, %v2365_v57 }
 0x38c   : > { %v3256_v62 = vsel %vm2856_vm1, %v2802_v35, -inf  ;;  %v3263_v9 = vsel %vm2856_vm1, %v2803_v48, -inf  ;;  %v3270_v53 = vsel %vm2856_vm1, %v2804_v15, -inf }
 0x38d   : > { %v3251_v37 = vmax.f32 %v3249_v50, %v3250_v0  ;;  %v3257_v31 = vrot.slane %v3256_v62, 4  ;;  %v3264_v12 = vrot.slane %v3263_v9, 4  ;;  %v3271_v56 = vrot.slane %v3270_v53, 4  ;;  %5311 = vmatmul.msk.f32.gmra.mxu1 %vm2695_vm0, %v7919_v23  ;;  %5344 = vmatmul.msk.f32.vlgmr.msrb.gmra.mxu0 %vm2695_vm0, %v3796_v5 }
 0x38e   : > { %v2692_v61 = vmax.f32 %v2660_v58, 0.0  ;;  %v2662_v40 = vadd.f32 %v7744_v60, %v2626_v22  ;;  %5327 = vmatmul.msk.f32.gmra.mxu2 %vm2695_vm0, %v7924_v44  ;;  %v5389_v60 = vld [vmem:[%s8424_s3 + $0x108] sm:$0xff] }
 0x38f   : > { %v3252_v63 = vrot.slane %v3251_v37, 2  ;;  %v3258_v46 = vmax.f32 %v3256_v62, %v3257_v31  ;;  %v3265_v2 = vmax.f32 %v3263_v9, %v3264_v12  ;;  %v3272_v8 = vmax.f32 %v3270_v53, %v3271_v56  ;;  %5338 = vmatmul.msk.f32.gmra.mxu3 %vm2695_vm0, %v7926_v4  ;;  %4192 = vmatpush.msra.mxu0 %v5389_v60  ;;  %v3798_v31 = vld [vmem:[#allocation2 + $0x31] sm:$0xff] }
 0x390   : > { %v2694_v28 = vmax.f32 %v2662_v40, 0.0  ;;  %v2741_v3 = vsel %vm2695_vm0, %v2692_v61, -inf }
 0x391   : > { %v3253_v43 = vmax.f32 %v3251_v37, %v3252_v63  ;;  %v3259_v19 = vrot.slane %v3258_v46, 2  ;;  %v3266_v17 = vrot.slane %v3265_v2, 2  ;;  %v3273_v34 = vrot.slane %v3272_v8, 2  ;;  %v5388_v63 = vld [vmem:[%s8424_s3 + $0x100] sm:$0xff] }
 0x392   : > { %v2742_v25 = vsel %vm2695_vm0, %v2694_v28, -inf  ;;  %4193 = vmatpush.msra.mxu0 %v5388_v63 }
 0x393   : > { %v3260_v6 = vmax.f32 %v3258_v46, %v3259_v19  ;;  %v3267_v10 = vmax.f32 %v3265_v2, %v3266_v17  ;;  %v2743_v16 = vmax.f32 %v2741_v3, %v2742_v25  ;;  %v3254_v11 = vrot.slane %v3253_v43, 1 }
 0x394   : > { %v3274_v29 = vmax.f32 %v3272_v8, %v3273_v34  ;;  %v5571_v34 = vld [vmem:[#allocation2 + $0x41] sm:$0xff] }
 0x395   : > { %v3261_v39 = vrot.slane %v3260_v6, 1  ;;  %v2805_v59 = vrot.slane %v2743_v16, 2  ;;  %v2806_v54 = vrot.slane %v2743_v16, 4  ;;  %v2807_v30 = vrot.slane %v2743_v16, 6  ;;  %5312 = vmatmul.msk.f32.gmra.mxu1 %vm2695_vm0, %v5570_v1  ;;  %5345 = vmatmul.msk.f32.gmra.mxu0 %vm2695_vm0, %v7941_v14 }
 0x396   : > { %v3277_v13 = vsel %vm2856_vm1, %v2743_v16, -inf  ;;  %v3268_v33 = vrot.slane %v3267_v10, 1  ;;  %5368 = vmatmul.msk.f32.vlgmr.msrb.gmra.mxu2 %vm2695_vm0, %v7875_v36  ;;  %v3255_v35 = vmax.f32 %v3253_v43, %v3254_v11  ;;  %v3275_v58 = vrot.slane %v3274_v29, 1  ;;  %v3882_v11 = vld [vmem:[#allocation2 + $0x12] sm:$0xff] }
 0x397   : > { %v3278_v27 = vrot.slane %v3277_v13, 4  ;;  %v3262_v32 = vmax.f32 %v3260_v6, %v3261_v39  ;;  %v3284_v21 = vsel %vm2856_vm1, %v2805_v59, -inf  ;;  %v3291_v41 = vsel %vm2856_vm1, %v2806_v54, -inf  ;;  %v3883_v39 = vld [vmem:[#allocation2 + $0x22] sm:$0xff]  ;;  %v3884_v59 = vld [vmem:[#allocation2 + $0x32] sm:$0xff] }
 0x398   : > { %v3298_v57 = vsel %vm2856_vm1, %v2807_v30, -inf  ;;  %v3285_v45 = vrot.slane %v3284_v21, 4  ;;  %v3292_v20 = vrot.slane %v3291_v41, 4  ;;  %v3269_v15 = vmax.f32 %v3267_v10, %v3268_v33  ;;  %v3885_v54 = vld [vmem:[#allocation2 + $0x42] sm:$0xff]  ;;  %v4062_v33 = vld [vmem:[#allocation2 + $0x91] sm:$0xff] }
 0x399   : > { %v3279_v55 = vmax.f32 %v3277_v13, %v3278_v27  ;;  %v3299_v48 = vrot.slane %v3298_v57, 4  ;;  %v3445_v22 = vsel %vm3389_vm2, %v3262_v32, %v3255_v35  ;;  %v3276_v46 = vmax.f32 %v3274_v29, %v3275_v58  ;;  %v4148_v35 = vld [vmem:[#allocation2 + $0x92] sm:$0xff] }
 0x39a   : > { %v3286_v36 = vmax.f32 %v3284_v21, %v3285_v45  ;;  %v3293_v0 = vmax.f32 %v3291_v41, %v3292_v20  ;;  %v3446_v56 = vsel %vm3391_vm3, %v3269_v15, %v3445_v22 }
 0x39b   : > { %v3280_v50 = vrot.slane %v3279_v55, 2  ;;  %v3300_v62 = vmax.f32 %v3298_v57, %v3299_v48  ;;  %v3447_v47 = vsel %vm3393_vm4, %v3276_v46, %v3446_v56 }
 0x39c   : > { %v3287_v53 = vrot.slane %v3286_v36, 2  ;;  %v3294_v37 = vrot.slane %v3293_v0, 2 }
 0x39d   : > { %v3281_v9 = vmax.f32 %v3279_v55, %v3280_v50  ;;  %v3301_v12 = vrot.slane %v3300_v62, 2  ;;  %5313 = vmatmul.msk.f32.gmra.mxu1 %vm2695_vm0, %v7758_v18  ;;  %5346 = vmatmul.msk.f32.gmra.mxu0 %vm2695_vm0, %v3798_v31 }
 0x39e   : > { %v3288_v61 = vmax.f32 %v3286_v36, %v3287_v53  ;;  %v3295_v40 = vmax.f32 %v3293_v0, %v3294_v37  ;;  %5369 = vmatmul.msk.f32.gmra.mxu2 %vm2695_vm0, %v7919_v23 }
 0x39f   : > { %v3282_v5 = vrot.slane %v3281_v9, 1  ;;  %v3302_v2 = vmax.f32 %v3300_v62, %v3301_v12 }
 0x3a0   : > { %v3289_v60 = vrot.slane %v3288_v61, 1  ;;  %v3296_v28 = vrot.slane %v3295_v40, 1 }
 0x3a1   : > { %v3283_v8 = vmax.f32 %v3281_v9, %v3282_v5  ;;  %v3303_v43 = vrot.slane %v3302_v2, 1 }
 0x3a2   : > { %v3290_v19 = vmax.f32 %v3288_v61, %v3289_v60  ;;  %v3297_v17 = vmax.f32 %v3295_v40, %v3296_v28 }
 0x3a3   : > { %v3448_v25 = vsel %vm3395_vm5, %v3283_v8, %v3447_v47  ;;  %v3304_v6 = vmax.f32 %v3302_v2, %v3303_v43 }
 0x3a4   : > { %v3449_v23 = vsel %vm3397_vm6, %v3290_v19, %v3448_v25 }
 0x3a5   : > { %v3450_v10 = vsel %vm3399_vm7, %v3297_v17, %v3449_v23  ;;  %5314 = vmatmul.msk.f32.gmra.mxu1 %vm2695_vm0, %v7881_v26  ;;  %5347 = vmatmul.msk.f32.gmra.mxu0 %vm2695_vm0, %v5571_v34 }
 0x3a6   : > { %v3451_v3 = vsel %vm3401_vm8, %v3304_v6, %v3450_v10  ;;  %5370 = vmatmul.msk.f32.gmra.mxu2 %vm2695_vm0, %v5570_v1 }
 0x3a7   : > { %3468 = vst.msk [vmem:[#allocation2 + $0x81] sm:$0xff] %vm2695_vm0, %v3451_v3 }
 0x3ad   : > { %5315 = vmatmul.msk.f32.gmra.mxu1 %vm2695_vm0, %v7926_v4  ;;  %5348 = vmatmul.msk.f32.gmra.mxu0 %vm2695_vm0, %v7754_v42 }
 0x3ae   : > { %5371 = vmatmul.msk.f32.gmra.mxu2 %vm2695_vm0, %v7758_v18  ;;  %v3717_v16 = vld [vmem:[#allocation2 + $0x80] sm:$0xff] }
 0x3af   : > { %5339 = vmatmul.msk.f32.gmra.mxu3 %vm2695_vm0, %v3717_v16  ;;  %v3803_v18 = vld [vmem:[#allocation2 + $0x81] sm:$0xff] }
 0x3b0   : > { %v3889_v1 = vld [vmem:[#allocation2 + $0x82] sm:$0xff] }
 0x3b5   : > { %5349 = vmatmul.msk.f32.gmra.mxu0 %vm2695_vm0, %v7877_v24  ;;  %5356 = vmatmul.msk.f32.vlgmr.msra.gmra.mxu1 %vm2695_vm0, %v3882_v11 }
 0x3b6   : > { %5372 = vmatmul.msk.f32.gmra.mxu2 %vm2695_vm0, %v7881_v26  ;;  %v4057_v26 = vld [vmem:[#allocation2 + $0x41] sm:$0xff] }
 0x3b7   : > { %5380 = vmatmul.msk.f32.vlgmr.msrb.gmra.mxu3 %vm2695_vm0, %v7941_v14  ;;  %v3976_v14 = vld [vmem:[#allocation2 + $0x90] sm:$0xff] }
 0x3bd   : > { %5350 = vmatmul.msk.f32.gmra.mxu0 %vm2695_vm0, %v7803_v51  ;;  %5357 = vmatmul.msk.f32.gmra.mxu1 %vm2695_vm0, %v3883_v39 }
 0x3be   : > { %5373 = vmatmul.msk.f32.gmra.mxu2 %vm2695_vm0, %v7926_v4  ;;  %v3535_v4 = vpop.f32.mrf.mxu0 }
 0x3bf   : > { %5381 = vmatmul.msk.f32.gmra.mxu3 %vm2695_vm0, %v3798_v31 }
 0x3c5   : > { %5351 = vmatmul.msk.f32.gmra.mxu0 %vm2695_vm0, %v3803_v18  ;;  %5358 = vmatmul.msk.f32.gmra.mxu1 %vm2695_vm0, %v3884_v59 }
 0x3c6   : > { %5374 = vmatmul.msk.f32.gmra.mxu2 %vm2695_vm0, %v3717_v16  ;;  %v8009_v30 = vpop.f32.mrf.mxu0 }
 0x3c7   : > { %5382 = vmatmul.msk.f32.gmra.mxu3 %vm2695_vm0, %v4057_v26 }
 0x3cd   : > { %5359 = vmatmul.msk.f32.gmra.mxu1 %vm2695_vm0, %v3885_v54  ;;  %5392 = vmatmul.msk.f32.vlgmr.msra.gmra.mxu0 %vm2695_vm0, %v3883_v39 }
 0x3ce   : > { %5375 = vmatmul.msk.f32.gmra.mxu2 %vm2695_vm0, %v3976_v14 }
 0x3cf   : > { %5383 = vmatmul.msk.f32.gmra.mxu3 %vm2695_vm0, %v7754_v42  ;;  %v3541_v42 = vpop.f32.mrf.mxu0 }
 0x3d5   : > { %5360 = vmatmul.msk.f32.gmra.mxu1 %vm2695_vm0, %v7756_v49  ;;  %5393 = vmatmul.msk.f32.gmra.mxu0 %vm2695_vm0, %v3884_v59 }
 0x3d7   : > { %5384 = vmatmul.msk.f32.gmra.mxu3 %vm2695_vm0, %v7877_v24  ;;  %v8021_v24 = vpop.f32.mrf.mxu0 }
 0x3dd   : > { %5361 = vmatmul.msk.f32.gmra.mxu1 %vm2695_vm0, %v7879_v52  ;;  %5394 = vmatmul.msk.f32.gmra.mxu0 %vm2695_vm0, %v3885_v54 }
 0x3df   : > { %5385 = vmatmul.msk.f32.gmra.mxu3 %vm2695_vm0, %v7803_v51  ;;  %v3678_v51 = vpop.f32.mrf.mxu2  ;;  %v3547_v29 = vpop.f32.mrf.mxu0 }
 0x3e5   : > { %5362 = vmatmul.msk.f32.gmra.mxu1 %vm2695_vm0, %v7924_v44  ;;  %5395 = vmatmul.msk.f32.gmra.mxu0 %vm2695_vm0, %v7756_v49  ;;  %v3764_v49 = vpop.f32.mrf.mxu3 }
 0x3e7   : > { %5386 = vmatmul.msk.f32.gmra.mxu3 %vm2695_vm0, %v3803_v18  ;;  %v8031_v41 = vpop.f32.mrf.mxu0  ;;  %v3681_v55 = vpop.f32.mrf.mxu2 }
 0x3ea   : > { %v8023_v13 = vpop.f32.mrf.mxu1 }
 0x3ed   : > { %5363 = vmatmul.msk.f32.gmra.mxu1 %vm2695_vm0, %v3889_v1  ;;  %5396 = vmatmul.msk.f32.gmra.mxu0 %vm2695_vm0, %v7879_v52  ;;  %v3767_v45 = vpop.f32.mrf.mxu3 }
 0x3ef   : > { %5387 = vmatmul.msk.f32.gmra.mxu3 %vm2695_vm0, %v4062_v33  ;;  %v3684_v48 = vpop.f32.mrf.mxu2 }
 0x3f2   : > { %v3600_v27 = vpop.f32.mrf.mxu1 }
 0x3f3   : > { %v3601_v38 = vadd.f32 %v3600_v27, %v3535_v4 }
 0x3f5   : > { %v3702_v32 = vadd.f32 %v3678_v51, %v3601_v38  ;;  %5397 = vmatmul.msk.f32.gmra.mxu0 %vm2695_vm0, %v7924_v44  ;;  %v3770_v50 = vpop.f32.mrf.mxu3 }
 0x3f7   : > { %v3788_v21 = vadd.f32 %v3764_v49, %v3702_v32  ;;  %v8035_v22 = vpop.f32.mrf.mxu2 }
 0x3fa   : > { %v3603_v57 = vpop.f32.mrf.mxu1 }
 0x3fb   : > { %v3604_v54 = vadd.f32 %v3603_v57, %v8009_v30 }
 0x3fd   : > { %5398 = vmatmul.msk.f32.gmra.mxu0 %vm2695_vm0, %v3889_v1  ;;  %v8037_v9 = vpop.f32.mrf.mxu3  ;;  %v3703_v33 = vadd.f32 %v3681_v55, %v3604_v54  ;;  %v8066_v55 = vld [vmem:[%s8425_s4] ss:$0 sm:$0xff]  ;;  %v5406_v54 = vld [vmem:[%s8426_s5 + $0x70] sm:$0xff] }
 0x3ff   : > { %v3690_v31 = vpop.f32.mrf.mxu2  ;;  %v3789_v27 = vadd.f32 %v3767_v45, %v3703_v33 }
 0x402   : > { %v3553_v52 = vpop.f32.mrf.mxu0  ;;  %v3606_v20 = vpop.f32.mrf.mxu1 }
 0x403   : > { %v3607_v15 = vadd.f32 %v3606_v20, %v3541_v42 }
 0x405   : > { %v3704_v36 = vadd.f32 %v3684_v48, %v3607_v15  ;;  %5399 = vmatmul.msk.f32.gmra.mxu0 %vm2695_vm0, %v4148_v35  ;;  %v3776_v56 = vpop.f32.mrf.mxu3 }
 0x407   : > { %v3790_v0 = vadd.f32 %v3770_v50, %v3704_v36  ;;  %v8041_v46 = vpop.f32.mrf.mxu2 }
 0x40a   : > { %v3609_v58 = vpop.f32.mrf.mxu1  ;;  %v3850_v44 = vpop.f32.mrf.mxu0 }
 0x40b   : > { %v3874_v62 = vadd.f32 %v3850_v44, %v3788_v21  ;;  %v3610_v45 = vadd.f32 %v3609_v58, %v8021_v24 }
 0x40d   : > { %v8043_v8 = vpop.f32.mrf.mxu3  ;;  %v3705_v36 = vadd.f32 %v8035_v22, %v3610_v45  ;;  %v5404_v45 = vld [vmem:[%s8426_s5 + $0x60] sm:$0xff] }
 0x40f   : > { %v3696_v47 = vpop.f32.mrf.mxu2  ;;  %v3791_v24 = vadd.f32 %v8037_v9, %v3705_v36 }
 0x412   : > { %v3612_v53 = vpop.f32.mrf.mxu1  ;;  %v3853_v37 = vpop.f32.mrf.mxu0 }
 0x413   : > { %v3613_v12 = vadd.f32 %v3612_v53, %v3547_v29  ;;  %v3875_v38 = vadd.f32 %v3853_v37, %v3789_v27  ;;  %v5405_v27 = vld [vmem:[%s8426_s5 + $0x68] sm:$0xff] }
 0x415   : > { %v3706_v5 = vadd.f32 %v3690_v31, %v3613_v12  ;;  %v3782_v17 = vpop.f32.mrf.mxu3  ;;  %v4458_v12 = vld [vmem:[#allocation3 + $0x1] sm:$0xf] }
 0x416   : > { %4475 = vst [vmem:[#allocation1] ss:$2 sm:$0xff] %v4458_v12 }
 0x417   : > { %v3792_v61 = vadd.f32 %v3776_v56, %v3706_v5  ;;  %v8049_v34 = vpop.f32.mrf.mxu2 }
 0x41a   : > { %v8039_v40 = vpop.f32.mrf.mxu1  ;;  %v3856_v63 = vpop.f32.mrf.mxu0 }
 0x41b   : > { %v3876_v2 = vadd.f32 %v3856_v63, %v3790_v0 }
 0x41f   : > { %v4023_v39 = vpop.f32.mrf.mxu2 }
 0x422   : > { %v3618_v60 = vpop.f32.mrf.mxu1  ;;  %v3859_v28 = vpop.f32.mrf.mxu0 }
 0x423   : > { %v3619_v43 = vadd.f32 %v3618_v60, %v3553_v52  ;;  %v3877_v56 = vadd.f32 %v3859_v28, %v3791_v24  ;;  %v5407_v28 = vld [vmem:[%s8426_s5 + $0x78] sm:$0xff] }
 0x424   : > { %4496 = vmatpush.msrb.mxu1 %v5407_v28 }
 0x425   : > { %v3708_v19 = vadd.f32 %v3696_v47, %v3619_v43 }
 0x426   : > { %4497 = vmatpush.msrb.mxu1 %v5406_v54 }
 0x427   : > { %v3794_v25 = vadd.f32 %v3782_v17, %v3708_v19  ;;  %v4026_v4 = vpop.f32.mrf.mxu2 }
 0x428   : > { %4498 = vmatpush.msrb.mxu1 %v5405_v27 }
 0x42a   : > { %v8045_v6 = vpop.f32.mrf.mxu1  ;;  %v3862_v23 = vpop.f32.mrf.mxu0  ;;  %4499 = vmatpush.msrb.mxu1 %v5404_v45 }
 0x42b   : > { %v8047_v10 = vadd.f32 %v3862_v23, %v3792_v61  ;;  %v3616_v23 = vadd.f32 %v8039_v40, %v8031_v41 }
 0x42f   : > { %v4029_v21 = vpop.f32.mrf.mxu2 }
 0x432   : > { %v8051_v3 = vpop.f32.mrf.mxu3  ;;  %v8053_v16 = vpop.f32.mrf.mxu0 }
 0x433   : > { %v3936_v11 = vpop.f32.mrf.mxu1 }
 0x434   : > { %v3960_v51 = vadd.f32 %v3936_v11, %v3874_v62 }
 0x436   : > { %v4047_v49 = vadd.f32 %v4023_v39, %v3960_v51 }
 0x437   : > { %v4032_v62 = vpop.f32.mrf.mxu2 }
 0x43a   : > { %v3868_v18 = vpop.f32.mrf.mxu0  ;;  %v4109_v59 = vpop.f32.mrf.mxu3 }
 0x43b   : > { %v8055_v26 = vadd.f32 %v3868_v18, %v3794_v25  ;;  %v3939_v14 = vpop.f32.mrf.mxu1  ;;  %v4133_v20 = vadd.f32 %v4109_v59, %v4047_v49 }
 0x43c   : > { %v3961_v52 = vadd.f32 %v3939_v14, %v3875_v38 }
 0x43e   : > { %v4048_v35 = vadd.f32 %v4026_v4, %v3961_v52  ;;  %v3707_v52 = vadd.f32 %v8041_v46, %v3616_v23  ;;  %v4457_v46 = vld [vmem:[%s8426_s5 + $0x38] sm:$0xff] }
 0x43f   : > { %v4035_v4 = vpop.f32.mrf.mxu2  ;;  %4536 = vmatpush.msra.mxu2 %v4457_v46 }
 0x440   : > { %v3793_v24 = vadd.f32 %v8043_v8, %v3707_v52  ;;  %v5418_v52 = vld [vmem:[%s8426_s5 + $0xb0] sm:$0xff] }
 0x442   : > { %v8058_v42 = vpop.f32.mrf.mxu0  ;;  %v4112_v1 = vpop.f32.mrf.mxu3 }
 0x443   : > { %v3942_v29 = vpop.f32.mrf.mxu1  ;;  %v4134_v15 = vadd.f32 %v4112_v1, %v4048_v35 }
 0x444   : > { %v3962_v53 = vadd.f32 %v3942_v29, %v3876_v2 }
 0x446   : > { %v4049_v5 = vadd.f32 %v4029_v21, %v3962_v53 }
 0x44a   : > { %v4195_v32 = vpop.f32.mrf.mxu0  ;;  %v4115_v30 = vpop.f32.mrf.mxu3 }
 0x44b   : > { %v4219_v57 = vadd.f32 %v4195_v32, %v4133_v20  ;;  %v3945_v48 = vpop.f32.mrf.mxu1  ;;  %v4135_v43 = vadd.f32 %v4115_v30, %v4049_v5 }
 0x44c   : > { %v3963_v47 = vadd.f32 %v3945_v48, %v3877_v56  ;;  %v4456_v56 = vld [vmem:[%s8426_s5 + $0x30] sm:$0xff] }
 0x44d   : > { %v4231_v50 = vadd.f32 %v8066_v55, %v4219_v57  ;;  %4537 = vmatpush.msra.mxu2 %v4456_v56 }
 0x44e   : > { %v4050_v41 = vadd.f32 %v4032_v62, %v3963_v47  ;;  %v5403_v62 = vld [vmem:[%s8426_s5 + $0x58] sm:$0xff]  ;;  %v4455_v47 = vld [vmem:[%s8426_s5 + $0x28] sm:$0xff] }
 0x44f   : > { %v4239_v37 = vmax.f32 %v4231_v50, 0.0  ;;  %4500 = vmatpush.msrb.mxu1 %v5403_v62  ;;  %4538 = vmatpush.msra.mxu2 %v4455_v47 }
 0x451   : > { %v4248_v61 = vsel %vm4247_vm10, %v4239_v37, -inf }
 0x452   : > { %v4198_v0 = vpop.f32.mrf.mxu0  ;;  %v4118_v58 = vpop.f32.mrf.mxu3 }
 0x453   : > { %v4220_v44 = vadd.f32 %v4198_v0, %v4134_v15  ;;  %v3948_v63 = vpop.f32.mrf.mxu1  ;;  %v4136_v20 = vadd.f32 %v4118_v58, %v4050_v41 }
 0x454   : > { %v3964_v36 = vadd.f32 %v3948_v63, %v8047_v10  ;;  %v3879_v63 = vadd.f32 %v8053_v16, %v3793_v24  ;;  %v5416_v24 = vld [vmem:[%s8426_s5 + $0xa0] sm:$0xff] }
 0x455   : > { %v4232_v31 = vadd.f32 %v8066_v55, %v4220_v44 }
 0x457   : > { %v4240_v7 = vmax.f32 %v4232_v31, 0.0 }
 0x459   : > { %v4249_v22 = vsel %vm4247_vm10, %v4240_v7, -inf  ;;  %v5402_v7 = vld [vmem:[%s8426_s5 + $0x50] sm:$0xff] }
 0x45a   : > { %v4250_v60 = vmax.f32 %v4248_v61, %v4249_v22  ;;  %v4201_v2 = vpop.f32.mrf.mxu0  ;;  %v4121_v40 = vpop.f32.mrf.mxu3  ;;  %4501 = vmatpush.msrb.mxu1 %v5402_v7 }
 0x45b   : > { %v4221_v14 = vadd.f32 %v4201_v2, %v4135_v43  ;;  %v3951_v0 = vpop.f32.mrf.mxu1  ;;  %v5401_v2 = vld [vmem:[%s8426_s5 + $0x48] sm:$0xff]  ;;  %v4038_v43 = vpop.f32.mrf.mxu2 }
 0x45c   : > { %v4264_v19 = vrot.slane %v4250_v60, 2  ;;  %v4265_v17 = vrot.slane %v4250_v60, 4  ;;  %v4266_v25 = vrot.slane %v4250_v60, 6  ;;  %v4289_v9 = vsel %vm4288_vm11, %v4250_v60, -inf  ;;  %4502 = vmatpush.msrb.mxu1 %v5401_v2 }
 0x45d   : > { %v4290_v11 = vrot.slane %v4289_v9, 4  ;;  %v4233_v30 = vadd.f32 %v8066_v55, %v4221_v14  ;;  %v4051_v60 = vadd.f32 %v4035_v4, %v3964_v36 }
 0x45e   : > { %v4296_v39 = vsel %vm4288_vm11, %v4264_v19, -inf  ;;  %v4303_v18 = vsel %vm4288_vm11, %v4265_v17, -inf  ;;  %v4310_v59 = vsel %vm4288_vm11, %v4266_v25, -inf }
 0x45f   : > { %v4291_v1 = vmax.f32 %v4289_v9, %v4290_v11  ;;  %v4297_v33 = vrot.slane %v4296_v39, 4  ;;  %v4304_v51 = vrot.slane %v4303_v18, 4  ;;  %v4311_v29 = vrot.slane %v4310_v59, 4 }
 0x460   : > { %v4241_v58 = vmax.f32 %v4233_v30, 0.0  ;;  %v3965_v9 = vadd.f32 %v3951_v0, %v3879_v63  ;;  %v4137_v28 = vadd.f32 %v4121_v40, %v4051_v60  ;;  %v4451_v0 = vld [vmem:[%s8426_s5 + $0x8] sm:$0xff]  ;;  %v5415_v60 = vld [vmem:[%s8426_s5 + $0x98] sm:$0xff] }
 0x461   : > { %v4292_v38 = vrot.slane %v4291_v1, 2  ;;  %v4298_v49 = vmax.f32 %v4296_v39, %v4297_v33  ;;  %v4305_v32 = vmax.f32 %v4303_v18, %v4304_v51  ;;  %v4312_v21 = vmax.f32 %v4310_v59, %v4311_v29  ;;  %v5400_v18 = vld [vmem:[%s8426_s5 + $0x40] sm:$0xff]  ;;  %v5419_v51 = vld [vmem:[%s8426_s5 + $0xb8] sm:$0xff] }
 0x462   : > { %v4204_v57 = vpop.f32.mrf.mxu0  ;;  %v4251_v16 = vsel %vm4247_vm10, %v4241_v58, -inf  ;;  %v4124_v23 = vpop.f32.mrf.mxu3  ;;  %v4454_v59 = vld [vmem:[%s8426_s5 + $0x20] sm:$0xff]  ;;  %4503 = vmatpush.msrb.mxu1 %v5400_v18  ;;  %v4453_v29 = vld [vmem:[%s8426_s5 + $0x18] sm:$0xff]  ;;  %4589 = vmatpush.msra.mxu3 %v5419_v51 }
 0x463   : > { %v4293_v35 = vmax.f32 %v4291_v1, %v4292_v38  ;;  %v4299_v48 = vrot.slane %v4298_v49, 2  ;;  %v4306_v15 = vrot.slane %v4305_v32, 2  ;;  %v4313_v50 = vrot.slane %v4312_v21, 2  ;;  %4539 = vmatpush.msra.mxu2 %v4454_v59  ;;  %v4041_v56 = vpop.f32.mrf.mxu2  ;;  %v5413_v59 = vld [vmem:[%s8426_s5 + $0x88] sm:$0xff] }
 0x464   : > { %v4222_v44 = vadd.f32 %v4204_v57, %v4136_v20  ;;  %v4452_v20 = vld [vmem:[%s8426_s5 + $0x10] sm:$0xff]  ;;  %4590 = vmatpush.msra.mxu3 %v5418_v52 }
 0x465   : > { %v4294_v53 = vrot.slane %v4293_v35, 1  ;;  %v4300_v37 = vmax.f32 %v4298_v49, %v4299_v48  ;;  %v4307_v31 = vmax.f32 %v4305_v32, %v4306_v15  ;;  %v4314_v12 = vmax.f32 %v4312_v21, %v4313_v50  ;;  %v3954_v49 = vpop.f32.mrf.mxu1  ;;  %4540 = vmatpush.msra.mxu2 %v4453_v29 }
 0x466   : > { %v4234_v10 = vadd.f32 %v8066_v55, %v4222_v44  ;;  %v4052_v32 = vadd.f32 %v4038_v43, %v3965_v9  ;;  %v3622_v48 = vadd.f32 %v8045_v6, %v8023_v13  ;;  %v5417_v44 = vld [vmem:[%s8426_s5 + $0xa8] sm:$0xff]  ;;  %v3966_v2 = vadd.f32 %v3954_v49, %v8055_v26 }
 0x467   : > { %v4301_v5 = vrot.slane %v4300_v37, 1  ;;  %v4308_v61 = vrot.slane %v4307_v31, 1  ;;  %v4315_v22 = vrot.slane %v4314_v12, 1  ;;  %v4295_v19 = vmax.f32 %v4293_v35, %v4294_v53  ;;  %4541 = vmatpush.msra.mxu2 %v4452_v20  ;;  %4591 = vmatpush.msra.mxu3 %v5417_v44 }
 0x468   : > { %v4242_v8 = vmax.f32 %v4234_v10, 0.0  ;;  %v4138_v46 = vadd.f32 %v4124_v23, %v4052_v32  ;;  %v3709_v7 = vadd.f32 %v8049_v34, %v3622_v48  ;;  %v5414_v23 = vld [vmem:[%s8426_s5 + $0x90] sm:$0xff] }
 0x469   : > { %v4302_v17 = vmax.f32 %v4300_v37, %v4301_v5  ;;  %v4309_v25 = vmax.f32 %v4307_v31, %v4308_v61  ;;  %v4316_v14 = vmax.f32 %v4314_v12, %v4315_v22  ;;  %4542 = vmatpush.msra.mxu2 %v4451_v0  ;;  %v4450_v12 = vld [vmem:[%s8426_s5] sm:$0xff]  ;;  %4592 = vmatpush.msra.mxu3 %v5416_v24 }
 0x46a   : > { %v4252_v11 = vsel %vm4247_vm10, %v4242_v8, -inf  ;;  %v4207_v39 = vpop.f32.mrf.mxu0  ;;  %v4127_v63 = vpop.f32.mrf.mxu3  ;;  %v3795_v9 = vadd.f32 %v8051_v3, %v3709_v7 }
 0x46b   : > { %v4424_v54 = vsel %vm3389_vm2, %v4302_v17, %v4295_v19  ;;  %v4253_v4 = vmax.f32 %v4251_v16, %v4252_v11  ;;  %v4223_v33 = vadd.f32 %v4207_v39, %v4137_v28  ;;  %4543 = vmatpush.msra.mxu2 %v4450_v12  ;;  %4593 = vmatpush.msra.mxu3 %v5415_v60 }
 0x46c   : > { %v4425_v1 = vsel %vm3391_vm3, %v4309_v25, %v4424_v54  ;;  %v4053_v54 = vadd.f32 %v4041_v56, %v3966_v2  ;;  %v5429_v2 = vld [vmem:[%s8426_s5 + $0xf8] sm:$0xff] }
 0x46d   : > { %v4426_v41 = vsel %vm3393_vm4, %v4316_v14, %v4425_v1  ;;  %v4267_v40 = vrot.slane %v4253_v4, 2  ;;  %v4268_v27 = vrot.slane %v4253_v4, 4  ;;  %v4269_v38 = vrot.slane %v4253_v4, 6  ;;  %v3957_v18 = vpop.f32.mrf.mxu1  ;;  %4594 = vmatpush.msra.mxu3 %v5414_v23  ;;  %4644 = vmatpush.msra.mxu1 %v5429_v2  ;;  %v4551_v23 = vld [vmem:[#allocation3 + $0x2] sm:$0xf] }
 0x46e   : > { %4442 = vst.msk [vmem:[#allocation3 + $0x9] sm:$0xf] %vm4441_vm12, %v4426_v41  ;;  %v4317_v21 = vsel %vm4288_vm11, %v4253_v4, -inf  ;;  %v4235_v53 = vadd.f32 %v8066_v55, %v4223_v33  ;;  %v3881_v14 = vadd.f32 %v8058_v42, %v3795_v9  ;;  %v4139_v32 = vadd.f32 %v4127_v63, %v4053_v54  ;;  %v5428_v9 = vld [vmem:[%s8426_s5 + $0xf0] sm:$0xff]  ;;  %v5426_v54 = vld [vmem:[%s8426_s5 + $0xe0] sm:$0xff] }
 0x46f   : > { %v4318_v30 = vrot.slane %v4317_v21, 4  ;;  %v4324_v57 = vsel %vm4288_vm11, %v4267_v40, -inf  ;;  %v4331_v45 = vsel %vm4288_vm11, %v4268_v27, -inf  ;;  %v4338_v35 = vsel %vm4288_vm11, %v4269_v38, -inf  ;;  %4595 = vmatpush.msra.mxu3 %v5413_v59  ;;  %v5412_v40 = vld [vmem:[%s8426_s5 + $0x80] sm:$0xff]  ;;  %4645 = vmatpush.msra.mxu1 %v5428_v9 }
 0x470   : > { %v4325_v15 = vrot.slane %v4324_v57, 4  ;;  %v4332_v50 = vrot.slane %v4331_v45, 4  ;;  %v4339_v36 = vrot.slane %v4338_v35, 4  ;;  %v4243_v43 = vmax.f32 %v4235_v53, 0.0  ;;  %v4446_v27 = vld [vmem:[#allocation3] sm:$0xf] }
 0x471   : > { %v4319_v62 = vmax.f32 %v4317_v21, %v4318_v30  ;;  %v3967_v49 = vadd.f32 %v3957_v18, %v3881_v14  ;;  %v4044_v21 = vpop.f32.mrf.mxu2  ;;  %4596 = vmatpush.msra.mxu3 %v5412_v40  ;;  %v5427_v14 = vld [vmem:[%s8426_s5 + $0xe8] sm:$0xff]  ;;  %v5425_v40 = vld [vmem:[%s8426_s5 + $0xd8] sm:$0xff] }
 0x472   : > { %v4326_v37 = vmax.f32 %v4324_v57, %v4325_v15  ;;  %v4333_v31 = vmax.f32 %v4331_v45, %v4332_v50  ;;  %v4340_v13 = vmax.f32 %v4338_v35, %v4339_v36  ;;  %v4210_v6 = vpop.f32.mrf.mxu0  ;;  %v4254_v3 = vsel %vm4247_vm10, %v4243_v43, -inf  ;;  %v4130_v36 = vpop.f32.mrf.mxu3  ;;  %4646 = vmatpush.msra.mxu1 %v5427_v14  ;;  %v5456_v14 = vld [vmem:[%s8426_s5 + $0x1a0] sm:$0xff] }
 0x473   : > { %v4320_v58 = vrot.slane %v4319_v62, 2  ;;  %v4224_v10 = vadd.f32 %v4210_v6, %v4138_v46 }
 0x474   : > { %v4327_v5 = vrot.slane %v4326_v37, 2  ;;  %v4334_v61 = vrot.slane %v4333_v31, 2  ;;  %v4341_v22 = vrot.slane %v4340_v13, 2  ;;  %4647 = vmatpush.msra.mxu1 %v5426_v54 }
 0x475   : > { %v4459_v8 = vld [vmem:[#allocation3 + $0x9] sm:$0xf]  ;;  %v4321_v47 = vmax.f32 %v4319_v62, %v4320_v58  ;;  %v4236_v19 = vadd.f32 %v8066_v55, %v4224_v10  ;;  %v4054_v62 = vadd.f32 %v4044_v21, %v3967_v49  ;;  %v5437_v49 = vld [vmem:[%s8426_s5 + $0x128] sm:$0xff] }
 0x476   : > { %4477 = vst [vmem:[#allocation1 + $0x1] ss:$2 sm:$0xff] %v4459_v8  ;;  %v4328_v34 = vmax.f32 %v4326_v37, %v4327_v5  ;;  %v4335_v17 = vmax.f32 %v4333_v31, %v4334_v61  ;;  %v4342_v25 = vmax.f32 %v4340_v13, %v4341_v22  ;;  %v4447_v57 = vld [vmem:[#allocation3 + $0x8] sm:$0xf]  ;;  %4648 = vmatpush.msra.mxu1 %v5425_v40  ;;  %v5469_v40 = vld [vmem:[%s8426_s5 + $0x1f8] sm:$0xff] }
 0x477   : > { %v4322_v28 = vrot.slane %v4321_v47, 1  ;;  %v4244_v16 = vmax.f32 %v4236_v19, 0.0  ;;  %v4140_v12 = vadd.f32 %v4130_v36, %v4054_v62  ;;  %v5435_v36 = vld [vmem:[%s8426_s5 + $0x118] sm:$0xff]  ;;  %v4661_v54 = vld [vmem:[#allocation3 + $0x9] sm:$0xf] }
 0x478   : > { %v4329_v11 = vrot.slane %v4328_v34, 1  ;;  %v4336_v39 = vrot.slane %v4335_v17, 1  ;;  %v4343_v26 = vrot.slane %v4342_v25, 1 }
 0x479   : > { %v4255_v4 = vsel %vm4247_vm10, %v4244_v16, -inf  ;;  %v4323_v1 = vmax.f32 %v4321_v47, %v4322_v28 }
 0x47a   : > { %v4330_v33 = vmax.f32 %v4328_v34, %v4329_v11  ;;  %v4337_v51 = vmax.f32 %v4335_v17, %v4336_v39  ;;  %v4256_v29 = vmax.f32 %v4254_v3, %v4255_v4  ;;  %v4213_v41 = vpop.f32.mrf.mxu0  ;;  %v4344_v38 = vmax.f32 %v4342_v25, %v4343_v26  ;;  %v4552_v11 = vld [vmem:[#allocation3 + $0xa] sm:$0xf] }
 0x47b   : > { %v4225_v15 = vadd.f32 %v4213_v41, %v4139_v32  ;;  %v5449_v32 = vld [vmem:[%s8426_s5 + $0x178] sm:$0xff] }
 0x47c   : > { %v4427_v42 = vsel %vm3389_vm2, %v4330_v33, %v4323_v1  ;;  %v4270_v52 = vrot.slane %v4256_v29, 2  ;;  %v4271_v20 = vrot.slane %v4256_v29, 4  ;;  %v4272_v30 = vrot.slane %v4256_v29, 6  ;;  %4754 = vmatpush.msrb.mxu3 %v5449_v32 }
 0x47d   : > { %v4482_v45 = vld.sshfl [vmem:[#allocation1] sm:$0xff pattern:$0x75316420]  ;;  %v4428_v35 = vsel %vm3391_vm3, %v4337_v51, %v4427_v42  ;;  %v4345_v48 = vsel %vm4288_vm11, %v4256_v29, -inf  ;;  %v4237_v56 = vadd.f32 %v8066_v55, %v4225_v15  ;;  %v5439_v51 = vld [vmem:[%s8426_s5 + $0x138] sm:$0xff]  ;;  %v5438_v29 = vld [vmem:[%s8426_s5 + $0x130] sm:$0xff] }
 0x47e   : > { %4515 = vst [vmem:[#allocation1] ss:$2 sm:$0xff] %v4446_v27  ;;  %v4429_v50 = vsel %vm3393_vm4, %v4344_v38, %v4428_v35  ;;  %v4346_v0 = vrot.slane %v4345_v48, 4  ;;  %v4352_v44 = vsel %vm4288_vm11, %v4270_v52, -inf  ;;  %v4359_v46 = vsel %vm4288_vm11, %v4271_v20, -inf  ;;  %5408 = vmatmul.msk.f32.vlgmr.msrb.gmra.mxu1 %vm4247_vm10, %v4482_v45  ;;  %4699 = vmatpush.msrb.mxu2 %v5439_v51  ;;  %v5448_v45 = vld [vmem:[%s8426_s5 + $0x170] sm:$0xff] }
 0x47f   : > { %4517 = vst [vmem:[#allocation1 + $0x1] ss:$2 sm:$0xff] %v4447_v57  ;;  %v4353_v53 = vrot.slane %v4352_v44, 4  ;;  %v4360_v37 = vrot.slane %v4359_v46, 4  ;;  %v4366_v31 = vsel %vm4288_vm11, %v4272_v30, -inf  ;;  %v4245_v17 = vmax.f32 %v4237_v56, 0.0  ;;  %4755 = vmatpush.msrb.mxu3 %v5448_v45 }
 0x480   : > { %4443 = vst.msk [vmem:[#allocation3 + $0x11] sm:$0xf] %vm4441_vm12, %v4429_v50  ;;  %v4347_v13 = vmax.f32 %v4345_v48, %v4346_v0  ;;  %v4367_v6 = vrot.slane %v4366_v31, 4  ;;  %v5424_v30 = vld [vmem:[%s8426_s5 + $0xd0] sm:$0xff]  ;;  %4700 = vmatpush.msrb.mxu2 %v5438_v29  ;;  %v5423_v57 = vld [vmem:[%s8426_s5 + $0xc8] sm:$0xff]  ;;  %v5436_v50 = vld [vmem:[%s8426_s5 + $0x120] sm:$0xff] }
 0x481   : > { %v4354_v24 = vmax.f32 %v4352_v44, %v4353_v53  ;;  %v4361_v58 = vmax.f32 %v4359_v46, %v4360_v37  ;;  %v4257_v59 = vsel %vm4247_vm10, %v4245_v17, -inf  ;;  %v4606_v35 = vld [vmem:[#allocation3 + $0x8] sm:$0xf]  ;;  %v5447_v0 = vld [vmem:[%s8426_s5 + $0x168] sm:$0xff]  ;;  %4649 = vmatpush.msra.mxu1 %v5424_v30  ;;  %v5442_v29 = vld [vmem:[%s8426_s5 + $0x140] sm:$0xff] }
 0x482   : > { %v4348_v10 = vrot.slane %v4347_v13, 2  ;;  %v4368_v7 = vmax.f32 %v4366_v31, %v4367_v6  ;;  %v4216_v5 = vpop.f32.mrf.mxu0  ;;  %4701 = vmatpush.msrb.mxu2 %v5437_v49  ;;  %4756 = vmatpush.msrb.mxu3 %v5447_v0  ;;  %v5444_v17 = vld [vmem:[%s8426_s5 + $0x150] sm:$0xff]  ;;  %v5453_v45 = vld [vmem:[%s8426_s5 + $0x188] sm:$0xff]  ;;  %v5465_v0 = vld [vmem:[%s8426_s5 + $0x1d8] sm:$0xff] }
 0x483   : > { %v4355_v61 = vrot.slane %v4354_v24, 2  ;;  %v4362_v22 = vrot.slane %v4361_v58, 2  ;;  %v4226_v63 = vadd.f32 %v4216_v5, %v4140_v12  ;;  %4650 = vmatpush.msra.mxu1 %v5423_v57  ;;  %v5468_v49 = vld [vmem:[%s8426_s5 + $0x1f0] sm:$0xff] }
 0x484   : > { %v4349_v60 = vmax.f32 %v4347_v13, %v4348_v10  ;;  %v4369_v8 = vrot.slane %v4368_v7, 2  ;;  %4702 = vmatpush.msrb.mxu2 %v5436_v50  ;;  %v5446_v10 = vld [vmem:[%s8426_s5 + $0x160] sm:$0xff]  ;;  %v4716_v50 = vld [vmem:[#allocation3 + $0xa] sm:$0xf] }
 0x485   : > { %v4356_v47 = vmax.f32 %v4354_v24, %v4355_v61  ;;  %v4363_v43 = vmax.f32 %v4361_v58, %v4362_v22  ;;  %v4238_v19 = vadd.f32 %v8066_v55, %v4226_v63  ;;  %v5422_v58 = vld [vmem:[%s8426_s5 + $0xc0] sm:$0xff]  ;;  %v5434_v61 = vld [vmem:[%s8426_s5 + $0x110] sm:$0xff]  ;;  %v5459_v22 = vld [vmem:[%s8426_s5 + $0x1b8] sm:$0xff]  ;;  %4757 = vmatpush.msrb.mxu3 %v5446_v10 }
 0x486   : > { %v4370_v34 = vmax.f32 %v4368_v7, %v4369_v8  ;;  %v4522_v25 = vld.sshfl [vmem:[#allocation1] sm:$0xff pattern:$0x75316420]  ;;  %v4350_v16 = vrot.slane %v4349_v60, 1  ;;  %4703 = vmatpush.msrb.mxu2 %v5435_v36  ;;  %4651 = vmatpush.msra.mxu1 %v5422_v58 }
 0x487   : > { %v4460_v28 = vld [vmem:[#allocation3 + $0x11] sm:$0xf]  ;;  %5410 = vmatmul.msk.f32.vlgmr.msra.gmra.mxu2 %vm4247_vm10, %v4522_v25  ;;  %v4357_v39 = vrot.slane %v4356_v47, 1  ;;  %v4364_v26 = vrot.slane %v4363_v43, 1  ;;  %v4246_v55 = vmax.f32 %v4238_v19, 0.0  ;;  %v5458_v19 = vld [vmem:[%s8426_s5 + $0x1b0] sm:$0xff] }
 0x488   : > { %4479 = vst [vmem:[#allocation1 + $0x10] ss:$2 sm:$0xff] %v4460_v28  ;;  %v4371_v18 = vrot.slane %v4370_v34, 1  ;;  %v4351_v3 = vmax.f32 %v4349_v60, %v4350_v16  ;;  %v4607_v12 = vld [vmem:[#allocation3 + $0x10] sm:$0xf]  ;;  %4704 = vmatpush.msrb.mxu2 %v5434_v61  ;;  %4810 = vmatpush.msrb.mxu1 %v5459_v22  ;;  %v5473_v61 = vld [vmem:[%s8426_s5 + $0x208] sm:$0xff] }
 0x489   : > { %4570 = vst [vmem:[#allocation1 + $0x1] ss:$2 sm:$0xff] %v4552_v11  ;;  %v4358_v4 = vmax.f32 %v4356_v47, %v4357_v39  ;;  %v4365_v1 = vmax.f32 %v4363_v43, %v4364_v26  ;;  %v4258_v33 = vsel %vm4247_vm10, %v4246_v55, -inf  ;;  %v5445_v60 = vld [vmem:[%s8426_s5 + $0x158] sm:$0xff]  ;;  %v5433_v43 = vld [vmem:[%s8426_s5 + $0x108] sm:$0xff] }
 0x48a   : > { %4568 = vst [vmem:[#allocation1] ss:$2 sm:$0xff] %v4551_v23  ;;  %v4259_v41 = vmax.f32 %v4257_v59, %v4258_v33  ;;  %v4372_v27 = vmax.f32 %v4370_v34, %v4371_v18  ;;  %v5432_v23 = vld [vmem:[%s8426_s5 + $0x100] sm:$0xff]  ;;  %4758 = vmatpush.msrb.mxu3 %v5445_v60  ;;  %v5457_v11 = vld [vmem:[%s8426_s5 + $0x1a8] sm:$0xff]  ;;  %4705 = vmatpush.msrb.mxu2 %v5433_v43  ;;  %v4448_v57 = vld [vmem:[#allocation3 + $0x10] sm:$0xf] }
 0x48b   : > { %v4430_v38 = vsel %vm3389_vm2, %v4358_v4, %v4351_v3  ;;  %4811 = vmatpush.msrb.mxu1 %v5458_v19  ;;  %v5443_v59 = vld [vmem:[%s8426_s5 + $0x148] sm:$0xff]  ;;  %v4662_v4 = vld [vmem:[#allocation3 + $0x11] sm:$0xf] }
 0x48c   : > { %v4431_v42 = vsel %vm3391_vm3, %v4365_v1, %v4430_v38  ;;  %v4273_v21 = vrot.slane %v4259_v41, 2  ;;  %v4274_v52 = vrot.slane %v4259_v41, 4  ;;  %v4275_v20 = vrot.slane %v4259_v41, 6  ;;  %4759 = vmatpush.msrb.mxu3 %v5444_v17  ;;  %4706 = vmatpush.msrb.mxu2 %v5432_v23  ;;  %v4717_v36 = vld [vmem:[#allocation3 + $0x12] sm:$0xf] }
 0x48d   : > { %v4432_v48 = vsel %vm3393_vm4, %v4372_v27, %v4431_v42  ;;  %v4373_v15 = vsel %vm4288_vm11, %v4259_v41, -inf  ;;  %4812 = vmatpush.msrb.mxu1 %v5457_v11  ;;  %v5455_v41 = vld [vmem:[%s8426_s5 + $0x198] sm:$0xff]  ;;  %v5454_v42 = vld [vmem:[%s8426_s5 + $0x190] sm:$0xff] }
 0x48e   : > { %4444 = vst.msk [vmem:[#allocation3 + $0x19] sm:$0xf] %vm4441_vm12, %v4432_v48  ;;  %v4374_v44 = vrot.slane %v4373_v15, 4  ;;  %v4380_v46 = vsel %vm4288_vm11, %v4273_v21, -inf  ;;  %v4387_v62 = vsel %vm4288_vm11, %v4274_v52, -inf  ;;  %v4394_v53 = vsel %vm4288_vm11, %v4275_v20, -inf  ;;  %4760 = vmatpush.msrb.mxu3 %v5443_v59  ;;  %4865 = vmatpush.msra.mxu2 %v5469_v40 }
 0x48f   : > { %v4381_v37 = vrot.slane %v4380_v46, 4  ;;  %v4388_v31 = vrot.slane %v4387_v62, 4  ;;  %v4395_v13 = vrot.slane %v4394_v53, 4  ;;  %4813 = vmatpush.msrb.mxu1 %v5456_v14  ;;  %v5467_v21 = vld [vmem:[%s8426_s5 + $0x1e8] sm:$0xff]  ;;  %v5452_v48 = vld [vmem:[%s8426_s5 + $0x180] sm:$0xff] }
 0x490   : > { %v4375_v24 = vmax.f32 %v4373_v15, %v4374_v44  ;;  %4761 = vmatpush.msrb.mxu3 %v5442_v29  ;;  %4866 = vmatpush.msra.mxu2 %v5468_v49  ;;  %v5479_v44 = vld [vmem:[%s8426_s5 + $0x238] sm:$0xff] }
 0x491   : > { %v4575_v6 = vld.sshfl [vmem:[#allocation1] sm:$0xff pattern:$0x75316420]  ;;  %v4382_v7 = vmax.f32 %v4380_v46, %v4381_v37  ;;  %v4389_v56 = vmax.f32 %v4387_v62, %v4388_v31  ;;  %v4396_v5 = vmax.f32 %v4394_v53, %v4395_v13  ;;  %4814 = vmatpush.msrb.mxu1 %v5455_v41  ;;  %v5464_v46 = vld [vmem:[%s8426_s5 + $0x1d0] sm:$0xff]  ;;  %v5463_v53 = vld [vmem:[%s8426_s5 + $0x1c8] sm:$0xff] }
 0x492   : > { %5420 = vmatmul.msk.f32.vlgmr.msra.gmra.mxu3 %vm4247_vm10, %v4575_v6  ;;  %4623 = vst [vmem:[#allocation1] ss:$2 sm:$0xff] %v4606_v35  ;;  %v4376_v63 = vrot.slane %v4375_v24, 2  ;;  %v5466_v35 = vld [vmem:[%s8426_s5 + $0x1e0] sm:$0xff]  ;;  %4867 = vmatpush.msra.mxu2 %v5467_v21  ;;  %v5478_v62 = vld [vmem:[%s8426_s5 + $0x230] sm:$0xff]  ;;  %v5477_v13 = vld [vmem:[%s8426_s5 + $0x228] sm:$0xff] }
 0x493   : > { %4625 = vst [vmem:[#allocation1 + $0x1] ss:$2 sm:$0xff] %v4607_v12  ;;  %v4383_v8 = vrot.slane %v4382_v7, 2  ;;  %v4390_v2 = vrot.slane %v4389_v56, 2  ;;  %v4397_v47 = vrot.slane %v4396_v5, 2  ;;  %4815 = vmatpush.msrb.mxu1 %v5454_v42  ;;  %4920 = vmatpush.msra.mxu3 %v5479_v44  ;;  %v5462_v12 = vld [vmem:[%s8426_s5 + $0x1c0] sm:$0xff] }
 0x494   : > { %v4377_v34 = vmax.f32 %v4375_v24, %v4376_v63  ;;  %4868 = vmatpush.msra.mxu2 %v5466_v35  ;;  %v4553_v37 = vld [vmem:[#allocation3 + $0x12] sm:$0xf]  ;;  %v5476_v24 = vld [vmem:[%s8426_s5 + $0x220] sm:$0xff] }
 0x495   : > { %v4461_v25 = vld [vmem:[#allocation3 + $0x19] sm:$0xf]  ;;  %v4384_v9 = vmax.f32 %v4382_v7, %v4383_v8  ;;  %v4391_v28 = vmax.f32 %v4389_v56, %v4390_v2  ;;  %v4398_v16 = vmax.f32 %v4396_v5, %v4397_v47  ;;  %4816 = vmatpush.msrb.mxu1 %v5453_v45  ;;  %4921 = vmatpush.msra.mxu3 %v5478_v62  ;;  %v4772_v10 = vld [vmem:[#allocation3 + $0x10] sm:$0xf]  ;;  %v5474_v5 = vld [vmem:[%s8426_s5 + $0x210] sm:$0xff] }
 0x496   : > { %4481 = vst [vmem:[#allocation1 + $0x11] ss:$2 sm:$0xff] %v4461_v25  ;;  %v4378_v39 = vrot.slane %v4377_v34, 1  ;;  %v4449_v52 = vld [vmem:[#allocation3 + $0x18] sm:$0xf]  ;;  %4869 = vmatpush.msra.mxu2 %v5465_v0  ;;  %v5475_v56 = vld [vmem:[%s8426_s5 + $0x218] sm:$0xff] }
 0x497   : > { %v4385_v26 = vrot.slane %v4384_v9, 1  ;;  %v4392_v18 = vrot.slane %v4391_v28, 1  ;;  %v4399_v55 = vrot.slane %v4398_v16, 1  ;;  %4817 = vmatpush.msrb.mxu1 %v5452_v48  ;;  %v4554_v6 = vld [vmem:[#allocation3 + $0x1a] sm:$0xf]  ;;  %4922 = vmatpush.msra.mxu3 %v5477_v13 }
 0x498   : > { %v4379_v1 = vmax.f32 %v4377_v34, %v4378_v39  ;;  %4870 = vmatpush.msra.mxu2 %v5464_v46  ;;  %v4773_v7 = vld [vmem:[#allocation3 + $0x18] sm:$0xf]  ;;  %v4827_v47 = vld [vmem:[#allocation3 + $0x11] sm:$0xf]  ;;  %v4775_v39 = vld [vmem:[#allocation3 + $0x28] sm:$0xf] }
 0x499   : > { %v4386_v33 = vmax.f32 %v4384_v9, %v4385_v26  ;;  %v4393_v51 = vmax.f32 %v4391_v28, %v4392_v18  ;;  %v4400_v27 = vmax.f32 %v4398_v16, %v4399_v55  ;;  %4923 = vmatpush.msra.mxu3 %v5476_v24  ;;  %v4608_v22 = vld [vmem:[#allocation3 + $0x18] sm:$0xf]  ;;  %v4882_v9 = vld [vmem:[#allocation3 + $0x12] sm:$0xf]  ;;  %v4830_v55 = vld [vmem:[#allocation3 + $0x29] sm:$0xf] }
 0x49a   : > { %v4630_v3 = vld.sshfl [vmem:[#allocation1] sm:$0xff pattern:$0x75316420]  ;;  %4871 = vmatpush.msra.mxu2 %v5463_v53 }
 0x49b   : > { %4678 = vst [vmem:[#allocation1] ss:$2 sm:$0xff] %v4661_v54  ;;  %v4433_v38 = vsel %vm3389_vm2, %v4386_v33, %v4379_v1  ;;  %4924 = vmatpush.msra.mxu3 %v5475_v56  ;;  %v5472_v8 = vld [vmem:[%s8426_s5 + $0x200] sm:$0xff] }
 0x49c   : > { %4680 = vst [vmem:[#allocation1 + $0x1] ss:$2 sm:$0xff] %v4662_v4  ;;  %v4434_v32 = vsel %vm3391_vm3, %v4393_v51, %v4433_v38  ;;  %4872 = vmatpush.msra.mxu2 %v5462_v12  ;;  %v4828_v43 = vld [vmem:[#allocation3 + $0x19] sm:$0xf]  ;;  %v5550_v44 = vld [vmem:[%s8427_s6] ss:$0 sm:$0xff] }
 0x49d   : > { %v4483_v20 = vld.sshfl [vmem:[#allocation1 + $0x10] sm:$0xff pattern:$0x75316420]  ;;  %v4435_v30 = vsel %vm3393_vm4, %v4400_v27, %v4434_v32  ;;  %4925 = vmatpush.msra.mxu3 %v5474_v5  ;;  %v4663_v19 = vld [vmem:[#allocation3 + $0x19] sm:$0xf] }
 0x49e   : > { %4521 = vst [vmem:[#allocation1 + $0x11] ss:$2 sm:$0xff] %v4449_v52  ;;  %5409 = vmatmul.msk.f32.gmra.mxu1 %vm4247_vm10, %v4483_v20  ;;  %v4883_v28 = vld [vmem:[#allocation3 + $0x1a] sm:$0xf] }
 0x49f   : > { %4519 = vst [vmem:[#allocation1 + $0x10] ss:$2 sm:$0xff] %v4448_v57  ;;  %4926 = vmatpush.msra.mxu3 %v5473_v61  ;;  %v4718_v23 = vld [vmem:[#allocation3 + $0x1a] sm:$0xf] }
 0x4a0   : > { %4445 = vst.msk [vmem:[#allocation3 + $0x21] sm:$0xf] %vm4441_vm12, %v4435_v30 }
 0x4a1   : > { %4927 = vmatpush.msra.mxu3 %v5472_v8 }
 0x4a3   : > { %v4685_v15 = vld.sshfl [vmem:[#allocation1] sm:$0xff pattern:$0x75316420] }
 0x4a4   : > { %4733 = vst [vmem:[#allocation1] ss:$2 sm:$0xff] %v4716_v50 }
 0x4a5   : > { %4735 = vst [vmem:[#allocation1 + $0x1] ss:$2 sm:$0xff] %v4717_v36 }
 0x4a6   : > { %v4523_v31 = vld.sshfl [vmem:[#allocation1 + $0x10] sm:$0xff pattern:$0x75316420]  ;;  %5430 = vmatmul.msk.f32.vlgmr.msra.gmra.mxu1 %vm4247_vm10, %v4630_v3 }
 0x4a7   : > { %5411 = vmatmul.msk.f32.gmra.mxu2 %vm4247_vm10, %v4523_v31  ;;  %4572 = vst [vmem:[#allocation1 + $0x10] ss:$2 sm:$0xff] %v4553_v37  ;;  %v4609_v60 = vld [vmem:[#allocation3 + $0x20] sm:$0xf]  ;;  %v4885_v3 = vld [vmem:[#allocation3 + $0x2a] sm:$0xf] }
 0x4a8   : > { %4574 = vst [vmem:[#allocation1 + $0x11] ss:$2 sm:$0xff] %v4554_v6  ;;  %v4664_v17 = vld [vmem:[#allocation3 + $0x21] sm:$0xf] }
 0x4a9   : > { %v4719_v11 = vld [vmem:[#allocation3 + $0x22] sm:$0xf] }
 0x4aa   : > { %v4774_v18 = vld [vmem:[#allocation3 + $0x20] sm:$0xf] }
 0x4ab   : > { %v4829_v54 = vld [vmem:[#allocation3 + $0x21] sm:$0xf] }
 0x4ac   : > { %v4740_v58 = vld.sshfl [vmem:[#allocation1] sm:$0xff pattern:$0x75316420]  ;;  %v4884_v1 = vld [vmem:[#allocation3 + $0x22] sm:$0xf] }
 0x4ad   : > { %4789 = vst [vmem:[#allocation1] ss:$2 sm:$0xff] %v4772_v10 }
 0x4ae   : > { %4791 = vst [vmem:[#allocation1 + $0x1] ss:$2 sm:$0xff] %v4773_v7 }
 0x4af   : > { %v4576_v63 = vld.sshfl [vmem:[#allocation1 + $0x10] sm:$0xff pattern:$0x75316420]  ;;  %5440 = vmatmul.msk.f32.vlgmr.msrb.gmra.mxu2 %vm4247_vm10, %v4685_v15 }
 0x4b0   : > { %5421 = vmatmul.msk.f32.gmra.mxu3 %vm4247_vm10, %v4576_v63  ;;  %4627 = vst [vmem:[#allocation1 + $0x10] ss:$2 sm:$0xff] %v4608_v22 }
 0x4b1   : > { %4629 = vst [vmem:[#allocation1 + $0x11] ss:$2 sm:$0xff] %v4609_v60 }
 0x4b5   : > { %v4796_v2 = vld.sshfl [vmem:[#allocation1] sm:$0xff pattern:$0x75316420] }
 0x4b6   : > { %4844 = vst [vmem:[#allocation1] ss:$2 sm:$0xff] %v4827_v47 }
 0x4b7   : > { %4846 = vst [vmem:[#allocation1 + $0x1] ss:$2 sm:$0xff] %v4828_v43 }
 0x4b8   : > { %v4631_v34 = vld.sshfl [vmem:[#allocation1 + $0x10] sm:$0xff pattern:$0x75316420]  ;;  %5450 = vmatmul.msk.f32.vlgmr.msrb.gmra.mxu3 %vm4247_vm10, %v4740_v58 }
 0x4b9   : > { %5431 = vmatmul.msk.f32.gmra.mxu1 %vm4247_vm10, %v4631_v34  ;;  %4682 = vst [vmem:[#allocation1 + $0x10] ss:$2 sm:$0xff] %v4663_v19 }
 0x4ba   : > { %4684 = vst [vmem:[#allocation1 + $0x11] ss:$2 sm:$0xff] %v4664_v17 }
 0x4be   : > { %v4851_v25 = vld.sshfl [vmem:[#allocation1] sm:$0xff pattern:$0x75316420] }
 0x4bf   : > { %4899 = vst [vmem:[#allocation1] ss:$2 sm:$0xff] %v4882_v9 }
 0x4c0   : > { %4901 = vst [vmem:[#allocation1 + $0x1] ss:$2 sm:$0xff] %v4883_v28 }
 0x4c1   : > { %v4686_v16 = vld.sshfl [vmem:[#allocation1 + $0x10] sm:$0xff pattern:$0x75316420]  ;;  %5460 = vmatmul.msk.f32.vlgmr.msrb.gmra.mxu1 %vm4247_vm10, %v4796_v2 }
 0x4c2   : > { %5441 = vmatmul.msk.f32.gmra.mxu2 %vm4247_vm10, %v4686_v16  ;;  %4737 = vst [vmem:[#allocation1 + $0x10] ss:$2 sm:$0xff] %v4718_v23 }
 0x4c3   : > { %4739 = vst [vmem:[#allocation1 + $0x11] ss:$2 sm:$0xff] %v4719_v11 }
 0x4c7   : > { %v4906_v59 = vld.sshfl [vmem:[#allocation1] sm:$0xff pattern:$0x75316420] }
 0x4ca   : > { %v4741_v26 = vld.sshfl [vmem:[#allocation1 + $0x10] sm:$0xff pattern:$0x75316420]  ;;  %5470 = vmatmul.msk.f32.vlgmr.msra.gmra.mxu2 %vm4247_vm10, %v4851_v25 }
 0x4cb   : > { %5451 = vmatmul.msk.f32.gmra.mxu3 %vm4247_vm10, %v4741_v26  ;;  %4793 = vst [vmem:[#allocation1 + $0x10] ss:$2 sm:$0xff] %v4774_v18 }
 0x4cc   : > { %4795 = vst [vmem:[#allocation1 + $0x11] ss:$2 sm:$0xff] %v4775_v39 }
 0x4d3   : > { %v4797_v14 = vld.sshfl [vmem:[#allocation1 + $0x10] sm:$0xff pattern:$0x75316420]  ;;  %5480 = vmatmul.msk.f32.vlgmr.msra.gmra.mxu3 %vm4247_vm10, %v4906_v59 }
 0x4d4   : > { %5461 = vmatmul.msk.f32.gmra.mxu1 %vm4247_vm10, %v4797_v14  ;;  %4848 = vst [vmem:[#allocation1 + $0x10] ss:$2 sm:$0xff] %v4829_v54 }
 0x4d5   : > { %4850 = vst [vmem:[#allocation1 + $0x11] ss:$2 sm:$0xff] %v4830_v55 }
 0x4dc   : > { %v4852_v4 = vld.sshfl [vmem:[#allocation1 + $0x10] sm:$0xff pattern:$0x75316420] }
 0x4dd   : > { %5471 = vmatmul.msk.f32.gmra.mxu2 %vm4247_vm10, %v4852_v4  ;;  %4903 = vst [vmem:[#allocation1 + $0x10] ss:$2 sm:$0xff] %v4884_v1 }
 0x4de   : > { %4905 = vst [vmem:[#allocation1 + $0x11] ss:$2 sm:$0xff] %v4885_v3 }
 0x4e5   : > { %v4907_v33 = vld.sshfl [vmem:[#allocation1 + $0x10] sm:$0xff pattern:$0x75316420] }
 0x4e6   : > { %5481 = vmatmul.msk.f32.gmra.mxu3 %vm4247_vm10, %v4907_v33 }
 0x4fb   : > { %v4505_v51 = vpop.f32.mrf.mxu1 }
 0x50a   : > { %v4545_v29 = vpop.f32.mrf.mxu2 }
 0x50b   : > { %v4546_v52 = vadd.f32 %v4545_v29, %v4505_v51 }
 0x515   : > { %v4598_v41 = vpop.f32.mrf.mxu3 }
 0x516   : > { %v4604_v30 = vadd.f32 %v4598_v41, %v4546_v52 }
 0x51b   : > { %v4508_v40 = vpop.f32.mrf.mxu1 }
 0x523   : > { %v4653_v49 = vpop.f32.mrf.mxu1 }
 0x524   : > { %v4659_v57 = vadd.f32 %v4653_v49, %v4604_v30 }
 0x52a   : > { %v4548_v27 = vpop.f32.mrf.mxu2 }
 0x52b   : > { %v4549_v53 = vadd.f32 %v4548_v27, %v4508_v40 }
 0x532   : > { %v4708_v32 = vpop.f32.mrf.mxu2 }
 0x533   : > { %v4601_v38 = vpop.f32.mrf.mxu3  ;;  %v4714_v45 = vadd.f32 %v4708_v32, %v4659_v57 }
 0x534   : > { %v4605_v31 = vadd.f32 %v4601_v38, %v4549_v53 }
 0x536   : > { %v4656_v42 = vpop.f32.mrf.mxu1 }
 0x537   : > { %v4660_v12 = vadd.f32 %v4656_v42, %v4605_v31 }
 0x53b   : > { %v4763_v21 = vpop.f32.mrf.mxu3 }
 0x53c   : > { %v4769_v48 = vadd.f32 %v4763_v21, %v4714_v45 }
 0x53e   : > { %v4819_v15 = vpop.f32.mrf.mxu1 }
 0x53f   : > { %v4825_v36 = vadd.f32 %v4819_v15, %v4769_v48 }
 0x545   : > { %v4711_v20 = vpop.f32.mrf.mxu2 }
 0x546   : > { %v4715_v10 = vadd.f32 %v4711_v20, %v4660_v12 }
 0x54d   : > { %v4874_v50 = vpop.f32.mrf.mxu2 }
 0x54e   : > { %v4766_v35 = vpop.f32.mrf.mxu3  ;;  %v4880_v0 = vadd.f32 %v4874_v50, %v4825_v36 }
 0x54f   : > { %v4770_v56 = vadd.f32 %v4766_v35, %v4715_v10 }
 0x551   : > { %v4822_v61 = vpop.f32.mrf.mxu1 }
 0x552   : > { %v4826_v47 = vadd.f32 %v4822_v61, %v4770_v56 }
 0x556   : > { %v4929_v46 = vpop.f32.mrf.mxu3 }
 0x557   : > { %v4935_v62 = vadd.f32 %v4929_v46, %v4880_v0 }
 0x559   : > { %v4941_v37 = vadd.f32 %v5550_v44, %v4935_v62 }
 0x55b   : > { %v4943_v13 = vmax.f32 %v4941_v37, 0.0 }
 0x55d   : > { %v4947_v6 = vrot.slane %v4943_v13, 4  ;;  %v4952_v24 = vsel %vm4951_vm13, %v4943_v13, -inf }
 0x55f   : > { %v4953_v58 = vsel %vm4951_vm13, %v4947_v6, -inf }
 0x560   : > { %v4954_v7 = vmax.f32 %v4952_v24, %v4953_v58  ;;  %v4877_v2 = vpop.f32.mrf.mxu2 }
 0x561   : > { %v4881_v25 = vadd.f32 %v4877_v2, %v4826_v47 }
 0x562   : > { %v4960_v5 = vrot.slane %v4954_v7, 2 }
 0x564   : > { %v4963_v22 = vsel %vm4962_vm14, %v4954_v7, %v4960_v5  ;;  %v4965_v63 = vsel %vm4964_vm15, %v4954_v7, %v4960_v5 }
 0x565   : > { %v4966_v60 = vrot.slane %v4965_v63, 2  ;;  %v4974_v8 = vsel %vm4962_vm14, %v4963_v22, -inf }
 0x566   : > { %v4975_v43 = vrot.slane %v4974_v8, 4 }
 0x567   : > { %v4981_v19 = vsel %vm4962_vm14, %v4966_v60, -inf }
 0x568   : > { %v4976_v34 = vmax.f32 %v4974_v8, %v4975_v43  ;;  %v4982_v17 = vrot.slane %v4981_v19, 4 }
 0x569   : > { %v4932_v9 = vpop.f32.mrf.mxu3 }
 0x56a   : > { %v4977_v28 = vrot.slane %v4976_v34, 2  ;;  %v4983_v16 = vmax.f32 %v4981_v19, %v4982_v17  ;;  %v4936_v23 = vadd.f32 %v4932_v9, %v4881_v25 }
 0x56c   : > { %v4978_v11 = vmax.f32 %v4976_v34, %v4977_v28  ;;  %v4984_v39 = vrot.slane %v4983_v16, 2  ;;  %v4942_v26 = vadd.f32 %v5550_v44, %v4936_v23 }
 0x56e   : > { %v4979_v18 = vrot.slane %v4978_v11, 1  ;;  %v4985_v55 = vmax.f32 %v4983_v16, %v4984_v39  ;;  %v4944_v59 = vmax.f32 %v4942_v26, 0.0 }
 0x570   : > { %v4986_v14 = vrot.slane %v4985_v55, 1  ;;  %v4948_v54 = vrot.slane %v4944_v59, 4  ;;  %v4980_v3 = vmax.f32 %v4978_v11, %v4979_v18  ;;  %v4955_v4 = vsel %vm4951_vm13, %v4944_v59, -inf }
 0x572   : > { %v4956_v1 = vsel %vm4951_vm13, %v4948_v54, -inf  ;;  %v4987_v33 = vmax.f32 %v4985_v55, %v4986_v14 }
 0x573   : > { %v4957_v51 = vmax.f32 %v4955_v4, %v4956_v1 }
 0x574   : > { %v5006_v29 = vsel %vm3389_vm2, %v4987_v33, %v4980_v3 }
 0x575   : > { %v4961_v41 = vrot.slane %v4957_v51, 2  ;;  %5010 = vst [vmem:[%s271_s20] sm:$0x3] %v5006_v29 }
 0x577   : > { %v4967_v40 = vsel %vm4962_vm14, %v4957_v51, %v4961_v41  ;;  %v4968_v27 = vsel %vm4964_vm15, %v4957_v51, %v4961_v41 }
 0x578   : > { %v4969_v38 = vrot.slane %v4968_v27, 2  ;;  %v4988_v49 = vsel %vm4962_vm14, %v4967_v40, -inf }
 0x579   : > { %v4989_v32 = vrot.slane %v4988_v49, 4 }
 0x57a   : > { %v4995_v42 = vsel %vm4962_vm14, %v4969_v38, -inf }
 0x57b   : > { %v4990_v21 = vmax.f32 %v4988_v49, %v4989_v32  ;;  %v4996_v52 = vrot.slane %v4995_v42, 4 }
 0x57d   : > { %v4991_v20 = vrot.slane %v4990_v21, 2  ;;  %v4997_v30 = vmax.f32 %v4995_v42, %v4996_v52 }
 0x57f   : > { %v4992_v57 = vmax.f32 %v4990_v21, %v4991_v20  ;;  %v4998_v45 = vrot.slane %v4997_v30, 2 }
 0x581   : > { %v4993_v35 = vrot.slane %v4992_v57, 1  ;;  %v4999_v48 = vmax.f32 %v4997_v30, %v4998_v45 }
 0x583   : > { %v5000_v15 = vrot.slane %v4999_v48, 1  ;;  %v4994_v50 = vmax.f32 %v4992_v57, %v4993_v35 }
 0x585   : > { %v5001_v36 = vmax.f32 %v4999_v48, %v5000_v15 }
 0x587   : > { %v5007_v0 = vsel %vm3389_vm2, %v5001_v36, %v4994_v50 }
 0x588   : > { %5011 = vst [vmem:[%s271_s20 + $0x2] sm:$0x3] %v5007_v0 }
 0x589   : > { %5599 = shalt.err (!%p5596_p3)
}
 0x58a   : > { %s5638_s18 = smov 32   ;;  %s5639_s20 = smov 2  }
 0x58b   : > { %5493 = dma.vmem_to_hbm [thread:$0]  (%p5718_p5), %s5026_s8, 64, %s5028_s9, %s5013_s28, %s5638_s18, %s5638_s18, %s5639_s20  }
 0x58c PF: > { %p5499_p4 = scmp.ge.s32.totalorder %s5634_s27, 2  ;;  %s5042_s22 = sand.u32 1, %s5622_s24  }
 0x58d   : > { %s5043_s23 = scalar_lea.sflag [#allocation5], %s5042_s22 }
 0x58e   : > { %p5496_p7 = pnand %p5499_p4, %p5722_p6 }
 0x590   : > { %p5497_p8 = pneg %p5496_p7 }
 0x592   : > { %5617 = dma.done.wait (%p5497_p8), %s5043_s23, 64  }
 0x593   : > { %5619 = vsyncadd (%p5497_p8), %s5043_s23, 4294967232  ;;  %p17_p9 = scmp.ge.s32.totalorder %s5705_s30, 4   ;;  %s8786_s24 = smov %s5626_s25 }
 0x594   : > { %s8787_s25 = smov %s5630_s26  ;;  %s8788_s26 = smov %s5716_s10 }
 0x595   : > { %s8789_s27 = smov %s5705_s30  ;;  %19 = sbr.rel (!%p17_p9) target bundleno = 3 (0x3), region = 140 }
 0x59a   :  { %5049 = vsyncpa [#allocation5], 1 }
 0x59b   :  { %5051 = vsyncpa [#allocation5 + $0x1], 1 }

</bundles_post_ra>
